<compile_context>
chip_gen: v7x
topology: tpu7x:2x2x1
jax: 0.10.0
libtpu: 0.0.40
codegen_flags: <defaults>
</compile_context>

<pallas_src>
import math

import jax
import jax.numpy as jnp
from jax.experimental import pallas as pl
from jax.experimental.pallas import tpu as pltpu

EMB_DIM = 32              # emb_dim (scaled down from 128 for the small example)
NUM_HEADS = 4
HEAD_DIM = EMB_DIM // NUM_HEADS
HIDDEN = 256              # BaseNet out_features
MXU_DTYPE = jnp.bfloat16  # dtype of MXU operands; accumulation is always f32


def policy_kernel(x_ref, mask_ref,
                  w1_ref, b1_ref, w2_ref, b2_ref, pos_ref,
                  wqkv_ref, bqkv_ref, wo_ref, bo_ref,
                  ln_g_ref, ln_b_ref,
                  w3_ref, b3_ref, w4_ref, b4_ref,
                  out_ref):
    Bt, S, F = x_ref.shape
    E = EMB_DIM
    A = mask_ref.shape[1]          # real action count (e.g. 5)
    A_pad = out_ref.shape[1]       # lane-dense padded action width (128)

    # x arrives in native f32; cast to bf16 only where it feeds the MXU.
    x = x_ref[...].astype(MXU_DTYPE).reshape(Bt * S, F)

    # BaseNet.expand: Linear(F, 4E) -> ReLU -> Linear(4E, E); bf16 operands, f32 accum.
    h = jnp.dot(x, w1_ref[...], preferred_element_type=jnp.float32) + b1_ref[...]
    h = jnp.maximum(h, 0.0)
    h = jnp.dot(h.astype(MXU_DTYPE), w2_ref[...],
                preferred_element_type=jnp.float32) + b2_ref[...]
    h = h.reshape(Bt, S, E) + pos_ref[...]                  # + positional encoding
    hf = h.reshape(Bt * S, E)                               # (Bt*S, E) f32

    # Packed q|k|v projection: one (Bt*S, E) x (E, 3E) matmul.
    qkv = jnp.dot(hf.astype(MXU_DTYPE), wqkv_ref[...],
                  preferred_element_type=jnp.float32) + bqkv_ref[...]
    qkv = qkv.reshape(Bt, S, 3 * E).astype(MXU_DTYPE)       # single cast for all heads

    # 4-head self-attention, batched over the whole tile with 3-D einsums.
    scale = 1.0 / math.sqrt(HEAD_DIM)
    heads = []
    for hd in range(NUM_HEADS):
        lo = hd * HEAD_DIM
        qh = qkv[:, :, lo:lo + HEAD_DIM]
        kh = qkv[:, :, E + lo:E + lo + HEAD_DIM]
        vh = qkv[:, :, 2 * E + lo:2 * E + lo + HEAD_DIM]
        s = jnp.einsum('bqd,bkd->bqk', qh, kh,
                       preferred_element_type=jnp.float32) * scale   # (Bt, S, S) f32
        s = s - jnp.max(s, axis=-1, keepdims=True)
        p = jnp.exp(s)
        p = p * pl.reciprocal(jnp.sum(p, axis=-1, keepdims=True), approx=True)
        heads.append(jnp.einsum('bqk,bkd->bqd', p.astype(MXU_DTYPE), vh,
                                preferred_element_type=jnp.float32))
    att = jnp.concatenate(heads, axis=-1).reshape(Bt * S, E)          # (Bt*S, E) f32
    att = jnp.dot(att.astype(MXU_DTYPE), wo_ref[...],
                  preferred_element_type=jnp.float32) + bo_ref[...]

    # Residual + LayerNorm over the embedding dim (f32).
    r = hf + att
    mu = jnp.mean(r, axis=-1, keepdims=True)
    var = jnp.mean(jnp.square(r - mu), axis=-1, keepdims=True)
    r = (r - mu) * jax.lax.rsqrt(var + 1e-5) * ln_g_ref[...] + ln_b_ref[...]

    # max over sequence -> ReLU -> Linear(E, 256) -> ReLU -> Linear(256, A_pad).
    m = jnp.max(r.reshape(Bt, S, E), axis=1)                          # (Bt, E)
    m = jnp.maximum(m, 0.0)
    z = jnp.dot(m.astype(MXU_DTYPE), w3_ref[...],
                preferred_element_type=jnp.float32) + b3_ref[...]
    z = jnp.maximum(z, 0.0)
    logits = jnp.dot(z.astype(MXU_DTYPE), w4_ref[...],
                     preferred_element_type=jnp.float32) + b4_ref[...]  # (Bt, A_pad)

    # Action mask + LogSoftmax.  Only the real (Bt, A) mask comes from HBM; the padded
    # action lanes are masked with an in-kernel ones block (all f32 arithmetic so the
    # -1e8 sentinel and 0/1 values stay exact).
    mask = mask_ref[...]                                               # (Bt, A) f32
    if A_pad > A:
        mask = jnp.concatenate(
            [mask, jnp.ones((Bt, A_pad - A), jnp.float32)], axis=1)    # (Bt, A_pad)
    logits = logits * (1.0 - mask) + mask * (-1.0e8)
    lmax = jnp.max(logits, axis=-1, keepdims=True)
    sh = logits - lmax
    lse = jnp.log(jnp.sum(jnp.exp(sh), axis=-1, keepdims=True))
    out_ref[...] = sh - lse


def _round_up(v, m):
    return ((v + m - 1) // m) * m


def _full_spec(shape):
    zeros = (0,) * len(shape)
    return pl.BlockSpec(shape, lambda b: zeros)


def prepare_params(params, a_pad):
    """Pack q|k|v, pad the final layer to a_pad lanes, cast weight matrices to bf16."""
    (w1, b1, w2, b2, pos, wq, bq, wk, bk, wv, bv, wo, bo,
     ln_g, ln_b, w3, b3, w4, b4) = params
    wqkv = jnp.concatenate([wq, wk, wv], axis=1)
    bqkv = jnp.concatenate([bq, bk, bv], axis=1)
    w4p = jnp.pad(w4, ((0, 0), (0, a_pad - w4.shape[1])))
    b4p = jnp.pad(b4, ((0, 0), (0, a_pad - b4.shape[1])))
    c = lambda w: w.astype(MXU_DTYPE)
    return [c(w1), b1, c(w2), b2, pos[None],
            c(wqkv), bqkv, c(wo), bo,
            ln_g, ln_b, c(w3), b3, c(w4p), b4p]


def policy_net_forward(x, mask, params, *, block_b=512):
    B, S, F = x.shape
    A = mask.shape[1]
    A_pad = _round_up(A, 128)                  # lane-dense logits / output slab

    # Batch tile: multiple of 8 sublanes, at most block_b, and small enough that the
    # grid has >= 2 steps whenever B > 8 so both v7x TensorCores get work.
    Bt = min(_round_up(block_b, 8), max(8, _round_up(pl.cdiv(B, 2), 8)))
    B_pad = pl.cdiv(B, Bt) * Bt

    x_p = x.astype(jnp.float32)
    mask_p = mask.astype(jnp.float32)
    if B_pad != B:                             # skip the pad pass in the common case
        x_p = jnp.pad(x_p, ((0, B_pad - B), (0, 0), (0, 0)))
        mask_p = jnp.pad(mask_p, ((0, B_pad - B), (0, 0)), constant_values=1.0)

    kparams = prepare_params(params, A_pad)

    in_specs = [
        pl.BlockSpec((Bt, S, F), lambda b: (b, 0, 0)),   # x tile (f32; cast in kernel)
        pl.BlockSpec((Bt, A), lambda b: (b, 0)),         # real (unpadded) action mask
    ] + [_full_spec(p.shape) for p in kparams]           # weights: constant index maps

    out = pl.pallas_call(
        policy_kernel,
        out_shape=jax.ShapeDtypeStruct((B_pad, A_pad), jnp.float32),
        grid_spec=pltpu.PrefetchScalarGridSpec(
            num_scalar_prefetch=0,
            grid=(B_pad // Bt,),
            in_specs=in_specs,
            out_specs=pl.BlockSpec((Bt, A_pad), lambda b: (b, 0)),
        ),
        compiler_params=pltpu.CompilerParams(
            dimension_semantics=("parallel",),
            vmem_limit_bytes=32 * 1024 * 1024,
        ),
    )(x_p, mask_p, *kparams)
    return out[:B, :A]


# ----------------------------- parameters / reference -----------------------------

def xavier_uniform(key, fan_in, fan_out):
    limit = math.sqrt(6.0 / (fan_in + fan_out))
    return jax.random.uniform(key, (fan_in, fan_out), jnp.float32, -limit, limit)


def sinusoidal_pos_encoding(S, E):
    position = jnp.arange(S, dtype=jnp.float32)[:, None]
    div = jnp.exp(jnp.arange(0, E, 2, dtype=jnp.float32) * (-math.log(10000.0) / E))
    pe = jnp.zeros((S, E), jnp.float32)
    pe = pe.at[:, 0::2].set(jnp.sin(position * div))
    pe = pe.at[:, 1::2].set(jnp.cos(position * div))
    return pe


def make_params(key, F, S, A):
    E = EMB_DIM
    ks = jax.random.split(key, 8)
    w1 = xavier_uniform(ks[0], F, 4 * E); b1 = jnp.zeros((1, 4 * E), jnp.float32)
    w2 = xavier_uniform(ks[1], 4 * E, E); b2 = jnp.zeros((1, E), jnp.float32)
    pos = sinusoidal_pos_encoding(S, E)
    wq = xavier_uniform(ks[2], E, E); bq = jnp.zeros((1, E), jnp.float32)
    wk = xavier_uniform(ks[3], E, E); bk = jnp.zeros((1, E), jnp.float32)
    wv = xavier_uniform(ks[4], E, E); bv = jnp.zeros((1, E), jnp.float32)
    wo = xavier_uniform(ks[5], E, E); bo = jnp.zeros((1, E), jnp.float32)
    ln_g = jnp.ones((1, E), jnp.float32); ln_b = jnp.zeros((1, E), jnp.float32)
    w3 = xavier_uniform(ks[6], E, HIDDEN); b3 = jnp.zeros((1, HIDDEN), jnp.float32)
    w4 = xavier_uniform(ks[7], HIDDEN, A); b4 = jnp.zeros((1, A), jnp.float32)
    return [w1, b1, w2, b2, pos, wq, bq, wk, bk, wv, bv, wo, bo,
            ln_g, ln_b, w3, b3, w4, b4]


def reference_forward(x, mask, params):
    """Pure-JAX reference mirroring the kernel's numerics contract
    (bf16 MXU operands, f32 accumulation, f32 element-wise math)."""
    (w1, b1, w2, b2, pos, wq, bq, wk, bk, wv, bv, wo, bo,
     ln_g, ln_b, w3, b3, w4, b4) = params
    B, S, F = x.shape
    c = lambda a: a.astype(MXU_DTYPE)
    mm = lambda a, b: jnp.dot(c(a), c(b), preferred_element_type=jnp.float32)

    xf = x.reshape(B * S, F)
    h = jnp.maximum(mm(xf, w1) + b1, 0.0)
    h = mm(h, w2) + b2
    h = h.reshape(B, S, -1) + pos
    hf = h.reshape(B * S, -1)
    q = (mm(hf, wq) + bq).reshape(B, S, -1)
    k = (mm(hf, wk) + bk).reshape(B, S, -1)
    v = (mm(hf, wv) + bv).reshape(B, S, -1)
    scale = 1.0 / math.sqrt(HEAD_DIM)
    heads = []
    for hd in range(NUM_HEADS):
        sl = slice(hd * HEAD_DIM, (hd + 1) * HEAD_DIM)
        s = jnp.einsum('bqd,bkd->bqk', c(q[..., sl]), c(k[..., sl]),
                       preferred_element_type=jnp.float32) * scale
        p = jax.nn.softmax(s, axis=-1)
        heads.append(jnp.einsum('bqk,bkd->bqd', c(p), c(v[..., sl]),
                                preferred_element_type=jnp.float32))
    att = jnp.concatenate(heads, -1).reshape(B * S, -1)
    att = mm(att, wo) + bo
    r = hf + att
    mu = r.mean(-1, keepdims=True)
    var = ((r - mu) ** 2).mean(-1, keepdims=True)
    r = (r - mu) * jax.lax.rsqrt(var + 1e-5) * ln_g + ln_b
    m = jnp.maximum(jnp.max(r.reshape(B, S, -1), axis=1), 0.0)
    z = jnp.maximum(mm(m, w3) + b3, 0.0)
    logits = mm(z, w4) + b4
    logits = logits * (1.0 - mask) + mask * (-1.0e8)
    return jax.nn.log_softmax(logits, axis=-1)


if __name__ == "__main__":
    key = jax.random.PRNGKey(0)
    # batch, seq tokens, token features, action count (small toy sizes).
    B, S, F, A = 10, 8, 16, 5
    kx, km, kp = jax.random.split(key, 3)

    x = jax.random.normal(kx, (B, S, F), jnp.float32)
    mask = (jax.random.uniform(km, (B, A)) < 0.3).astype(jnp.float32)
    mask = mask.at[:, 0].set(0.0)     # keep at least one valid action per row

    params = make_params(kp, F, S, A)

    # With B=10 the adaptive tile logic caps Bt at 8 -> batch padded to 16, grid=(2,):
    # exercises batch tiling, batch padding, and >= 2 parallel grid steps (megacore).
    out = policy_net_forward(x, mask, params)
    out = jax.block_until_ready(out)

    ref = reference_forward(x, mask, params)
    assert out.shape == (B, A)
    assert bool(jnp.isfinite(out).all())
    # 3e-3 tolerance: bf16 MXU operands + approximate EUP reciprocal in the attention
    # softmax (reference uses exact division).
    assert jnp.allclose(out, ref, rtol=3e-3, atol=3e-3), (out, ref)

    print("KERNEL_OK")
</pallas_src>

<mosaic_0001>
module attributes {stable_mosaic.version = 11 : i64} {
  func.func @policy_kernel(%arg0: i32, %arg1: memref<8x8x16xf32, #tpu.memory_space<vmem>>, %arg2: memref<8x5xf32, #tpu.memory_space<vmem>>, %arg3: memref<16x128xbf16, #tpu.memory_space<vmem>>, %arg4: memref<1x128xf32, #tpu.memory_space<vmem>>, %arg5: memref<128x32xbf16, #tpu.memory_space<vmem>>, %arg6: memref<1x32xf32, #tpu.memory_space<vmem>>, %arg7: memref<1x8x32xf32, #tpu.memory_space<vmem>>, %arg8: memref<32x96xbf16, #tpu.memory_space<vmem>>, %arg9: memref<1x96xf32, #tpu.memory_space<vmem>>, %arg10: memref<32x32xbf16, #tpu.memory_space<vmem>>, %arg11: memref<1x32xf32, #tpu.memory_space<vmem>>, %arg12: memref<1x32xf32, #tpu.memory_space<vmem>>, %arg13: memref<1x32xf32, #tpu.memory_space<vmem>>, %arg14: memref<32x256xbf16, #tpu.memory_space<vmem>>, %arg15: memref<1x256xf32, #tpu.memory_space<vmem>>, %arg16: memref<256x128xbf16, #tpu.memory_space<vmem>>, %arg17: memref<1x128xf32, #tpu.memory_space<vmem>>, %arg18: memref<8x128xf32, #tpu.memory_space<vmem>>) attributes {dimension_semantics = [#tpu.dimension_semantics<parallel>], iteration_bounds = array<i64: 2>, scalar_prefetch = 0 : i64, scratch_operands = 0 : i64, tpu.core_type = #tpu.core_type<tc>, window_params = [{transform_indices = @transform_0, window_bounds = array<i64: 8, 8, 16>}, {transform_indices = @transform_1, window_bounds = array<i64: 8, 5>}, {pipeline_mode = #tpu.pipeline_mode<synchronous>, transform_indices = @transform_2, window_bounds = array<i64: 16, 128>}, {pipeline_mode = #tpu.pipeline_mode<synchronous>, transform_indices = @transform_3, window_bounds = array<i64: 1, 128>}, {pipeline_mode = #tpu.pipeline_mode<synchronous>, transform_indices = @transform_4, window_bounds = array<i64: 128, 32>}, {pipeline_mode = #tpu.pipeline_mode<synchronous>, transform_indices = @transform_5, window_bounds = array<i64: 1, 32>}, {pipeline_mode = #tpu.pipeline_mode<synchronous>, transform_indices = @transform_6, window_bounds = array<i64: 1, 8, 32>}, {pipeline_mode = #tpu.pipeline_mode<synchronous>, transform_indices = @transform_7, window_bounds = array<i64: 32, 96>}, {pipeline_mode = #tpu.pipeline_mode<synchronous>, transform_indices = @transform_8, window_bounds = array<i64: 1, 96>}, {pipeline_mode = #tpu.pipeline_mode<synchronous>, transform_indices = @transform_9, window_bounds = array<i64: 32, 32>}, {pipeline_mode = #tpu.pipeline_mode<synchronous>, transform_indices = @transform_10, window_bounds = array<i64: 1, 32>}, {pipeline_mode = #tpu.pipeline_mode<synchronous>, transform_indices = @transform_11, window_bounds = array<i64: 1, 32>}, {pipeline_mode = #tpu.pipeline_mode<synchronous>, transform_indices = @transform_12, window_bounds = array<i64: 1, 32>}, {pipeline_mode = #tpu.pipeline_mode<synchronous>, transform_indices = @transform_13, window_bounds = array<i64: 32, 256>}, {pipeline_mode = #tpu.pipeline_mode<synchronous>, transform_indices = @transform_14, window_bounds = array<i64: 1, 256>}, {pipeline_mode = #tpu.pipeline_mode<synchronous>, transform_indices = @transform_15, window_bounds = array<i64: 256, 128>}, {pipeline_mode = #tpu.pipeline_mode<synchronous>, transform_indices = @transform_16, window_bounds = array<i64: 1, 128>}, {transform_indices = @transform_17, window_bounds = array<i64: 8, 128>}]} {
    %c0 = arith.constant 0 : index
    %c0_0 = arith.constant 0 : index
    %c0_1 = arith.constant 0 : index
    %0 = vector.load %arg1[%c0, %c0_0, %c0_1] : memref<8x8x16xf32, #tpu.memory_space<vmem>>, vector<8x8x16xf32>
    %1 = arith.truncf %0 : vector<8x8x16xf32> to vector<8x8x16xbf16>
    %2 = vector.shape_cast %1 : vector<8x8x16xbf16> to vector<64x16xbf16>
    %c0_2 = arith.constant 0 : index
    %c0_3 = arith.constant 0 : index
    %3 = vector.load %arg3[%c0_2, %c0_3] : memref<16x128xbf16, #tpu.memory_space<vmem>>, vector<16x128xbf16>
    %cst = arith.constant dense<0.000000e+00> : vector<64x128xf32>
    %4 = tpu.matmul %2, %3, %cst {dimension_numbers = #tpu.dot_dimension_numbers<[1], [0], [0], [1], [0, 0, 1, 1], [], []>} : vector<64x16xbf16>, vector<16x128xbf16>, vector<64x128xf32> -> vector<64x128xf32>
    %c0_4 = arith.constant 0 : index
    %c0_5 = arith.constant 0 : index
    %5 = vector.load %arg4[%c0_4, %c0_5] : memref<1x128xf32, #tpu.memory_space<vmem>>, vector<1x128xf32>
    %6 = vector.broadcast %5 : vector<1x128xf32> to vector<64x128xf32>
    %7 = arith.addf %4, %6 : vector<64x128xf32>
    %cst_6 = arith.constant 0.000000e+00 : f32
    %8 = vector.broadcast %cst_6 : f32 to vector<64x128xf32>
    %9 = arith.maximumf %7, %8 : vector<64x128xf32>
    %10 = arith.truncf %9 : vector<64x128xf32> to vector<64x128xbf16>
    %c0_7 = arith.constant 0 : index
    %c0_8 = arith.constant 0 : index
    %11 = vector.load %arg5[%c0_7, %c0_8] : memref<128x32xbf16, #tpu.memory_space<vmem>>, vector<128x32xbf16>
    %cst_9 = arith.constant dense<0.000000e+00> : vector<64x32xf32>
    %12 = tpu.matmul %10, %11, %cst_9 {dimension_numbers = #tpu.dot_dimension_numbers<[1], [0], [0], [1], [0, 0, 1, 1], [], []>} : vector<64x128xbf16>, vector<128x32xbf16>, vector<64x32xf32> -> vector<64x32xf32>
    %c0_10 = arith.constant 0 : index
    %c0_11 = arith.constant 0 : index
    %13 = vector.load %arg6[%c0_10, %c0_11] : memref<1x32xf32, #tpu.memory_space<vmem>>, vector<1x32xf32>
    %14 = vector.broadcast %13 : vector<1x32xf32> to vector<64x32xf32>
    %15 = arith.addf %12, %14 : vector<64x32xf32>
    %16 = vector.shape_cast %15 : vector<64x32xf32> to vector<8x8x32xf32>
    %c0_12 = arith.constant 0 : index
    %c0_13 = arith.constant 0 : index
    %c0_14 = arith.constant 0 : index
    %17 = vector.load %arg7[%c0_12, %c0_13, %c0_14] : memref<1x8x32xf32, #tpu.memory_space<vmem>>, vector<1x8x32xf32>
    %18 = vector.broadcast %17 : vector<1x8x32xf32> to vector<8x8x32xf32>
    %19 = arith.addf %16, %18 : vector<8x8x32xf32>
    %20 = vector.shape_cast %19 : vector<8x8x32xf32> to vector<64x32xf32>
    %21 = arith.truncf %20 : vector<64x32xf32> to vector<64x32xbf16>
    %c0_15 = arith.constant 0 : index
    %c0_16 = arith.constant 0 : index
    %22 = vector.load %arg8[%c0_15, %c0_16] : memref<32x96xbf16, #tpu.memory_space<vmem>>, vector<32x96xbf16>
    %cst_17 = arith.constant dense<0.000000e+00> : vector<64x96xf32>
    %23 = tpu.matmul %21, %22, %cst_17 {dimension_numbers = #tpu.dot_dimension_numbers<[1], [0], [0], [1], [0, 0, 1, 1], [], []>} : vector<64x32xbf16>, vector<32x96xbf16>, vector<64x96xf32> -> vector<64x96xf32>
    %c0_18 = arith.constant 0 : index
    %c0_19 = arith.constant 0 : index
    %24 = vector.load %arg9[%c0_18, %c0_19] : memref<1x96xf32, #tpu.memory_space<vmem>>, vector<1x96xf32>
    %25 = vector.broadcast %24 : vector<1x96xf32> to vector<64x96xf32>
    %26 = arith.addf %23, %25 : vector<64x96xf32>
    %27 = vector.shape_cast %26 : vector<64x96xf32> to vector<8x8x96xf32>
    %28 = arith.truncf %27 : vector<8x8x96xf32> to vector<8x8x96xbf16>
    %29 = vector.extract_strided_slice %28 {offsets = [0, 0, 0], sizes = [8, 8, 8], strides = [1, 1, 1]} : vector<8x8x96xbf16> to vector<8x8x8xbf16>
    %30 = vector.extract_strided_slice %28 {offsets = [0, 0, 32], sizes = [8, 8, 8], strides = [1, 1, 1]} : vector<8x8x96xbf16> to vector<8x8x8xbf16>
    %31 = vector.extract_strided_slice %28 {offsets = [0, 0, 64], sizes = [8, 8, 8], strides = [1, 1, 1]} : vector<8x8x96xbf16> to vector<8x8x8xbf16>
    "tpu.trace_start"() <{level = 10 : i32, message = "bqd,bkd->bqk"}> : () -> ()
    %cst_20 = arith.constant dense<0.000000e+00> : vector<8x8x8xf32>
    %32 = tpu.matmul %29, %30, %cst_20 {dimension_numbers = #tpu.dot_dimension_numbers<[2], [2], [1], [1], [0, 0, 0, 1, 1, 1], [0], [0]>} : vector<8x8x8xbf16>, vector<8x8x8xbf16>, vector<8x8x8xf32> -> vector<8x8x8xf32>
    "tpu.trace_stop"() : () -> ()
    %cst_21 = arith.constant 0.353553385 : f32
    %33 = vector.broadcast %cst_21 : f32 to vector<8x8x8xf32>
    %34 = arith.mulf %32, %33 : vector<8x8x8xf32>
    %cst_22 = arith.constant dense<0xFF800000> : vector<8x8xf32>
    %35 = vector.multi_reduction <maximumf>, %34, %cst_22 [2] : vector<8x8x8xf32> to vector<8x8xf32>
    %36 = vector.shape_cast %35 : vector<8x8xf32> to vector<8x8x1xf32>
    %37 = vector.broadcast %36 : vector<8x8x1xf32> to vector<8x8x8xf32>
    %38 = arith.subf %34, %37 : vector<8x8x8xf32>
    %39 = math.exp %38 : vector<8x8x8xf32>
    %cst_23 = arith.constant dense<0.000000e+00> : vector<8x8xf32>
    %40 = vector.multi_reduction <add>, %39, %cst_23 [2] : vector<8x8x8xf32> to vector<8x8xf32>
    %41 = vector.shape_cast %40 : vector<8x8xf32> to vector<8x8x1xf32>
    %42 = tpu.reciprocal %41 {approx = true} : vector<8x8x1xf32> -> vector<8x8x1xf32>
    %43 = vector.broadcast %42 : vector<8x8x1xf32> to vector<8x8x8xf32>
    %44 = arith.mulf %39, %43 : vector<8x8x8xf32>
    %45 = arith.truncf %44 : vector<8x8x8xf32> to vector<8x8x8xbf16>
    "tpu.trace_start"() <{level = 10 : i32, message = "bqk,bkd->bqd"}> : () -> ()
    %cst_24 = arith.constant dense<0.000000e+00> : vector<8x8x8xf32>
    %46 = tpu.matmul %45, %31, %cst_24 {dimension_numbers = #tpu.dot_dimension_numbers<[2], [1], [1], [2], [0, 0, 0, 1, 1, 2], [0], [0]>} : vector<8x8x8xbf16>, vector<8x8x8xbf16>, vector<8x8x8xf32> -> vector<8x8x8xf32>
    "tpu.trace_stop"() : () -> ()
    %47 = vector.extract_strided_slice %28 {offsets = [0, 0, 8], sizes = [8, 8, 8], strides = [1, 1, 1]} : vector<8x8x96xbf16> to vector<8x8x8xbf16>
    %48 = vector.extract_strided_slice %28 {offsets = [0, 0, 40], sizes = [8, 8, 8], strides = [1, 1, 1]} : vector<8x8x96xbf16> to vector<8x8x8xbf16>
    %49 = vector.extract_strided_slice %28 {offsets = [0, 0, 72], sizes = [8, 8, 8], strides = [1, 1, 1]} : vector<8x8x96xbf16> to vector<8x8x8xbf16>
    "tpu.trace_start"() <{level = 10 : i32, message = "bqd,bkd->bqk"}> : () -> ()
    %cst_25 = arith.constant dense<0.000000e+00> : vector<8x8x8xf32>
    %50 = tpu.matmul %47, %48, %cst_25 {dimension_numbers = #tpu.dot_dimension_numbers<[2], [2], [1], [1], [0, 0, 0, 1, 1, 1], [0], [0]>} : vector<8x8x8xbf16>, vector<8x8x8xbf16>, vector<8x8x8xf32> -> vector<8x8x8xf32>
    "tpu.trace_stop"() : () -> ()
    %cst_26 = arith.constant 0.353553385 : f32
    %51 = vector.broadcast %cst_26 : f32 to vector<8x8x8xf32>
    %52 = arith.mulf %50, %51 : vector<8x8x8xf32>
    %cst_27 = arith.constant dense<0xFF800000> : vector<8x8xf32>
    %53 = vector.multi_reduction <maximumf>, %52, %cst_27 [2] : vector<8x8x8xf32> to vector<8x8xf32>
    %54 = vector.shape_cast %53 : vector<8x8xf32> to vector<8x8x1xf32>
    %55 = vector.broadcast %54 : vector<8x8x1xf32> to vector<8x8x8xf32>
    %56 = arith.subf %52, %55 : vector<8x8x8xf32>
    %57 = math.exp %56 : vector<8x8x8xf32>
    %cst_28 = arith.constant dense<0.000000e+00> : vector<8x8xf32>
    %58 = vector.multi_reduction <add>, %57, %cst_28 [2] : vector<8x8x8xf32> to vector<8x8xf32>
    %59 = vector.shape_cast %58 : vector<8x8xf32> to vector<8x8x1xf32>
    %60 = tpu.reciprocal %59 {approx = true} : vector<8x8x1xf32> -> vector<8x8x1xf32>
    %61 = vector.broadcast %60 : vector<8x8x1xf32> to vector<8x8x8xf32>
    %62 = arith.mulf %57, %61 : vector<8x8x8xf32>
    %63 = arith.truncf %62 : vector<8x8x8xf32> to vector<8x8x8xbf16>
    "tpu.trace_start"() <{level = 10 : i32, message = "bqk,bkd->bqd"}> : () -> ()
    %cst_29 = arith.constant dense<0.000000e+00> : vector<8x8x8xf32>
    %64 = tpu.matmul %63, %49, %cst_29 {dimension_numbers = #tpu.dot_dimension_numbers<[2], [1], [1], [2], [0, 0, 0, 1, 1, 2], [0], [0]>} : vector<8x8x8xbf16>, vector<8x8x8xbf16>, vector<8x8x8xf32> -> vector<8x8x8xf32>
    "tpu.trace_stop"() : () -> ()
    %65 = vector.extract_strided_slice %28 {offsets = [0, 0, 16], sizes = [8, 8, 8], strides = [1, 1, 1]} : vector<8x8x96xbf16> to vector<8x8x8xbf16>
    %66 = vector.extract_strided_slice %28 {offsets = [0, 0, 48], sizes = [8, 8, 8], strides = [1, 1, 1]} : vector<8x8x96xbf16> to vector<8x8x8xbf16>
    %67 = vector.extract_strided_slice %28 {offsets = [0, 0, 80], sizes = [8, 8, 8], strides = [1, 1, 1]} : vector<8x8x96xbf16> to vector<8x8x8xbf16>
    "tpu.trace_start"() <{level = 10 : i32, message = "bqd,bkd->bqk"}> : () -> ()
    %cst_30 = arith.constant dense<0.000000e+00> : vector<8x8x8xf32>
    %68 = tpu.matmul %65, %66, %cst_30 {dimension_numbers = #tpu.dot_dimension_numbers<[2], [2], [1], [1], [0, 0, 0, 1, 1, 1], [0], [0]>} : vector<8x8x8xbf16>, vector<8x8x8xbf16>, vector<8x8x8xf32> -> vector<8x8x8xf32>
    "tpu.trace_stop"() : () -> ()
    %cst_31 = arith.constant 0.353553385 : f32
    %69 = vector.broadcast %cst_31 : f32 to vector<8x8x8xf32>
    %70 = arith.mulf %68, %69 : vector<8x8x8xf32>
    %cst_32 = arith.constant dense<0xFF800000> : vector<8x8xf32>
    %71 = vector.multi_reduction <maximumf>, %70, %cst_32 [2] : vector<8x8x8xf32> to vector<8x8xf32>
    %72 = vector.shape_cast %71 : vector<8x8xf32> to vector<8x8x1xf32>
    %73 = vector.broadcast %72 : vector<8x8x1xf32> to vector<8x8x8xf32>
    %74 = arith.subf %70, %73 : vector<8x8x8xf32>
    %75 = math.exp %74 : vector<8x8x8xf32>
    %cst_33 = arith.constant dense<0.000000e+00> : vector<8x8xf32>
    %76 = vector.multi_reduction <add>, %75, %cst_33 [2] : vector<8x8x8xf32> to vector<8x8xf32>
    %77 = vector.shape_cast %76 : vector<8x8xf32> to vector<8x8x1xf32>
    %78 = tpu.reciprocal %77 {approx = true} : vector<8x8x1xf32> -> vector<8x8x1xf32>
    %79 = vector.broadcast %78 : vector<8x8x1xf32> to vector<8x8x8xf32>
    %80 = arith.mulf %75, %79 : vector<8x8x8xf32>
    %81 = arith.truncf %80 : vector<8x8x8xf32> to vector<8x8x8xbf16>
    "tpu.trace_start"() <{level = 10 : i32, message = "bqk,bkd->bqd"}> : () -> ()
    %cst_34 = arith.constant dense<0.000000e+00> : vector<8x8x8xf32>
    %82 = tpu.matmul %81, %67, %cst_34 {dimension_numbers = #tpu.dot_dimension_numbers<[2], [1], [1], [2], [0, 0, 0, 1, 1, 2], [0], [0]>} : vector<8x8x8xbf16>, vector<8x8x8xbf16>, vector<8x8x8xf32> -> vector<8x8x8xf32>
    "tpu.trace_stop"() : () -> ()
    %83 = vector.extract_strided_slice %28 {offsets = [0, 0, 24], sizes = [8, 8, 8], strides = [1, 1, 1]} : vector<8x8x96xbf16> to vector<8x8x8xbf16>
    %84 = vector.extract_strided_slice %28 {offsets = [0, 0, 56], sizes = [8, 8, 8], strides = [1, 1, 1]} : vector<8x8x96xbf16> to vector<8x8x8xbf16>
    %85 = vector.extract_strided_slice %28 {offsets = [0, 0, 88], sizes = [8, 8, 8], strides = [1, 1, 1]} : vector<8x8x96xbf16> to vector<8x8x8xbf16>
    "tpu.trace_start"() <{level = 10 : i32, message = "bqd,bkd->bqk"}> : () -> ()
    %cst_35 = arith.constant dense<0.000000e+00> : vector<8x8x8xf32>
    %86 = tpu.matmul %83, %84, %cst_35 {dimension_numbers = #tpu.dot_dimension_numbers<[2], [2], [1], [1], [0, 0, 0, 1, 1, 1], [0], [0]>} : vector<8x8x8xbf16>, vector<8x8x8xbf16>, vector<8x8x8xf32> -> vector<8x8x8xf32>
    "tpu.trace_stop"() : () -> ()
    %cst_36 = arith.constant 0.353553385 : f32
    %87 = vector.broadcast %cst_36 : f32 to vector<8x8x8xf32>
    %88 = arith.mulf %86, %87 : vector<8x8x8xf32>
    %cst_37 = arith.constant dense<0xFF800000> : vector<8x8xf32>
    %89 = vector.multi_reduction <maximumf>, %88, %cst_37 [2] : vector<8x8x8xf32> to vector<8x8xf32>
    %90 = vector.shape_cast %89 : vector<8x8xf32> to vector<8x8x1xf32>
    %91 = vector.broadcast %90 : vector<8x8x1xf32> to vector<8x8x8xf32>
    %92 = arith.subf %88, %91 : vector<8x8x8xf32>
    %93 = math.exp %92 : vector<8x8x8xf32>
    %cst_38 = arith.constant dense<0.000000e+00> : vector<8x8xf32>
    %94 = vector.multi_reduction <add>, %93, %cst_38 [2] : vector<8x8x8xf32> to vector<8x8xf32>
    %95 = vector.shape_cast %94 : vector<8x8xf32> to vector<8x8x1xf32>
    %96 = tpu.reciprocal %95 {approx = true} : vector<8x8x1xf32> -> vector<8x8x1xf32>
    %97 = vector.broadcast %96 : vector<8x8x1xf32> to vector<8x8x8xf32>
    %98 = arith.mulf %93, %97 : vector<8x8x8xf32>
    %99 = arith.truncf %98 : vector<8x8x8xf32> to vector<8x8x8xbf16>
    "tpu.trace_start"() <{level = 10 : i32, message = "bqk,bkd->bqd"}> : () -> ()
    %cst_39 = arith.constant dense<0.000000e+00> : vector<8x8x8xf32>
    %100 = tpu.matmul %99, %85, %cst_39 {dimension_numbers = #tpu.dot_dimension_numbers<[2], [1], [1], [2], [0, 0, 0, 1, 1, 2], [0], [0]>} : vector<8x8x8xbf16>, vector<8x8x8xbf16>, vector<8x8x8xf32> -> vector<8x8x8xf32>
    "tpu.trace_stop"() : () -> ()
    %101 = tpu.concatenate %46, %64, %82, %100 in 2 : vector<8x8x8xf32>, vector<8x8x8xf32>, vector<8x8x8xf32>, vector<8x8x8xf32> -> vector<8x8x32xf32>
    %102 = vector.shape_cast %101 : vector<8x8x32xf32> to vector<64x32xf32>
    %103 = arith.truncf %102 : vector<64x32xf32> to vector<64x32xbf16>
    %c0_40 = arith.constant 0 : index
    %c0_41 = arith.constant 0 : index
    %104 = vector.load %arg10[%c0_40, %c0_41] : memref<32x32xbf16, #tpu.memory_space<vmem>>, vector<32x32xbf16>
    %cst_42 = arith.constant dense<0.000000e+00> : vector<64x32xf32>
    %105 = tpu.matmul %103, %104, %cst_42 {dimension_numbers = #tpu.dot_dimension_numbers<[1], [0], [0], [1], [0, 0, 1, 1], [], []>} : vector<64x32xbf16>, vector<32x32xbf16>, vector<64x32xf32> -> vector<64x32xf32>
    %c0_43 = arith.constant 0 : index
    %c0_44 = arith.constant 0 : index
    %106 = vector.load %arg11[%c0_43, %c0_44] : memref<1x32xf32, #tpu.memory_space<vmem>>, vector<1x32xf32>
    %107 = vector.broadcast %106 : vector<1x32xf32> to vector<64x32xf32>
    %108 = arith.addf %105, %107 : vector<64x32xf32>
    %109 = arith.addf %20, %108 : vector<64x32xf32>
    %cst_45 = arith.constant dense<0.000000e+00> : vector<64xf32>
    %110 = vector.multi_reduction <add>, %109, %cst_45 [1] : vector<64x32xf32> to vector<64xf32>
    %111 = vector.shape_cast %110 : vector<64xf32> to vector<64x1xf32>
    %cst_46 = arith.constant 3.200000e+01 : f32
    %112 = vector.broadcast %cst_46 : f32 to vector<64x1xf32>
    %113 = arith.divf %111, %112 : vector<64x1xf32>
    %114 = vector.broadcast %113 : vector<64x1xf32> to vector<64x32xf32>
    %115 = arith.subf %109, %114 : vector<64x32xf32>
    %116 = arith.mulf %115, %115 : vector<64x32xf32>
    %cst_47 = arith.constant dense<0.000000e+00> : vector<64xf32>
    %117 = vector.multi_reduction <add>, %116, %cst_47 [1] : vector<64x32xf32> to vector<64xf32>
    %118 = vector.shape_cast %117 : vector<64xf32> to vector<64x1xf32>
    %cst_48 = arith.constant 3.200000e+01 : f32
    %119 = vector.broadcast %cst_48 : f32 to vector<64x1xf32>
    %120 = arith.divf %118, %119 : vector<64x1xf32>
    %121 = vector.broadcast %113 : vector<64x1xf32> to vector<64x32xf32>
    %122 = arith.subf %109, %121 : vector<64x32xf32>
    %cst_49 = arith.constant 9.99999974E-6 : f32
    %123 = vector.broadcast %cst_49 : f32 to vector<64x1xf32>
    %124 = arith.addf %120, %123 : vector<64x1xf32>
    %125 = math.rsqrt %124 : vector<64x1xf32>
    %126 = vector.broadcast %125 : vector<64x1xf32> to vector<64x32xf32>
    %127 = arith.mulf %122, %126 : vector<64x32xf32>
    %c0_50 = arith.constant 0 : index
    %c0_51 = arith.constant 0 : index
    %128 = vector.load %arg12[%c0_50, %c0_51] : memref<1x32xf32, #tpu.memory_space<vmem>>, vector<1x32xf32>
    %129 = vector.broadcast %128 : vector<1x32xf32> to vector<64x32xf32>
    %130 = arith.mulf %127, %129 : vector<64x32xf32>
    %c0_52 = arith.constant 0 : index
    %c0_53 = arith.constant 0 : index
    %131 = vector.load %arg13[%c0_52, %c0_53] : memref<1x32xf32, #tpu.memory_space<vmem>>, vector<1x32xf32>
    %132 = vector.broadcast %131 : vector<1x32xf32> to vector<64x32xf32>
    %133 = arith.addf %130, %132 : vector<64x32xf32>
    %134 = vector.shape_cast %133 : vector<64x32xf32> to vector<8x8x32xf32>
    %cst_54 = arith.constant dense<0xFF800000> : vector<8x32xf32>
    %135 = vector.multi_reduction <maximumf>, %134, %cst_54 [1] : vector<8x8x32xf32> to vector<8x32xf32>
    %cst_55 = arith.constant 0.000000e+00 : f32
    %136 = vector.broadcast %cst_55 : f32 to vector<8x32xf32>
    %137 = arith.maximumf %135, %136 : vector<8x32xf32>
    %138 = arith.truncf %137 : vector<8x32xf32> to vector<8x32xbf16>
    %c0_56 = arith.constant 0 : index
    %c0_57 = arith.constant 0 : index
    %139 = vector.load %arg14[%c0_56, %c0_57] : memref<32x256xbf16, #tpu.memory_space<vmem>>, vector<32x256xbf16>
    %cst_58 = arith.constant dense<0.000000e+00> : vector<8x256xf32>
    %140 = tpu.matmul %138, %139, %cst_58 {dimension_numbers = #tpu.dot_dimension_numbers<[1], [0], [0], [1], [0, 0, 1, 1], [], []>} : vector<8x32xbf16>, vector<32x256xbf16>, vector<8x256xf32> -> vector<8x256xf32>
    %c0_59 = arith.constant 0 : index
    %c0_60 = arith.constant 0 : index
    %141 = vector.load %arg15[%c0_59, %c0_60] : memref<1x256xf32, #tpu.memory_space<vmem>>, vector<1x256xf32>
    %142 = vector.broadcast %141 : vector<1x256xf32> to vector<8x256xf32>
    %143 = arith.addf %140, %142 : vector<8x256xf32>
    %cst_61 = arith.constant 0.000000e+00 : f32
    %144 = vector.broadcast %cst_61 : f32 to vector<8x256xf32>
    %145 = arith.maximumf %143, %144 : vector<8x256xf32>
    %146 = arith.truncf %145 : vector<8x256xf32> to vector<8x256xbf16>
    %c0_62 = arith.constant 0 : index
    %c0_63 = arith.constant 0 : index
    %147 = vector.load %arg16[%c0_62, %c0_63] : memref<256x128xbf16, #tpu.memory_space<vmem>>, vector<256x128xbf16>
    %cst_64 = arith.constant dense<0.000000e+00> : vector<8x128xf32>
    %148 = tpu.matmul %146, %147, %cst_64 {dimension_numbers = #tpu.dot_dimension_numbers<[1], [0], [0], [1], [0, 0, 1, 1], [], []>} : vector<8x256xbf16>, vector<256x128xbf16>, vector<8x128xf32> -> vector<8x128xf32>
    %c0_65 = arith.constant 0 : index
    %c0_66 = arith.constant 0 : index
    %149 = vector.load %arg17[%c0_65, %c0_66] : memref<1x128xf32, #tpu.memory_space<vmem>>, vector<1x128xf32>
    %150 = vector.broadcast %149 : vector<1x128xf32> to vector<8x128xf32>
    %151 = arith.addf %148, %150 : vector<8x128xf32>
    %c0_67 = arith.constant 0 : index
    %c0_68 = arith.constant 0 : index
    %152 = vector.load %arg2[%c0_67, %c0_68] : memref<8x5xf32, #tpu.memory_space<vmem>>, vector<8x5xf32>
    %cst_69 = arith.constant 1.000000e+00 : f32
    %153 = vector.broadcast %cst_69 : f32 to vector<8x123xf32>
    %154 = tpu.concatenate %152, %153 in 1 : vector<8x5xf32>, vector<8x123xf32> -> vector<8x128xf32>
    %cst_70 = arith.constant 1.000000e+00 : f32
    %155 = vector.broadcast %cst_70 : f32 to vector<8x128xf32>
    %156 = arith.subf %155, %154 : vector<8x128xf32>
    %157 = arith.mulf %151, %156 : vector<8x128xf32>
    %cst_71 = arith.constant -1.000000e+08 : f32
    %158 = vector.broadcast %cst_71 : f32 to vector<8x128xf32>
    %159 = arith.mulf %154, %158 : vector<8x128xf32>
    %160 = arith.addf %157, %159 : vector<8x128xf32>
    %cst_72 = arith.constant dense<0xFF800000> : vector<8xf32>
    %161 = vector.multi_reduction <maximumf>, %160, %cst_72 [1] : vector<8x128xf32> to vector<8xf32>
    %162 = vector.shape_cast %161 : vector<8xf32> to vector<8x1xf32>
    %163 = vector.broadcast %162 : vector<8x1xf32> to vector<8x128xf32>
    %164 = arith.subf %160, %163 : vector<8x128xf32>
    %165 = math.exp %164 : vector<8x128xf32>
    %cst_73 = arith.constant dense<0.000000e+00> : vector<8xf32>
    %166 = vector.multi_reduction <add>, %165, %cst_73 [1] : vector<8x128xf32> to vector<8xf32>
    %167 = vector.shape_cast %166 : vector<8xf32> to vector<8x1xf32>
    %168 = math.log %167 : vector<8x1xf32>
    %169 = vector.broadcast %168 : vector<8x1xf32> to vector<8x128xf32>
    %170 = arith.subf %164, %169 : vector<8x128xf32>
    %c0_74 = arith.constant 0 : index
    %c0_75 = arith.constant 0 : index
    %171 = vector.load %arg18[%c0_74, %c0_75] : memref<8x128xf32, #tpu.memory_space<vmem>>, vector<8x128xf32>
    tpu.vector_store %arg18[%c0_74, %c0_75], %170 {strides = array<i32>} : memref<8x128xf32, #tpu.memory_space<vmem>>, vector<8x128xf32>,
    return
  }
  func.func @transform_0(%arg0: i32) -> (i32, i32, i32) {
    %c0_i32 = arith.constant 0 : i32
    %c0_i32_0 = arith.constant 0 : i32
    %c0_i32_1 = arith.constant 0 : i32
    return %arg0, %c0_i32, %c0_i32_0 : i32, i32, i32
  }
  func.func @transform_1(%arg0: i32) -> (i32, i32) {
    %c0_i32 = arith.constant 0 : i32
    %c0_i32_0 = arith.constant 0 : i32
    return %arg0, %c0_i32 : i32, i32
  }
  func.func @transform_2(%arg0: i32) -> (i32, i32) {
    %c0_i32 = arith.constant 0 : i32
    %c0_i32_0 = arith.constant 0 : i32
    %c0_i32_1 = arith.constant 0 : i32
    return %c0_i32, %c0_i32_0 : i32, i32
  }
  func.func @transform_3(%arg0: i32) -> (i32, i32) {
    %c0_i32 = arith.constant 0 : i32
    %c0_i32_0 = arith.constant 0 : i32
    %c0_i32_1 = arith.constant 0 : i32
    return %c0_i32, %c0_i32_0 : i32, i32
  }
  func.func @transform_4(%arg0: i32) -> (i32, i32) {
    %c0_i32 = arith.constant 0 : i32
    %c0_i32_0 = arith.constant 0 : i32
    %c0_i32_1 = arith.constant 0 : i32
    return %c0_i32, %c0_i32_0 : i32, i32
  }
  func.func @transform_5(%arg0: i32) -> (i32, i32) {
    %c0_i32 = arith.constant 0 : i32
    %c0_i32_0 = arith.constant 0 : i32
    %c0_i32_1 = arith.constant 0 : i32
    return %c0_i32, %c0_i32_0 : i32, i32
  }
  func.func @transform_6(%arg0: i32) -> (i32, i32, i32) {
    %c0_i32 = arith.constant 0 : i32
    %c0_i32_0 = arith.constant 0 : i32
    %c0_i32_1 = arith.constant 0 : i32
    %c0_i32_2 = arith.constant 0 : i32
    return %c0_i32, %c0_i32_0, %c0_i32_1 : i32, i32, i32
  }
  func.func @transform_7(%arg0: i32) -> (i32, i32) {
    %c0_i32 = arith.constant 0 : i32
    %c0_i32_0 = arith.constant 0 : i32
    %c0_i32_1 = arith.constant 0 : i32
    return %c0_i32, %c0_i32_0 : i32, i32
  }
  func.func @transform_8(%arg0: i32) -> (i32, i32) {
    %c0_i32 = arith.constant 0 : i32
    %c0_i32_0 = arith.constant 0 : i32
    %c0_i32_1 = arith.constant 0 : i32
    return %c0_i32, %c0_i32_0 : i32, i32
  }
  func.func @transform_9(%arg0: i32) -> (i32, i32) {
    %c0_i32 = arith.constant 0 : i32
    %c0_i32_0 = arith.constant 0 : i32
    %c0_i32_1 = arith.constant 0 : i32
    return %c0_i32, %c0_i32_0 : i32, i32
  }
  func.func @transform_10(%arg0: i32) -> (i32, i32) {
    %c0_i32 = arith.constant 0 : i32
    %c0_i32_0 = arith.constant 0 : i32
    %c0_i32_1 = arith.constant 0 : i32
    return %c0_i32, %c0_i32_0 : i32, i32
  }
  func.func @transform_11(%arg0: i32) -> (i32, i32) {
    %c0_i32 = arith.constant 0 : i32
    %c0_i32_0 = arith.constant 0 : i32
    %c0_i32_1 = arith.constant 0 : i32
    return %c0_i32, %c0_i32_0 : i32, i32
  }
  func.func @transform_12(%arg0: i32) -> (i32, i32) {
    %c0_i32 = arith.constant 0 : i32
    %c0_i32_0 = arith.constant 0 : i32
    %c0_i32_1 = arith.constant 0 : i32
    return %c0_i32, %c0_i32_0 : i32, i32
  }
  func.func @transform_13(%arg0: i32) -> (i32, i32) {
    %c0_i32 = arith.constant 0 : i32
    %c0_i32_0 = arith.constant 0 : i32
    %c0_i32_1 = arith.constant 0 : i32
    return %c0_i32, %c0_i32_0 : i32, i32
  }
  func.func @transform_14(%arg0: i32) -> (i32, i32) {
    %c0_i32 = arith.constant 0 : i32
    %c0_i32_0 = arith.constant 0 : i32
    %c0_i32_1 = arith.constant 0 : i32
    return %c0_i32, %c0_i32_0 : i32, i32
  }
  func.func @transform_15(%arg0: i32) -> (i32, i32) {
    %c0_i32 = arith.constant 0 : i32
    %c0_i32_0 = arith.constant 0 : i32
    %c0_i32_1 = arith.constant 0 : i32
    return %c0_i32, %c0_i32_0 : i32, i32
  }
  func.func @transform_16(%arg0: i32) -> (i32, i32) {
    %c0_i32 = arith.constant 0 : i32
    %c0_i32_0 = arith.constant 0 : i32
    %c0_i32_1 = arith.constant 0 : i32
    return %c0_i32, %c0_i32_0 : i32, i32
  }
  func.func @transform_17(%arg0: i32) -> (i32, i32) {
    %c0_i32 = arith.constant 0 : i32
    %c0_i32_0 = arith.constant 0 : i32
    return %arg0, %c0_i32 : i32, i32
  }
}

</mosaic_0001>

<bundles_post_ra>
// kernel: tpu_custom_call.1
= control target key start
LH: loop header
LB: loop body
LE: loop exit
PB: predicated region body
PF: predicated region fallthrough
CT: control target
= control target key end

     0   :  { %s8895_s0 = inlined_call_operand.hbm [shape: f32[16,8,16], index: 0, kind: input, shape index: {}]   ;;  %s8896_s1 = inlined_call_operand.vmem [shape: f32[16,5], index: 1, kind: input, shape index: {}]   ;;  %s8897_s2 = inlined_call_operand.hbm [shape: bf16[16,128], index: 2, kind: input, shape index: {}]   ;;  %s8898_s3 = inlined_call_operand.hbm [shape: f32[1,128], index: 3, kind: input, shape index: {}]   ;;  %s8899_s4 = inlined_call_operand.vmem [shape: bf16[128,32], index: 4, kind: input, shape index: {}]   ;;  %s8900_s5 = inlined_call_operand.hbm [shape: f32[1,32], index: 5, kind: input, shape index: {}]   ;;  %s8901_s6 = inlined_call_operand.hbm [shape: f32[1,8,32], index: 6, kind: input, shape index: {}]   ;;  %s8902_s7 = inlined_call_operand.hbm [shape: bf16[32,96], index: 7, kind: input, shape index: {}]   ;;  %s8903_s8 = inlined_call_operand.hbm [shape: f32[1,96], index: 8, kind: input, shape index: {}]   ;;  %s8904_s9 = inlined_call_operand.hbm [shape: bf16[32,32], index: 9, kind: input, shape index: {}]   ;;  %s8905_s10 = inlined_call_operand.hbm [shape: f32[1,32], index: 10, kind: input, shape index: {}]   ;;  %s8906_s11 = inlined_call_operand.hbm [shape: f32[1,32], index: 11, kind: input, shape index: {}]   ;;  %s8907_s12 = inlined_call_operand.hbm [shape: f32[1,32], index: 12, kind: input, shape index: {}]   ;;  %s8908_s13 = inlined_call_operand.vmem [shape: bf16[32,256], index: 13, kind: input, shape index: {}]   ;;  %s8909_s14 = inlined_call_operand.hbm [shape: f32[1,256], index: 14, kind: input, shape index: {}]   ;;  %s8910_s15 = inlined_call_operand.vmem [shape: bf16[256,128], index: 15, kind: input, shape index: {}]   ;;  %s8911_s16 = inlined_call_operand.vmem [shape: f32[1,128], index: 16, kind: input, shape index: {}]   ;;  %s8912_s17 = inlined_call_operand.hbm [shape: f32[16,128], index: 17, kind: output, shape index: {}]  }
   0x1   :  { %8926 = sst [smem:[#allocation33_spill]] %s8895_s0 }
   0x2   :  { %8927 = sst [smem:[#allocation34_spill]] %s8896_s1 }
   0x3   :  { %8928 = sst [smem:[#allocation35_spill]] %s8897_s2 }
   0x4   :  { %8929 = sst [smem:[#allocation36_spill]] %s8898_s3 }
   0x5   :  { %8930 = sst [smem:[#allocation37_spill]] %s8899_s4 }
   0x6   :  { %8931 = sst [smem:[#allocation38_spill]] %s8900_s5 }
   0x7   :  { %8932 = sst [smem:[#allocation39_spill]] %s8901_s6 }
   0x8   :  { %8933 = sst [smem:[#allocation40_spill]] %s8908_s13 }
   0x9   :  { %8934 = sst [smem:[#allocation41_spill]] %s8910_s15 }
   0xa   :  { %8935 = sst [smem:[#allocation42_spill]] %s8911_s16 }
   0xb   :  { %8936 = sst [smem:[#allocation43_spill]] %s8912_s17 }
   0xc   :  { %22 = vsyncpa [#allocation3], 0 }
   0xd   :  { %24 = vsyncpa [#allocation3 + $0x1], 0 }
   0xe   :  { %25 = vsyncpa [#allocation6], 0 }
   0xf   :  { %26 = vsyncpa [#allocation9], 0 }
  0x10   :  { %27 = vsyncpa [#allocation12], 0 }
  0x11   :  { %28 = vsyncpa [#allocation15], 0 }
  0x12   :  { %29 = vsyncpa [#allocation18], 0 }
  0x13   :  { %30 = vsyncpa [#allocation21], 0 }
  0x14   :  { %31 = vsyncpa [#allocation4], 0 }
  0x15   :  { %33 = vsyncpa [#allocation4 + $0x1], 0  ;;  %s7382_s24 = smov 0   ;;  %s7384_s25 = smov 0  }
  0x16   :  { %s7386_s26 = smov 0   ;;  %s7388_s27 = smov 0  }
  0x17 LB: > { %s7258_s28 = smov [#allocation5]   ;;  %s7403_s0 = sadd.s32 4294967295, %s7256_s27   ;;  %s7256_s27 = sphi %s7388_s27, %s8985_s27   ;;  %s7252_s26 = sphi %s7386_s26, %s8984_s26   ;;  %s7248_s25 = sphi %s7384_s25, %s8983_s25   ;;  %s7244_s24 = sphi %s7382_s24, %s8982_s24  }
  0x18   : > { %s449_s29 = sshll.u32 %s7258_s28, 4  ;;  %8937 = sst [smem:[#allocation31_spill]] %s7403_s0  ;;  %s7408_s29 = int_to_ptr.vmem [resolvable:$true] %s449_s29 }
  0x19   : > { %p5625_p0 = scmp.ge.s32.totalorder %s7256_s27, 1  ;;  %p8922_p1 = scmp.eq.s32.totalorder %s7403_s0, 0 }
  0x1a   : > { %p437_p2 = scmp.lt.s32.totalorder %s7256_s27, 3  ;;  %s7259_s18 = smov [#allocation8]  }
  0x1b   : > { %s477_s19 = sshll.u32 %s7259_s18, 4  ;;  %s7260_s20 = smov [#allocation11]   ;;  %s7423_s19 = int_to_ptr.vmem [resolvable:$true] %s477_s19 }
  0x1c   : > { %p7410_p3 = pnand %p5625_p0, %p437_p2  ;;  %s498_s21 = sshll.u32 %s7260_s20, 4  ;;  %s7425_s21 = int_to_ptr.vmem [resolvable:$true] %s498_s21 }
  0x1d   : > { %s8941_s2 = sld [smem:[#allocation35_spill]] }
  0x1e   : > { %s8938_s30 = scalar_select %p7410_p3, 1, 0 }
  0x1f   : > { %p6455_p5 = pneg %p7410_p3 }
  0x20   : > { %8939 = sst [smem:[#allocation32_spill]] %s8938_s30 }
  0x21   : > { %p7419_p6 = pnand %p6455_p5, %p8922_p1 }
  0x23   : > { %s6828_s28 = scalar_lea.hbm %s8941_s2, 128  ;;  %p7435_p8 = pneg %p7419_p6 }
  0x24   : > { %p6829_p7 = scmp.ne.s32.totalorder %s8941_s2, %s6828_s28  ;;  %p6835_p11 = scmp.lt.u32.totalorder %s6828_s28, %s8941_s2 }
  0x26   : > { %p6831_p9 = pnand %p7435_p8, %p6829_p7 }
  0x28   : > { %p6832_p10 = pneg %p6831_p9 }
  0x2a   : > { %p6837_p12 = pnand %p6835_p11, %p6832_p10 }
  0x2c   : > { %6840 = shalt.err (!%p6837_p12)
}
  0x2d   : > { %s6841_s16 = scalar_lea.vmem %s7408_s29, 128  ;;  %p6849_p5 = scmp.lt.s32.totalorder %s7408_s29, %s7408_s29 }
  0x2e   : > { %p6842_p13 = scmp.ne.s32.totalorder %s7408_s29, %s6841_s16  ;;  %p6850_p4 = scmp.lt.s32.totalorder %s6841_s16, %s6841_s16 }
  0x30   : > { %p6844_p0 = pnand %p6842_p13, %p7435_p8  ;;  %p6851_p7 = por %p6850_p4, %p6849_p5 }
  0x32   : > { %p6845_p2 = pneg %p6844_p0 }
  0x34   : > { %p6852_p9 = pnand %p6851_p7, %p6845_p2 }
  0x36   : > { %6855 = shalt.err (!%p6852_p9)
}
  0x37   : > { %s7261_s17 = smov 64   ;;  %s7262_s15 = smov 4  }
  0x38   : > { %6458 = dma.hbm_to_vmem [thread:$0]  (!%p7419_p6), %s8941_s2, 128, %s7408_s29, [#allocation6], %s7261_s17, %s7261_s17, %s7262_s15  }
  0x39   : > { %s8943_s5 = sld [smem:[#allocation38_spill]] }
  0x3f   : > { %s6856_s16 = scalar_lea.hbm %s8943_s5, 16 }
  0x40   : > { %p6857_p4 = scmp.ne.s32.totalorder %s8943_s5, %s6856_s16  ;;  %p6863_p12 = scmp.lt.u32.totalorder %s6856_s16, %s8943_s5 }
  0x42   : > { %p6859_p10 = pnand %p6857_p4, %p7435_p8 }
  0x44   : > { %p6860_p11 = pneg %p6859_p10 }
  0x46   : > { %p6865_p13 = pnand %p6863_p12, %p6860_p11 }
  0x48   : > { %6868 = shalt.err (!%p6865_p13)
}
  0x49   : > { %s6869_s29 = scalar_lea.vmem %s7423_s19, 16  ;;  %s6876_s4 = scalar_lea.vmem %s7423_s19, 32 }
  0x4a   : > { %p6870_p0 = scmp.ne.s32.totalorder %s7423_s19, %s6869_s29  ;;  %p6877_p7 = scmp.lt.s32.totalorder %s7423_s19, %s7423_s19 }
  0x4b   : > { %p6878_p9 = scmp.lt.s32.totalorder %s6876_s4, %s6869_s29 }
  0x4c   : > { %p6872_p2 = pnand %p6870_p0, %p7435_p8 }
  0x4d   : > { %p6879_p4 = por %p6878_p9, %p6877_p7 }
  0x4e   : > { %p6873_p5 = pneg %p6872_p2 }
  0x50   : > { %p6880_p10 = pnand %p6879_p4, %p6873_p5 }
  0x52   : > { %6883 = shalt.err (!%p6880_p10)
}
  0x53   : > { %6464 = dma.hbm_to_vmem [thread:$0]  (!%p7419_p6), %s8943_s5, 16, %s7423_s19, [#allocation9]  }
  0x54   : > { %s6884_s23 = scalar_lea.hbm %s8902_s7, 256 }
  0x55   : > { %p6885_p11 = scmp.ne.s32.totalorder %s8902_s7, %s6884_s23  ;;  %p6891_p0 = scmp.lt.u32.totalorder %s6884_s23, %s8902_s7 }
  0x57   : > { %p6887_p12 = pnand %p6885_p11, %p7435_p8 }
  0x59   : > { %p6888_p13 = pneg %p6887_p12 }
  0x5b   : > { %p6893_p2 = pnand %p6891_p0, %p6888_p13 }
  0x5d   : > { %6896 = shalt.err (!%p6893_p2)
}
  0x5e   : > { %s6897_s19 = scalar_lea.vmem %s7425_s21, 256  ;;  %p6905_p4 = scmp.lt.s32.totalorder %s7425_s21, %s7425_s21 }
  0x5f   : > { %p6898_p5 = scmp.ne.s32.totalorder %s7425_s21, %s6897_s19  ;;  %p6906_p10 = scmp.lt.s32.totalorder %s6897_s19, %s6897_s19 }
  0x61   : > { %p6900_p7 = pnand %p6898_p5, %p7435_p8  ;;  %p6907_p11 = por %p6906_p10, %p6905_p4 }
  0x63   : > { %p6901_p9 = pneg %p6900_p7 }
  0x65   : > { %p6908_p12 = pnand %p6907_p11, %p6901_p9 }
  0x67   : > { %6911 = shalt.err (!%p6908_p12)
}
  0x68   : > { %6470 = dma.hbm_to_vmem [thread:$0]  (!%p7419_p6), %s8902_s7, 256, %s7425_s21, [#allocation12], %s7261_s17, %s7261_s17, %s7262_s15  }
  0x69   : > { %s7263_s0 = smov [#allocation14]   ;;  %s7264_s22 = smov [#allocation17]  }
  0x6a   : > { %s522_s30 = sshll.u32 %s7263_s0, 4  ;;  %s547_s23 = sshll.u32 %s7264_s22, 4  ;;  %s523_s30 = int_to_ptr.vmem [resolvable:$true] %s522_s30  ;;  %s548_s23 = int_to_ptr.vmem [resolvable:$true] %s547_s23 }
  0x6b   : > { %s6912_s16 = scalar_lea.hbm %s8904_s9, 256 }
  0x6c   : > { %p6913_p13 = scmp.ne.s32.totalorder %s8904_s9, %s6912_s16  ;;  %p6919_p5 = scmp.lt.u32.totalorder %s6912_s16, %s8904_s9 }
  0x6e   : > { %p6915_p0 = pnand %p6913_p13, %p7435_p8 }
  0x70   : > { %p6916_p2 = pneg %p6915_p0 }
  0x72   : > { %p6921_p7 = pnand %p6919_p5, %p6916_p2 }
  0x74   : > { %6924 = shalt.err (!%p6921_p7)
}
  0x75   : > { %s6925_s21 = scalar_lea.vmem %s523_s30, 256  ;;  %p6933_p11 = scmp.lt.s32.totalorder %s523_s30, %s523_s30 }
  0x76   : > { %p6926_p9 = scmp.ne.s32.totalorder %s523_s30, %s6925_s21  ;;  %p6934_p12 = scmp.lt.s32.totalorder %s6925_s21, %s6925_s21 }
  0x78   : > { %p6928_p4 = pnand %p6926_p9, %p7435_p8  ;;  %p6935_p1 = por %p6934_p12, %p6933_p11 }
  0x7a   : > { %p6929_p10 = pneg %p6928_p4 }
  0x7c   : > { %p6936_p3 = pnand %p6935_p1, %p6929_p10 }
  0x7e   : > { %6939 = shalt.err (!%p6936_p3)
}
  0x7f   : > { %6476 = dma.hbm_to_vmem [thread:$0]  (!%p7419_p6), %s8904_s9, 256, %s523_s30, [#allocation15], %s7261_s17, %s7261_s17, %s7262_s15  }
  0x80   : > { %s6940_s28 = scalar_lea.hbm %s8906_s11, 16 }
  0x81   : > { %p6941_p1 = scmp.ne.s32.totalorder %s8906_s11, %s6940_s28  ;;  %p6947_p0 = scmp.lt.u32.totalorder %s6940_s28, %s8906_s11 }
  0x83   : > { %p6943_p3 = pnand %p6941_p1, %p7435_p8 }
  0x85   : > { %p6944_p13 = pneg %p6943_p3 }
  0x87   : > { %p6949_p2 = pnand %p6947_p0, %p6944_p13 }
  0x89   : > { %6952 = shalt.err (!%p6949_p2)
}
  0x8a   : > { %s6953_s4 = scalar_lea.vmem %s548_s23, 16  ;;  %s6960_s17 = scalar_lea.vmem %s548_s23, 32 }
  0x8b   : > { %p6954_p5 = scmp.ne.s32.totalorder %s548_s23, %s6953_s4  ;;  %p6961_p4 = scmp.lt.s32.totalorder %s548_s23, %s548_s23 }
  0x8c   : > { %p6962_p10 = scmp.lt.s32.totalorder %s6960_s17, %s6953_s4 }
  0x8d   : > { %p6956_p7 = pnand %p6954_p5, %p7435_p8 }
  0x8e   : > { %p6963_p11 = por %p6962_p10, %p6961_p4 }
  0x8f   : > { %p6957_p9 = pneg %p6956_p7 }
  0x91   : > { %p6964_p12 = pnand %p6963_p11, %p6957_p9 }
  0x93   : > { %6967 = shalt.err (!%p6964_p12)
}
  0x94   : > { %6482 = dma.hbm_to_vmem [thread:$0]  (!%p7419_p6), %s8906_s11, 16, %s548_s23, [#allocation18]  }
  0x95   : > { %s7265_s21 = smov [#allocation7]   ;;  %s7266_s13 = smov [#allocation10]  }
  0x96   : > { %s463_s2 = sshll.u32 %s7265_s21, 4  ;;  %s488_s0 = sshll.u32 %s7266_s13, 4  ;;  %s464_s2 = int_to_ptr.vmem [resolvable:$true] %s463_s2  ;;  %s489_s0 = int_to_ptr.vmem [resolvable:$true] %s488_s0 }
  0x97   : > { %s8944_s3 = sld [smem:[#allocation36_spill]] }
  0x9d   : > { %s6968_s20 = scalar_lea.hbm %s8944_s3, 16 }
  0x9e   : > { %p6969_p1 = scmp.ne.s32.totalorder %s8944_s3, %s6968_s20  ;;  %p6975_p0 = scmp.lt.u32.totalorder %s6968_s20, %s8944_s3 }
  0xa0   : > { %p6971_p3 = pnand %p6969_p1, %p7435_p8 }
  0xa2   : > { %p6972_p13 = pneg %p6971_p3 }
  0xa4   : > { %p6977_p2 = pnand %p6975_p0, %p6972_p13 }
  0xa6   : > { %6980 = shalt.err (!%p6977_p2)
}
  0xa7   : > { %s6981_s23 = scalar_lea.vmem %s464_s2, 16  ;;  %s6988_s17 = scalar_lea.vmem %s464_s2, 32 }
  0xa8   : > { %p6982_p5 = scmp.ne.s32.totalorder %s464_s2, %s6981_s23  ;;  %p6989_p4 = scmp.lt.s32.totalorder %s464_s2, %s464_s2 }
  0xa9   : > { %p6990_p10 = scmp.lt.s32.totalorder %s6988_s17, %s6981_s23 }
  0xaa   : > { %p6984_p7 = pnand %p6982_p5, %p7435_p8 }
  0xab   : > { %p6991_p11 = por %p6990_p10, %p6989_p4 }
  0xac   : > { %p6985_p9 = pneg %p6984_p7 }
  0xae   : > { %p6992_p12 = pnand %p6991_p11, %p6985_p9 }
  0xb0   : > { %6995 = shalt.err (!%p6992_p12)
}
  0xb1   : > { %6461 = dma.hbm_to_vmem [thread:$0]  (!%p7419_p6), %s8944_s3, 16, %s464_s2, [#allocation6]  }
  0xb2   : > { %s8945_s6 = sld [smem:[#allocation39_spill]] }
  0xb8   : > { %s6996_s22 = scalar_lea.hbm %s8945_s6, 128 }
  0xb9   : > { %p6997_p1 = scmp.ne.s32.totalorder %s8945_s6, %s6996_s22  ;;  %p7003_p0 = scmp.lt.u32.totalorder %s6996_s22, %s8945_s6 }
  0xbb   : > { %p6999_p3 = pnand %p6997_p1, %p7435_p8 }
  0xbd   : > { %p7000_p13 = pneg %p6999_p3 }
  0xbf   : > { %p7005_p2 = pnand %p7003_p0, %p7000_p13 }
  0xc1   : > { %7008 = shalt.err (!%p7005_p2)
}
  0xc2   : > { %s7009_s19 = scalar_lea.vmem %s489_s0, 128  ;;  %p7017_p4 = scmp.lt.s32.totalorder %s489_s0, %s489_s0 }
  0xc3   : > { %p7010_p5 = scmp.ne.s32.totalorder %s489_s0, %s7009_s19  ;;  %p7018_p10 = scmp.lt.s32.totalorder %s7009_s19, %s7009_s19 }
  0xc5   : > { %p7012_p7 = pnand %p7010_p5, %p7435_p8  ;;  %p7019_p11 = por %p7018_p10, %p7017_p4 }
  0xc7   : > { %p7013_p9 = pneg %p7012_p7 }
  0xc9   : > { %p7020_p12 = pnand %p7019_p11, %p7013_p9 }
  0xcb   : > { %7023 = shalt.err (!%p7020_p12)
}
  0xcc   : > { %6467 = dma.hbm_to_vmem [thread:$0]  (!%p7419_p6), %s8945_s6, 128, %s489_s0, [#allocation9]  }
  0xcd   : > { %s7267_s23 = smov [#allocation13]   ;;  %s7268_s15 = smov [#allocation16]  }
  0xce   : > { %s512_s17 = sshll.u32 %s7267_s23, 4  ;;  %s536_s30 = sshll.u32 %s7268_s15, 4  ;;  %s513_s17 = int_to_ptr.vmem [resolvable:$true] %s512_s17  ;;  %s537_s30 = int_to_ptr.vmem [resolvable:$true] %s536_s30 }
  0xcf   : > { %s7024_s22 = scalar_lea.hbm %s8903_s8, 16 }
  0xd0   : > { %p7025_p1 = scmp.ne.s32.totalorder %s8903_s8, %s7024_s22  ;;  %p7031_p0 = scmp.lt.u32.totalorder %s7024_s22, %s8903_s8 }
  0xd2   : > { %p7027_p3 = pnand %p7025_p1, %p7435_p8 }
  0xd4   : > { %p7028_p13 = pneg %p7027_p3 }
  0xd6   : > { %p7033_p2 = pnand %p7031_p0, %p7028_p13 }
  0xd8   : > { %7036 = shalt.err (!%p7033_p2)
}
  0xd9   : > { %s7037_s0 = scalar_lea.vmem %s513_s17, 16  ;;  %s7044_s19 = scalar_lea.vmem %s513_s17, 32 }
  0xda   : > { %p7038_p5 = scmp.ne.s32.totalorder %s513_s17, %s7037_s0  ;;  %p7045_p4 = scmp.lt.s32.totalorder %s513_s17, %s513_s17 }
  0xdb   : > { %p7046_p10 = scmp.lt.s32.totalorder %s7044_s19, %s7037_s0 }
  0xdc   : > { %p7040_p7 = pnand %p7038_p5, %p7435_p8 }
  0xdd   : > { %p7047_p11 = por %p7046_p10, %p7045_p4 }
  0xde   : > { %p7041_p9 = pneg %p7040_p7 }
  0xe0   : > { %p7048_p12 = pnand %p7047_p11, %p7041_p9 }
  0xe2   : > { %7051 = shalt.err (!%p7048_p12)
}
  0xe3   : > { %6473 = dma.hbm_to_vmem [thread:$0]  (!%p7419_p6), %s8903_s8, 16, %s513_s17, [#allocation12]  }
  0xe4   : > { %s7052_s21 = scalar_lea.hbm %s8905_s10, 16 }
  0xe5   : > { %p7053_p1 = scmp.ne.s32.totalorder %s8905_s10, %s7052_s21  ;;  %p7059_p0 = scmp.lt.u32.totalorder %s7052_s21, %s8905_s10 }
  0xe7   : > { %p7055_p3 = pnand %p7053_p1, %p7435_p8 }
  0xe9   : > { %p7056_p13 = pneg %p7055_p3 }
  0xeb   : > { %p7061_p2 = pnand %p7059_p0, %p7056_p13 }
  0xed   : > { %7064 = shalt.err (!%p7061_p2)
}
  0xee   : > { %s7065_s16 = scalar_lea.vmem %s537_s30, 16  ;;  %s7072_s17 = scalar_lea.vmem %s537_s30, 32 }
  0xef   : > { %p7066_p5 = scmp.ne.s32.totalorder %s537_s30, %s7065_s16  ;;  %p7073_p4 = scmp.lt.s32.totalorder %s537_s30, %s537_s30 }
  0xf0   : > { %p7074_p10 = scmp.lt.s32.totalorder %s7072_s17, %s7065_s16 }
  0xf1   : > { %p7068_p7 = pnand %p7066_p5, %p7435_p8 }
  0xf2   : > { %p7075_p11 = por %p7074_p10, %p7073_p4 }
  0xf3   : > { %p7069_p9 = pneg %p7068_p7 }
  0xf5   : > { %p7076_p12 = pnand %p7075_p11, %p7069_p9 }
  0xf7   : > { %7079 = shalt.err (!%p7076_p12)
}
  0xf8   : > { %6479 = dma.hbm_to_vmem [thread:$0]  (!%p7419_p6), %s8905_s10, 16, %s537_s30, [#allocation15]  }
  0xf9   : > { %s7269_s19 = smov [#allocation19]   ;;  %s7270_s4 = smov [#allocation20]  }
  0xfa   : > { %s558_s2 = sshll.u32 %s7269_s19, 4  ;;  %s572_s23 = sshll.u32 %s7270_s4, 4  ;;  %s559_s2 = int_to_ptr.vmem [resolvable:$true] %s558_s2  ;;  %s573_s23 = int_to_ptr.vmem [resolvable:$true] %s572_s23 }
  0xfb   : > { %s7080_s13 = scalar_lea.hbm %s8907_s12, 16 }
  0xfc   : > { %p7081_p1 = scmp.ne.s32.totalorder %s8907_s12, %s7080_s13  ;;  %p7087_p0 = scmp.lt.u32.totalorder %s7080_s13, %s8907_s12 }
  0xfe   : > { %p7083_p3 = pnand %p7081_p1, %p7435_p8 }
 0x100   : > { %p7084_p13 = pneg %p7083_p3 }
 0x102   : > { %p7089_p2 = pnand %p7087_p0, %p7084_p13 }
 0x104   : > { %7092 = shalt.err (!%p7089_p2)
}
 0x105   : > { %s7093_s30 = scalar_lea.vmem %s559_s2, 16  ;;  %s7100_s17 = scalar_lea.vmem %s559_s2, 32 }
 0x106   : > { %p7094_p5 = scmp.ne.s32.totalorder %s559_s2, %s7093_s30  ;;  %p7101_p4 = scmp.lt.s32.totalorder %s559_s2, %s559_s2 }
 0x107   : > { %p7102_p10 = scmp.lt.s32.totalorder %s7100_s17, %s7093_s30 }
 0x108   : > { %p7096_p7 = pnand %p7094_p5, %p7435_p8 }
 0x109   : > { %p7103_p11 = por %p7102_p10, %p7101_p4 }
 0x10a   : > { %p7097_p9 = pneg %p7096_p7 }
 0x10c   : > { %p7104_p12 = pnand %p7103_p11, %p7097_p9 }
 0x10e   : > { %7107 = shalt.err (!%p7104_p12)
}
 0x10f   : > { %6485 = dma.hbm_to_vmem [thread:$0]  (!%p7419_p6), %s8907_s12, 16, %s559_s2, [#allocation18]  }
 0x110   : > { %s7108_s15 = scalar_lea.hbm %s8909_s14, 32 }
 0x111   : > { %p7109_p1 = scmp.ne.s32.totalorder %s8909_s14, %s7108_s15  ;;  %p7115_p0 = scmp.lt.u32.totalorder %s7108_s15, %s8909_s14 }
 0x113   : > { %p7111_p3 = pnand %p7109_p1, %p7435_p8 }
 0x115   : > { %p7112_p13 = pneg %p7111_p3 }
 0x117   : > { %p7117_p2 = pnand %p7115_p0, %p7112_p13 }
 0x119   : > { %7120 = shalt.err (!%p7117_p2)
}
 0x11a   : > { %s7121_s20 = scalar_lea.vmem %s573_s23, 32  ;;  %p7129_p4 = scmp.lt.s32.totalorder %s573_s23, %s573_s23 }
 0x11b   : > { %p7122_p5 = scmp.ne.s32.totalorder %s573_s23, %s7121_s20  ;;  %p7130_p10 = scmp.lt.s32.totalorder %s7121_s20, %s7121_s20 }
 0x11d   : > { %p7124_p7 = pnand %p7122_p5, %p7435_p8  ;;  %p7131_p11 = por %p7130_p10, %p7129_p4 }
 0x11f   : > { %p7125_p9 = pneg %p7124_p7 }
 0x121   : > { %p7132_p12 = pnand %p7131_p11, %p7125_p9 }
 0x123   : > { %7135 = shalt.err (!%p7132_p12)
}
 0x124   : > { %s8946_s18 = sld [smem:[#allocation31_spill]]  ;;  %s5624_s30 = sadd.s32 4294967294, %s7256_s27  }
 0x125   : > { %6488 = dma.hbm_to_vmem [thread:$0]  (!%p7419_p6), %s8909_s14, 32, %s573_s23, [#allocation21]  }
 0x126   : > { %s7658_s1 = sadd.s32 1, %s7256_s27   ;;  %s46_s17 = sadd.s32 1, %s7252_s26 }
 0x127   : > { %s43_s29 = ssub.s32 %s7256_s27, %s7658_s1  ;;  %p53_p8 = scmp.ne.s32.totalorder %s7252_s26, %s7248_s25 }
 0x128   : > { %p44_p1 = scmp.eq.s32.totalorder %s43_s29, 0  ;;  %p54_p3 = scmp.eq.s32.totalorder %s7256_s27, 0 }
 0x129   : > { %p59_p13 = scmp.ne.s32.totalorder %s7248_s25, %s7244_s24  ;;  %p430_p9 = scmp.eq.s32.totalorder %s5624_s30, 1 }
 0x12a   : > { %p424_p0 = scmp.eq.s32.totalorder %s8946_s18, 1  ;;  %p55_p2 = por %p54_p3, %p53_p8 }
 0x12b   : > { %s7670_s0 = scalar_select %p44_p1, %s7252_s26, %s46_s17  }
 0x12c   : > { %p8947_p5 = scmp.eq.s32.totalorder %s8946_s18, 0  ;;  %p7678_p6 = por %p424_p0, %p53_p8 }
 0x12d   : > { %p6508_p4 = scmp.lt.s32.totalorder %s7256_s27, 2  ;;  %s589_s4 = sand.u32 1, %s7252_s26  }
 0x12e   : > { %p7674_p7 = por %p8947_p5, %p59_p13  ;;  %p7684_p10 = por %p430_p9, %p59_p13 }
 0x12f   : > { %s8949_s23 = scalar_select %p7678_p6, 1, 0 }
 0x130   : > { %s8950_s15 = scalar_select %p7684_p10, 1, 0 }
 0x131   : > { %s5638_s21 = sshll.u32 %s589_s4, 6  ;;  %s5781_s13 = sshll.u32 %s7256_s27, 10 }
 0x132   : > { %s8951_s20 = sld [smem:[#allocation33_spill]]  ;;  %s593_s16 = scalar_lea.vmem [#allocation2], %s5638_s21 }
 0x133   : > { %s600_s18 = sshll.u32 %s593_s16, 4  ;;  %p7694_p11 = pnand %p6508_p4, %p55_p2  ;;  %s7698_s18 = int_to_ptr.vmem [resolvable:$true] %s600_s18 }
 0x134   : > { %s7700_s17 = scalar_lea.sflag [#allocation3], %s589_s4 }
 0x135   : > { %p7138_p8 = pneg %p7694_p11 }
 0x138   : > { %s7692_s2 = scalar_lea.hbm %s8951_s20, %s5781_s13  ;;  %s7141_s22 = scalar_lea.hbm %s8951_s20, 2048 }
 0x139   : > { %s7136_s29 = scalar_lea.hbm %s7692_s2, 1024  ;;  %p7142_p13 = scmp.lt.u32.totalorder %s7692_s2, %s8951_s20 }
 0x13a   : > { %p7137_p12 = scmp.ne.s32.totalorder %s7692_s2, %s7136_s29  ;;  %p7143_p0 = scmp.lt.u32.totalorder %s7141_s22, %s7136_s29 }
 0x13b   : > { %p7145_p5 = scmp.lt.u32.totalorder %s7136_s29, %s7692_s2 }
 0x13c   : > { %p7139_p1 = pnand %p7138_p8, %p7137_p12  ;;  %p7144_p2 = por %p7143_p0, %p7142_p13 }
 0x13e   : > { %p7140_p3 = pneg %p7139_p1  ;;  %p7146_p9 = por %p7145_p5, %p7144_p2 }
 0x140   : > { %p7147_p4 = pnand %p7146_p9, %p7140_p3 }
 0x142   : > { %7150 = shalt.err (!%p7147_p4)
}
 0x143   : > { %s7151_s4 = scalar_lea.vmem %s7698_s18, 1024  ;;  %s7271_s21 = smov [#allocation2]  }
 0x144   : > { %p7152_p12 = scmp.ne.s32.totalorder %s7698_s18, %s7151_s4  ;;  %s7156_s13 = sshll.u32 %s7271_s21, 4  ;;  %s7157_s13 = int_to_ptr.vmem [resolvable:$false] %s7156_s13 }
 0x145   : > { %s7158_s28 = scalar_lea.vmem %s7157_s13, 2048  ;;  %p7159_p6 = scmp.lt.s32.totalorder %s7698_s18, %s7157_s13 }
 0x146   : > { %p7154_p1 = pnand %p7152_p12, %p7138_p8  ;;  %p7160_p13 = scmp.lt.s32.totalorder %s7158_s28, %s7151_s4 }
 0x148   : > { %p7155_p10 = pneg %p7154_p1  ;;  %p7161_p0 = por %p7160_p13, %p7159_p6 }
 0x14a   : > { %p7162_p2 = pnand %p7161_p0, %p7155_p10 }
 0x14c   : > { %7165 = shalt.err (!%p7162_p2)
}
 0x14d   : > { %s7272_s29 = smov 128   ;;  %s7273_s22 = smov 8  }
 0x14e   : > { %6492 = dma.hbm_to_vmem [thread:$0]  (!%p7694_p11), %s7692_s2, 1024, %s7698_s18, %s7700_s17, %s7272_s29, %s7272_s29, %s7273_s22  }
 0x14f   : > { %s8953_s16 = sld [smem:[#allocation32_spill]] }
 0x155   : > { %p8954_p8 = scmp.ne.s32.totalorder %s8953_s16, 0 }
 0x156   : > { %s7731_s21 = sand.u32 (!%p8954_p8), 1, %s7248_s25  }
 0x157   : > { %619 = sbr.rel (%p8954_p8) target bundleno = 5307 (0x14bb), region = 88  ;;  %s5642_s4 = sshll.u32 (!%p8954_p8), %s7731_s21, 6 }
 0x158   : > { %s622_s13 = scalar_lea.sflag (!%p8954_p8), [#allocation3], %s7731_s21  ;;  %s7735_s28 = scalar_lea.vmem (!%p8954_p8), [#allocation2], %s5642_s4 }
 0x15e   : > { %7211 = dma.done.wait (%p7674_p7), %s622_s13, 1024  }
 0x15f   : > { %7213 = vsyncadd (%p7674_p7), %s622_s13, 4294966272  ;;  %s8955_s30 = sld [smem:[#allocation31_spill]] }
 0x165   : > { %p8956_p6 = scmp.eq.s32.totalorder %s8955_s30, 0 }
 0x167   : > { %7215 = dma.done.wait (%p8956_p6), [#allocation6], 144   ;;  %p8957_p10 = pmov %p8956_p6 }
 0x168   : > { %p8958_p11 = pmov %p8956_p6 }
 0x169   : > { %7217 = vsyncadd (%p8957_p10), [#allocation6], 4294967152 }
 0x16a   : > { %7219 = dma.done.wait (%p8958_p11), [#allocation9], 144   ;;  %p8959_p3 = pmov %p8956_p6 }
 0x16c   : > { %7221 = vsyncadd (%p8959_p3), [#allocation9], 4294967152  ;;  %p8960_p5 = pmov %p8959_p3 }
 0x16d   : > { %p8961_p9 = pmov %p8959_p3 }
 0x16e   : > { %7223 = dma.done.wait (%p8960_p5), [#allocation12], 272  }
 0x16f   : > { %7225 = vsyncadd (%p8961_p9), [#allocation12], 4294967024  ;;  %p8962_p7 = pmov %p8959_p3 }
 0x170   : > { %p8963_p4 = pmov %p8959_p3 }
 0x171   : > { %7227 = dma.done.wait (%p8962_p7), [#allocation15], 272  }
 0x172   : > { %7229 = vsyncadd (%p8963_p4), [#allocation15], 4294967024  ;;  %p8964_p12 = pmov %p8959_p3 }
 0x173   : > { %p8965_p1 = pmov %p8959_p3 }
 0x174   : > { %7231 = dma.done.wait (%p8964_p12), [#allocation18], 32  }
 0x175   : > { %7233 = vsyncadd (%p8965_p1), [#allocation18], 4294967264  ;;  %p8966_p13 = pmov %p8965_p1 }
 0x176   : > { %p8967_p0 = pmov %p8965_p1 }
 0x177   : > { %7235 = dma.done.wait (%p8966_p13), [#allocation21], 32  }
 0x178   : > { %7237 = vsyncadd (%p8967_p0), [#allocation21], 4294967264  ;;  %v6645_v0 = vld [vmem:[#allocation5] sm:$0xff]   ;;  %v731_v2 = vld [vmem:[%s7735_s28 + $0x8] sm:$0xff]  ;;  %vm781_vm0 = vcmask 130048   ;;  %s8968_s18 = sld [smem:[#allocation37_spill]] }
 0x179   : > { %v730_v1 = vld [vmem:[%s7735_s28] sm:$0xff]  ;;  %v732_v3 = vld [vmem:[%s7735_s28 + $0x10] sm:$0xff]  ;;  %5965 = vmatprep.subr.bf16.mxu0 %v6645_v0  ;;  %v733_v5 = vld [vmem:[%s7735_s28 + $0x18] sm:$0xff]  ;;  %vm1043_vm1 = vcmask 261120   ;;  %vm7275_vm2 = vmmov 0   ;;  %s7276_s13 = smov 96  }
 0x17a   : > { %v5782_v4 = vpack.c.bf16 %v731_v2, %v730_v1  ;;  %v734_v6 = vld [vmem:[%s7735_s28 + $0x20] sm:$0xff]  ;;  %v735_v7 = vld [vmem:[%s7735_s28 + $0x28] sm:$0xff]  ;;  %5966 = vmatpush3.bf16.msra.mxu0 %v6645_v0  ;;  %v5783_v8 = vpack.c.bf16 %v733_v5, %v732_v3  ;;  %v736_v12 = vld [vmem:[%s7735_s28 + $0x30] sm:$0xff]  ;;  %vm1132_vm3 = vcmask 64512   ;;  %s7277_s19 = smov 64   ;;  %vm1631_vm4 = vcmask 1043456  }
 0x17b   : > { %v5784_v9 = vpack.c.bf16 %v735_v7, %v734_v6  ;;  %v737_v13 = vld [vmem:[%s7735_s28 + $0x38] sm:$0xff]  ;;  %v5656_v21 = vld [vmem:[#allocation7] ss:$0 sm:$0xff]  ;;  %v5666_v52 = vld [vmem:[#allocation8] ss:$0 sm:$0xff]  ;;  %s7278_s2 = smov 88  }
 0x17c   : > { %5967 = vmatprep.mubr.msk.bf16.mxu0 %vm781_vm0, %v5782_v4  ;;  %v5785_v15 = vpack.c.bf16 %v737_v13, %v736_v12  ;;  %v6654_v50 = vld [vmem:[#allocation11] sm:$0xff]   ;;  %v6655_v51 = vld [vmem:[#allocation11 + $0x8] sm:$0xff]   ;;  %v1007_v58 = vld [vmem:[#allocation10] sm:$0xff]  ;;  %s7279_s28 = smov 120   ;;  %s7280_s17 = smov 56   ;;  %vm4787_vm5 = vcmask 195584  }
 0x17d   : > { %5968 = vmatmul.mubr.msk.bf16.vlgmr.msra.gmra.mrb[0].mxu0 %vm781_vm0, %v5783_v8  ;;  %5999 = vmatprep.subr.bf16.mxu0 %v6654_v50  ;;  %s7281_s29 = smov 80   ;;  %s7282_s22 = smov 112   ;;  %vm5147_vm6 = vcmask 1041409   ;;  %vm5149_vm7 = vcmask 1042434   ;;  %vm5151_vm8 = vcmask 1043459   ;;  %vm5153_vm9 = vcmask 1044484  }
 0x17e   : > { %v6646_v10 = vld [vmem:[%s8968_s18] sm:$0xff]   ;;  %v6647_v11 = vld [vmem:[%s8968_s18 + $0x8] sm:$0xff]   ;;  %5971 = vmatprep.mubr.msk.bf16.mxu0 %vm781_vm0, %v5784_v9  ;;  %v6648_v14 = vld [vmem:[%s8968_s18 + $0x10] sm:$0xff]   ;;  %6000 = vmatpush3.bf16.msra.mxu0 %v6654_v50  ;;  %s7283_s16 = smov 48   ;;  %s7284_s4 = smov 72   ;;  %vm5155_vm10 = vcmask 1045509  }
 0x17f   : > { %5975 = vmatprep.subr.bf16.mxu1 %v6646_v10  ;;  %v6649_v16 = vld [vmem:[%s8968_s18 + $0x18] sm:$0xff]   ;;  %v6650_v17 = vld [vmem:[%s8968_s18 + $0x20] sm:$0xff]   ;;  %v6651_v18 = vld [vmem:[%s8968_s18 + $0x28] sm:$0xff]   ;;  %6001 = vmatprep.subr.bf16.mxu0 %v6655_v51  ;;  %s8975_s3 = sld [smem:[#allocation41_spill]]  ;;  %vm5157_vm11 = vcmask 1046534   ;;  %vm5159_vm12 = vcmask 1047559  }
 0x180   : > { %5976 = vmatpush3.bf16.msra.mxu1 %v6646_v10  ;;  %v6652_v19 = vld [vmem:[%s8968_s18 + $0x30] sm:$0xff]   ;;  %v6653_v20 = vld [vmem:[%s8968_s18 + $0x38] sm:$0xff]   ;;  %p725_p2 = scmp.lt.s32.totalorder %s8955_s30, 1  ;;  %s8976_s5 = sld [smem:[#allocation34_spill]]  ;;  %vm5406_vm13 = vcmask 39936  }
 0x181   : > { %5977 = vmatprep.subr.bf16.mxu1 %v6647_v11  ;;  %p8979_p6 = scmp.ne.s32.totalorder %s8949_s23, 0 }
 0x182   : > { %6002 = vmatpush3.bf16.msra.mxu0 %v6655_v51 }
 0x184   : > { %5978 = vmatpush3.bf16.msra.mxu1 %v6647_v11 }
 0x185   : > { %5979 = vmatprep.subr.bf16.mxu1 %v6648_v14  ;;  %5972 = vmatmul.mubr.msk.bf16.gmra.mrb[4].mxu0 %vm781_vm0, %v5785_v15 }
 0x188   : > { %5980 = vmatpush3.bf16.msra.mxu1 %v6648_v14 }
 0x189   : > { %5981 = vmatprep.subr.bf16.mxu1 %v6649_v16 }
 0x18c   : > { %5982 = vmatpush3.bf16.msra.mxu1 %v6649_v16 }
 0x18d   : > { %5983 = vmatprep.subr.bf16.mxu1 %v6650_v17 }
 0x190   : > { %5984 = vmatpush3.bf16.msra.mxu1 %v6650_v17 }
 0x191   : > { %5985 = vmatprep.subr.bf16.mxu1 %v6651_v18 }
 0x194   : > { %5986 = vmatpush3.bf16.msra.mxu1 %v6651_v18  ;;  %v7274_v18 = vmov 0.0  }
 0x195   : > { %5987 = vmatprep.subr.bf16.mxu1 %v6652_v19  ;;  %6011 = vmatprep.subr.bf16.mxu0 %v7274_v18 }
 0x198   : > { %5988 = vmatpush3.bf16.msra.mxu1 %v6652_v19  ;;  %v5675_v19 = vld [vmem:[#allocation13] ss:$0 sm:$0xff] }
 0x199   : > { %5989 = vmatprep.subr.bf16.mxu1 %v6653_v20 }
 0x19c   : > { %5990 = vmatpush3.bf16.msra.mxu1 %v6653_v20 }
 0x19d   : > { %6047 = vmatprep.subr.bf16.mxu1 %v7274_v18 }
 0x250   : > { %v5969_v22 = vpop.f32.mrb[0].mxu0 }
 0x251   : > { %v837_v23 = vadd.f32 %v5969_v22, %v5656_v21  ;;  %v828_v24 = vpop.f32.mrb[1].mxu0 }
 0x252   : > { %v829_v25 = vadd.f32 %v5656_v21, %v828_v24  ;;  %v5970_v26 = vpop.f32.mrb[2].mxu0 }
 0x253   : > { %v840_v27 = vadd.f32 %v5970_v26, %v5656_v21  ;;  %v831_v28 = vpop.f32.mrb[3].mxu0  ;;  %v861_v30 = vmax.f32 %v837_v23, 0.0 }
 0x254   : > { %v832_v29 = vadd.f32 %v5656_v21, %v831_v28  ;;  %v859_v32 = vmax.f32 %v829_v25, 0.0 }
 0x255   : > { %v862_v31 = vmax.f32 %v840_v27, 0.0 }
 0x256   : > { %v860_v33 = vmax.f32 %v832_v29, 0.0 }
 0x257   : > { %v868_v34 = vpack.c.bf16 %v862_v31, %v861_v30 }
 0x258   : > { %v5973_v35 = vpop.f32.mrb[4].mxu0  ;;  %v867_v36 = vpack.c.bf16 %v860_v33, %v859_v32 }
 0x259   : > { %v853_v37 = vadd.f32 %v5973_v35, %v5656_v21  ;;  %v844_v38 = vpop.f32.mrb[5].mxu0 }
 0x25a   : > { %v845_v39 = vadd.f32 %v5656_v21, %v844_v38  ;;  %v5974_v40 = vpop.f32.mrb[6].mxu0  ;;  %5991 = vmatprep.mubr.bf16.mxu1 %v867_v36 }
 0x25b   : > { %v865_v41 = vmax.f32 %v853_v37, 0.0  ;;  %v856_v42 = vadd.f32 %v5974_v40, %v5656_v21  ;;  %v847_v43 = vpop.f32.mrb[7].mxu0  ;;  %5992 = vmatmul.mubr.bf16.vlgmr.msra.gmra.mrb[0].mxu1 %v868_v34 }
 0x25c   : > { %v863_v44 = vmax.f32 %v845_v39, 0.0  ;;  %v848_v45 = vadd.f32 %v5656_v21, %v847_v43 }
 0x25d   : > { %v866_v46 = vmax.f32 %v856_v42, 0.0 }
 0x25e   : > { %v864_v47 = vmax.f32 %v848_v45, 0.0 }
 0x25f   : > { %v870_v48 = vpack.c.bf16 %v866_v46, %v865_v41 }
 0x260   : > { %v869_v49 = vpack.c.bf16 %v864_v47, %v863_v44 }
 0x262   : > { %5995 = vmatprep.mubr.bf16.mxu1 %v869_v49 }
 0x263   : > { %5996 = vmatmul.mubr.bf16.gmra.mrb[4].mxu1 %v870_v48 }
 0x264   : > { %6049 = vmatprep.mubr.msk.bf16.mxu1 %vm7275_vm2, %v7274_v18 }
 0x32e   : > { %v5993_v53 = vpop.f32.mrb[0].mxu1 }
 0x32f   : > { %v976_v54 = vpop.f32.mrb[1].mxu1  ;;  %v985_v57 = vadd.f32 %v5993_v53, %v5666_v52 }
 0x330   : > { %v977_v55 = vadd.f32 %v5666_v52, %v976_v54  ;;  %v5994_v56 = vpop.f32.mrb[2].mxu1 }
 0x331   : > { %v988_v59 = vadd.f32 %v5994_v56, %v5666_v52  ;;  %v979_v60 = vpop.f32.mrb[3].mxu1  ;;  %v7807_v1 = vadd.f32 %v1007_v58, %v985_v57 }
 0x332   : > { %v980_v61 = vadd.f32 %v5666_v52, %v979_v60  ;;  %v7803_v63 = vadd.f32 %v1007_v58, %v977_v55 }
 0x333   : > { %v7801_v62 = vadd.f32 %v1007_v58, %v988_v59 }
 0x334   : > { %v7805_v0 = vadd.f32 %v1007_v58, %v980_v61 }
 0x335   : > { %v1017_v4 = vpack.c.bf16 %v7801_v62, %v7807_v1 }
 0x336   : > { %v1016_v2 = vpack.c.bf16 %v7805_v0, %v7803_v63  ;;  %v5997_v3 = vpop.f32.mrb[4].mxu1 }
 0x337   : > { %v1001_v5 = vadd.f32 %v5997_v3, %v5666_v52  ;;  %v992_v6 = vpop.f32.mrb[5].mxu1 }
 0x338   : > { %v993_v7 = vadd.f32 %v5666_v52, %v992_v6  ;;  %v5998_v8 = vpop.f32.mrb[6].mxu1  ;;  %6003 = vmatprep.mubr.msk.bf16.mxu0 %vm1043_vm1, %v1016_v2 }
 0x339   : > { %v7814_v9 = vadd.f32 %v1007_v58, %v1001_v5  ;;  %v1004_v10 = vadd.f32 %v5998_v8, %v5666_v52  ;;  %v995_v11 = vpop.f32.mrb[7].mxu1  ;;  %6004 = vmatmul.mubr.msk.bf16.vlgmr.msra.gmra.mrb[8].mxu0 %vm1043_vm1, %v1017_v4 }
 0x33a   : > { %v7817_v12 = vadd.f32 %v1007_v58, %v993_v7  ;;  %v996_v13 = vadd.f32 %v5666_v52, %v995_v11 }
 0x33b   : > { %v7819_v14 = vadd.f32 %v1007_v58, %v1004_v10 }
 0x33c   : > { %v7821_v15 = vadd.f32 %v1007_v58, %v996_v13 }
 0x33d   : > { %v1019_v16 = vpack.c.bf16 %v7819_v14, %v7814_v9 }
 0x33e   : > { %v1018_v17 = vpack.c.bf16 %v7821_v15, %v7817_v12 }
 0x340   : > { %6007 = vmatprep.mubr.msk.bf16.mxu0 %vm1043_vm1, %v1018_v17 }
 0x341   : > { %6008 = vmatmul.mubr.msk.bf16.gmra.mrb[12].mxu0 %vm1043_vm1, %v1019_v16 }
 0x342   : > { %6013 = vmatprep.mubr.msk.bf16.mxu0 %vm7275_vm2, %v7274_v18 }
 0x40c   : > { %v6005_v20 = vpop.f32.mrb[8].mxu0 }
 0x40d   : > { %v1099_v21 = vadd.f32 %v6005_v20, %v5675_v19  ;;  %v1090_v22 = vpop.f32.mrb[9].mxu0 }
 0x40e   : > { %v1091_v23 = vadd.f32 %v5675_v19, %v1090_v22  ;;  %v6006_v24 = vpop.f32.mrb[10].mxu0 }
 0x40f   : > { %v7835_v25 = vpack.c.bf16 %v1099_v21, %v1099_v21  ;;  %v1102_v26 = vadd.f32 %v6006_v24, %v5675_v19  ;;  %v1093_v27 = vpop.f32.mrb[11].mxu0 }
 0x410   : > { %v7837_v28 = vpack.c.bf16 %v1091_v23, %v1091_v23  ;;  %v1094_v29 = vadd.f32 %v5675_v19, %v1093_v27 }
 0x411   : > { %1229 = vrot.lane.b32.xlu1 %v7835_v25, %s7276_s13  ;;  %v7841_v30 = vpack.c.bf16 %v1102_v26, %v1102_v26 }
 0x412   : > { %1130 = vrot.lane.b32.xlu0 %v7837_v28, %s7276_s13  ;;  %v7843_v31 = vpack.c.bf16 %v1094_v29, %v1094_v29 }
 0x414   : > { %v6009_v32 = vpop.f32.mrb[12].mxu0 }
 0x415   : > { %1278 = vrot.lane.b32.xlu1 %v7841_v30, %s7276_s13  ;;  %v1106_v33 = vpop.f32.mrb[13].mxu0  ;;  %v1115_v34 = vadd.f32 %v6009_v32, %v5675_v19 }
 0x416   : > { %v1107_v35 = vadd.f32 %v5675_v19, %v1106_v33  ;;  %1180 = vrot.lane.b32.xlu0 %v7843_v31, %s7276_s13  ;;  %v6010_v36 = vpop.f32.mrb[14].mxu0 }
 0x417   : > { %v1109_v37 = vpop.f32.mrb[15].mxu0  ;;  %v1118_v39 = vadd.f32 %v6010_v36, %v5675_v19  ;;  %v7849_v41 = vpack.c.bf16 %v1115_v34, %v1115_v34 }
 0x418   : > { %v7847_v38 = vpack.c.bf16 %v1107_v35, %v1107_v35  ;;  %v1110_v40 = vadd.f32 %v5675_v19, %v1109_v37 }
 0x419   : > { %v7854_v43 = vpack.c.bf16 %v1118_v39, %v1118_v39 }
 0x41a   : > { %1327 = vrot.lane.b32.xlu0 %v7847_v38, %s7276_s13  ;;  %v7852_v42 = vpack.c.bf16 %v1110_v40, %v1110_v40 }
 0x41c   : > { %1376 = vrot.lane.b32.xlu1 %v7852_v42, %s7276_s13 }
 0x41e   : > { %1425 = vrot.lane.b32.xlu0 %v7849_v41, %s7276_s13 }
 0x420   : > { %1474 = vrot.lane.b32.xlu1 %v7854_v43, %s7276_s13  ;;  %s7285_s13 = smov 104  }
 0x483   : > { %v1230_v51 = vpop.permute.xlu1 %1229 }
 0x484   : > { %v1131_v44 = vpop.permute.xlu0 %1130  ;;  %v1235_v52 = vsel %vm1132_vm3, %v1230_v51, 0 }
 0x485   : > { %v1137_v45 = vsel %vm1132_vm3, %v1131_v44, 0 }
 0x486   : > { %6012 = vmatpush3.bf16.xpose.msra.mxu0 %v1137_v45 }
 0x487   : > { %6017 = vmatprep.subr.bf16.mxu0 %v7274_v18  ;;  %v1279_v53 = vpop.permute.xlu1 %1278 }
 0x488   : > { %v1181_v46 = vpop.permute.xlu0 %1180  ;;  %v1284_v54 = vsel %vm1132_vm3, %v1279_v53, 0 }
 0x489   : > { %v1186_v48 = vsel %vm1132_vm3, %v1181_v46, 0 }
 0x48c   : > { %v1328_v47 = vpop.permute.xlu0 %1327 }
 0x48d   : > { %6014 = vmatmul.mubr.msk.bf16.vlgmr.msra.gmra.mrb[16].mxu0 %vm1132_vm3, %v7837_v28  ;;  %v1333_v55 = vsel %vm1132_vm3, %v1328_v47, 0 }
 0x48e   : > { %6018 = vmatpush3.bf16.xpose.msra.mxu0 %v1186_v48  ;;  %6019 = vmatprep.mubr.msk.bf16.mxu0 %vm7275_vm2, %v7274_v18  ;;  %v1377_v56 = vpop.permute.xlu1 %1376 }
 0x48f   : > { %6023 = vmatprep.subr.bf16.mxu0 %v7274_v18  ;;  %v1382_v57 = vsel %vm1132_vm3, %v1377_v56, 0 }
 0x490   : > { %v1426_v49 = vpop.permute.xlu0 %1425 }
 0x491   : > { %v1431_v50 = vsel %vm1132_vm3, %v1426_v49, 0 }
 0x492   : > { %6048 = vmatpush3.bf16.xpose.msra.mxu1 %v1431_v50  ;;  %v1475_v58 = vpop.permute.xlu1 %1474 }
 0x493   : > { %6059 = vmatprep.subr.bf16.mxu1 %v7274_v18  ;;  %v1480_v59 = vsel %vm1132_vm3, %v1475_v58, 0 }
 0x495   : > { %6020 = vmatmul.mubr.msk.bf16.vlgmr.msra.gmra.mrb[20].mxu0 %vm1132_vm3, %v7843_v31 }
 0x496   : > { %6024 = vmatpush3.bf16.xpose.msra.mxu0 %v1235_v52  ;;  %6025 = vmatprep.mubr.msk.bf16.mxu0 %vm7275_vm2, %v7274_v18 }
 0x497   : > { %6029 = vmatprep.subr.bf16.mxu0 %v7274_v18 }
 0x499   : > { %6050 = vmatmul.mubr.msk.bf16.vlgmr.msra.gmra.mrb[8].mxu1 %vm1132_vm3, %v7849_v41 }
 0x49a   : > { %6061 = vmatprep.mubr.msk.bf16.mxu1 %vm7275_vm2, %v7274_v18 }
 0x49d   : > { %6026 = vmatmul.mubr.msk.bf16.vlgmr.msra.gmra.mrb[24].mxu0 %vm1132_vm3, %v7835_v25 }
 0x49e   : > { %6030 = vmatpush3.bf16.xpose.msra.mxu0 %v1284_v54  ;;  %6031 = vmatprep.mubr.msk.bf16.mxu0 %vm7275_vm2, %v7274_v18 }
 0x49f   : > { %6035 = vmatprep.subr.bf16.mxu0 %v7274_v18 }
 0x4a5   : > { %6032 = vmatmul.mubr.msk.bf16.vlgmr.msra.gmra.mrb[28].mxu0 %vm1132_vm3, %v7841_v30 }
 0x4a6   : > { %6036 = vmatpush3.bf16.xpose.msra.mxu0 %v1333_v55  ;;  %6037 = vmatprep.mubr.msk.bf16.mxu0 %vm7275_vm2, %v7274_v18 }
 0x4a7   : > { %6041 = vmatprep.subr.bf16.mxu0 %v7274_v18 }
 0x4ad   : > { %6038 = vmatmul.mubr.msk.bf16.vlgmr.msra.gmra.mrb[32].mxu0 %vm1132_vm3, %v7847_v38 }
 0x4ae   : > { %6042 = vmatpush3.bf16.xpose.msra.mxu0 %v1382_v57  ;;  %6043 = vmatprep.mubr.msk.bf16.mxu0 %vm7275_vm2, %v7274_v18 }
 0x4af   : > { %6053 = vmatprep.subr.bf16.mxu0 %v7274_v18 }
 0x4b5   : > { %6044 = vmatmul.mubr.msk.bf16.vlgmr.msra.gmra.mrb[36].mxu0 %vm1132_vm3, %v7852_v42 }
 0x4b6   : > { %6054 = vmatpush3.bf16.xpose.msra.mxu0 %v1480_v59  ;;  %6055 = vmatprep.mubr.msk.bf16.mxu0 %vm7275_vm2, %v7274_v18 }
 0x4b7   : > { %6065 = vmatprep.subr.bf16.mxu0 %v7274_v18 }
 0x4bd   : > { %6056 = vmatmul.mubr.msk.bf16.vlgmr.msra.gmra.mrb[40].mxu0 %vm1132_vm3, %v7854_v43 }
 0x4be   : > { %6067 = vmatprep.mubr.msk.bf16.mxu0 %vm7275_vm2, %v7274_v18 }
 0x560   : > { %v1173_v60 = vpop.f32.mrb[16].mxu0 }
 0x561   : > { %v7907_v61 = vmul.f32 0.35355338, %v1173_v60  ;;  %v6015_v2 = vpop.f32.mrb[17].mxu0 }
 0x562   : > { %v1176_v3 = vpop.f32.mrb[18].mxu0 }
 0x563   : > { %v6016_v4 = vpop.f32.mrb[19].mxu0  ;;  %v1530_v5 = vsel %vm1132_vm3, %v7907_v61, -inf }
 0x564   : > { %1531 = vmax.xlane.f32.xlu0 %v1530_v5 }
 0x568   : > { %v1222_v6 = vpop.f32.mrb[20].mxu0 }
 0x569   : > { %v1523_v7 = vmul.f32 0.35355338, %v1222_v6  ;;  %v6021_v8 = vpop.f32.mrb[21].mxu0 }
 0x56a   : > { %v1225_v10 = vpop.f32.mrb[22].mxu0 }
 0x56b   : > { %v6022_v11 = vpop.f32.mrb[23].mxu0  ;;  %v1533_v13 = vsel %vm1132_vm3, %v1523_v7, -inf }
 0x56c   : > { %1534 = vmax.xlane.f32.xlu1 %v1533_v13  ;;  %v1467_v16 = vpop.f32.mrb[8].mxu1 }
 0x56d   : > { %v6051_v17 = vpop.f32.mrb[9].mxu1  ;;  %v1528_v45 = vmul.f32 0.35355338, %v1467_v16 }
 0x56e   : > { %v1470_v19 = vpop.f32.mrb[10].mxu1 }
 0x56f   : > { %v6052_v20 = vpop.f32.mrb[11].mxu1  ;;  %v1548_v48 = vsel %vm1132_vm3, %v1528_v45, -inf }
 0x570   : > { %v1271_v21 = vpop.f32.mrb[24].mxu0 }
 0x571   : > { %v7912_v22 = vmul.f32 0.35355338, %v1271_v21  ;;  %v6027_v23 = vpop.f32.mrb[25].mxu0 }
 0x572   : > { %v1274_v24 = vpop.f32.mrb[26].mxu0 }
 0x573   : > { %v6028_v26 = vpop.f32.mrb[27].mxu0  ;;  %v1536_v27 = vsel %vm1132_vm3, %v7912_v22, -inf }
 0x574   : > { %1537 = vmax.xlane.f32.xlu0 %v1536_v27 }
 0x578   : > { %v1320_v29 = vpop.f32.mrb[28].mxu0 }
 0x579   : > { %v1525_v32 = vmul.f32 0.35355338, %v1320_v29  ;;  %v6033_v33 = vpop.f32.mrb[29].mxu0 }
 0x57a   : > { %v1323_v34 = vpop.f32.mrb[30].mxu0 }
 0x57b   : > { %v6034_v35 = vpop.f32.mrb[31].mxu0  ;;  %v1539_v36 = vsel %vm1132_vm3, %v1525_v32, -inf }
 0x57c   : > { %1540 = vmax.xlane.f32.xlu0 %v1539_v36 }
 0x580   : > { %v1369_v37 = vpop.f32.mrb[32].mxu0 }
 0x581   : > { %v7917_v39 = vmul.f32 0.35355338, %v1369_v37  ;;  %v6039_v40 = vpop.f32.mrb[33].mxu0 }
 0x582   : > { %v1372_v44 = vpop.f32.mrb[34].mxu0 }
 0x583   : > { %v6040_v46 = vpop.f32.mrb[35].mxu0  ;;  %v1542_v47 = vsel %vm1132_vm3, %v7917_v39, -inf }
 0x584   : > { %1543 = vmax.xlane.f32.xlu1 %v1542_v47 }
 0x588   : > { %v1418_v49 = vpop.f32.mrb[36].mxu0  ;;  %1549 = vmax.xlane.f32.xlu1 %v1548_v48 }
 0x589   : > { %v6045_v50 = vpop.f32.mrb[37].mxu0  ;;  %v1527_v57 = vmul.f32 0.35355338, %v1418_v49 }
 0x58a   : > { %v1421_v51 = vpop.f32.mrb[38].mxu0 }
 0x58b   : > { %v6046_v52 = vpop.f32.mrb[39].mxu0  ;;  %v1545_v59 = vsel %vm1132_vm3, %v1527_v57, -inf }
 0x590   : > { %v1516_v53 = vpop.f32.mrb[40].mxu0 }
 0x591   : > { %v6057_v54 = vpop.f32.mrb[41].mxu0  ;;  %v7932_v58 = vmul.f32 0.35355338, %v1516_v53 }
 0x592   : > { %1675 = vrot.lane.b32.xlu0 %v7843_v31, %s7277_s19  ;;  %v1519_v55 = vpop.f32.mrb[42].mxu0 }
 0x593   : > { %v6058_v56 = vpop.f32.mrb[43].mxu0  ;;  %v1551_v60 = vsel %vm1132_vm3, %v7932_v58, -inf }
 0x599   : > { %1626 = vrot.lane.b32.xlu1 %v7837_v28, %s7277_s19 }
 0x59d   : > { %1723 = vrot.lane.b32.xlu1 %v7835_v25, %s7277_s19 }
 0x5a1   : > { %1771 = vrot.lane.b32.xlu1 %v7841_v30, %s7277_s19 }
 0x5a5   : > { %1867 = vrot.lane.b32.xlu1 %v7852_v42, %s7277_s19 }
 0x5b1   : > { %1546 = vmax.xlane.f32.xlu0 %v1545_v59 }
 0x5b5   : > { %1552 = vmax.xlane.f32.xlu0 %v1551_v60 }
 0x5cb   : > { %1819 = vrot.lane.b32.xlu0 %v7847_v38, %s7277_s19 }
 0x5f1   : > { %v1532_v2 = vpop.xlane.xlu0 %1531 }
 0x5f2   : > { %v1554_v3 = vsub.f32 %v7907_v61, %v1532_v2 }
 0x5f4   : > { %v1562_v4 = vmul.f32 1.442695, %v1554_v3 }
 0x5f6   : > { %6680 = vpow2.f32 %v1562_v4 }
 0x5f9   : > { %v1535_v5 = vpop.xlane.xlu1 %1534 }
 0x5fa   : > { %v1555_v6 = vsub.f32 %v1523_v7, %v1535_v5 }
 0x5fc   : > { %v1564_v8 = vmul.f32 1.442695, %v1555_v6 }
 0x5fe   : > { %6682 = vpow2.f32 %v1564_v8 }
 0x600   : > { %v7940_v10 = vpop.eup %6680 }
 0x601   : > { %v1578_v11 = vsel %vm1132_vm3, %v7940_v10, 0.0  ;;  %v1538_v13 = vpop.xlane.xlu0 %1537 }
 0x602   : > { %1579 = vadd.xlane.f32.xlu1 %v1578_v11  ;;  %v1556_v24 = vsub.f32 %v7912_v22, %v1538_v13 }
 0x604   : > { %v1566_v33 = vmul.f32 1.442695, %v1556_v24 }
 0x608   : > { %v7944_v16 = vpop.eup %6682 }
 0x609   : > { %v1541_v17 = vpop.xlane.xlu0 %1540  ;;  %v1581_v19 = vsel %vm1132_vm3, %v7944_v16, 0.0 }
 0x60a   : > { %v1557_v61 = vsub.f32 %v1525_v32, %v1541_v17  ;;  %1582 = vadd.xlane.f32.xlu0 %v1581_v19 }
 0x60c   : > { %v1568_v20 = vmul.f32 1.442695, %v1557_v61 }
 0x60d   : > { %v1676_v7 = vpop.permute.xlu0 %1675 }
 0x60e   : > { %6684 = vpow2.f32 %v1568_v20  ;;  %v1681_v21 = vsel %vm1631_vm4, %v1676_v7, 0 }
 0x60f   : > { %6066 = vmatpush3.bf16.msra.mxu0 %v1681_v21 }
 0x610   : > { %6077 = vmatprep.subr.bf16.mxu0 %v7274_v18 }
 0x611   : > { %v1544_v23 = vpop.xlane.xlu1 %1543 }
 0x612   : > { %v1558_v32 = vsub.f32 %v7917_v39, %v1544_v23 }
 0x614   : > { %v1570_v40 = vmul.f32 1.442695, %v1558_v32 }
 0x615   : > { %v1550_v26 = vpop.xlane.xlu1 %1549 }
 0x616   : > { %v1560_v27 = vsub.f32 %v1528_v45, %v1550_v26 }
 0x618   : > { %v7951_v29 = vpop.eup %6684  ;;  %v1574_v34 = vmul.f32 1.442695, %v1560_v27 }
 0x619   : > { %v1627_v35 = vpop.permute.xlu1 %1626  ;;  %v1587_v36 = vsel %vm1132_vm3, %v7951_v29, 0.0 }
 0x61a   : > { %6686 = vpow2.f32 %v1574_v34  ;;  %v1633_v37 = vsel %vm1631_vm4, %v1627_v35, 0  ;;  %1588 = vadd.xlane.f32.xlu0 %v1587_v36 }
 0x61b   : > { %6060 = vmatpush3.bf16.msra.mxu1 %v1633_v37  ;;  %6688 = vpow2.f32 %v1566_v33 }
 0x61c   : > { %6071 = vmatprep.subr.bf16.mxu1 %v7274_v18  ;;  %6690 = vpow2.f32 %v1570_v40 }
 0x61d   : > { %v1724_v56 = vpop.permute.xlu1 %1723 }
 0x61e   : > { %v1729_v11 = vsel %vm1631_vm4, %v1724_v56, 0 }
 0x621   : > { %v1772_v60 = vpop.permute.xlu1 %1771 }
 0x622   : > { %v1777_v19 = vsel %vm1631_vm4, %v1772_v60, 0 }
 0x624   : > { %v7958_v22 = vpop.eup %6686 }
 0x625   : > { %v1596_v39 = vsel %vm1132_vm3, %v7958_v22, 0.0  ;;  %v7962_v44 = vpop.eup %6688  ;;  %v1868_v2 = vpop.permute.xlu1 %1867 }
 0x626   : > { %1597 = vadd.xlane.f32.xlu1 %v1596_v39  ;;  %v1584_v45 = vsel %vm1132_vm3, %v7962_v44, 0.0  ;;  %v7966_v46 = vpop.eup %6690  ;;  %v1873_v23 = vsel %vm1631_vm4, %v1868_v2, 0 }
 0x627   : > { %v1590_v47 = vsel %vm1132_vm3, %v7966_v46, 0.0 }
 0x62a   : > { %1585 = vadd.xlane.f32.xlu1 %v1584_v45 }
 0x62e   : > { %1591 = vadd.xlane.f32.xlu1 %v1590_v47 }
 0x63e   : > { %v1547_v48 = vpop.xlane.xlu0 %1546 }
 0x63f   : > { %v1559_v49 = vsub.f32 %v1527_v57, %v1547_v48  ;;  %1963 = vrot.lane.b32.xlu1 %v7854_v43, %s7277_s19 }
 0x641   : > { %v1572_v50 = vmul.f32 1.442695, %v1559_v49 }
 0x642   : > { %v1553_v53 = vpop.xlane.xlu0 %1552 }
 0x643   : > { %6692 = vpow2.f32 %v1572_v50  ;;  %2063 = vrot.lane.b32.xlu1 %v7843_v31, %s7278_s2  ;;  %v1561_v54 = vsub.f32 %v7932_v58, %v1553_v53 }
 0x645   : > { %v1576_v55 = vmul.f32 1.442695, %v1561_v54 }
 0x646   : > { %v1820_v4 = vpop.permute.xlu0 %1819 }
 0x647   : > { %2061 = vrot.lane.b32.xlu1 %v7843_v31, %s7279_s28  ;;  %6694 = vpow2.f32 %v1576_v55  ;;  %v1825_v34 = vsel %vm1631_vm4, %v1820_v4, 0 }
 0x64b   : > { %2163 = vrot.lane.b32.xlu1 %v7841_v30, %s7278_s2 }
 0x64d   : > { %v7978_v51 = vpop.eup %6692 }
 0x64e   : > { %v1593_v52 = vsel %vm1132_vm3, %v7978_v51, 0.0 }
 0x64f   : > { %2161 = vrot.lane.b32.xlu1 %v7841_v30, %s7279_s28  ;;  %1594 = vadd.xlane.f32.xlu0 %v1593_v52 }
 0x651   : > { %v8001_v57 = vpop.eup %6694 }
 0x652   : > { %v1599_v59 = vsel %vm1132_vm3, %v8001_v57, 0.0 }
 0x653   : > { %2263 = vrot.lane.b32.xlu1 %v7852_v42, %s7278_s2 }
 0x657   : > { %2261 = vrot.lane.b32.xlu1 %v7852_v42, %s7279_s28 }
 0x65b   : > { %2363 = vrot.lane.b32.xlu1 %v7854_v43, %s7278_s2 }
 0x65f   : > { %2361 = vrot.lane.b32.xlu1 %v7854_v43, %s7279_s28 }
 0x663   : > { %2515 = vrot.lane.b32.xlu1 %v7837_v28, %s7280_s17 }
 0x665   : > { %1915 = vrot.lane.b32.xlu0 %v7849_v41, %s7277_s19  ;;  %s7286_s19 = smov 40  }
 0x667   : > { %2611 = vrot.lane.b32.xlu1 %v7835_v25, %s7280_s17 }
 0x66b   : > { %2659 = vrot.lane.b32.xlu1 %v7841_v30, %s7280_s17 }
 0x684   : > { %1600 = vadd.xlane.f32.xlu0 %v1599_v59 }
 0x68f   : > { %v1580_v3 = vpop.xlane.xlu1 %1579 }
 0x690   : > { %6696 = vrcp.f32 %v1580_v3 }
 0x697   : > { %v1583_v5 = vpop.xlane.xlu0 %1582 }
 0x698   : > { %6698 = vrcp.f32 %v1583_v5 }
 0x69a   : > { %v6697_v6 = vpop.eup %6696  ;;  %2013 = vrot.lane.b32.xlu0 %v7837_v28, %s7278_s2 }
 0x69b   : > { %v1610_v58 = vmul.f32 %v6697_v6, %v7940_v10 }
 0x69d   : > { %v1618_v8 = vpack.c.bf16 %v1610_v58, %v1610_v58 }
 0x69e   : > { %2011 = vrot.lane.b32.xlu0 %v7837_v28, %s7279_s28 }
 0x69f   : > { %6062 = vmatmul.mubr.msk.bf16.vlgmr.msra.gmra.mrb[12].mxu1 %vm1132_vm3, %v1618_v8 }
 0x6a0   : > { %6072 = vmatpush3.bf16.msra.mxu1 %v1729_v11  ;;  %6073 = vmatprep.mubr.msk.bf16.mxu1 %vm7275_vm2, %v7274_v18 }
 0x6a1   : > { %6083 = vmatprep.subr.bf16.mxu1 %v7274_v18 }
 0x6a2   : > { %v6699_v13 = vpop.eup %6698  ;;  %2113 = vrot.lane.b32.xlu0 %v7835_v25, %s7278_s2 }
 0x6a3   : > { %v1611_v10 = vmul.f32 %v6699_v13, %v7944_v16 }
 0x6a5   : > { %v1619_v17 = vpack.c.bf16 %v1611_v10, %v1611_v10 }
 0x6a6   : > { %2111 = vrot.lane.b32.xlu0 %v7835_v25, %s7279_s28 }
 0x6a7   : > { %6068 = vmatmul.mubr.msk.bf16.vlgmr.msra.gmra.mrb[44].mxu0 %vm1132_vm3, %v1619_v17  ;;  %v1589_v61 = vpop.xlane.xlu0 %1588 }
 0x6a8   : > { %6078 = vmatpush3.bf16.msra.mxu0 %v1777_v19  ;;  %6700 = vrcp.f32 %v1589_v61  ;;  %6079 = vmatprep.mubr.msk.bf16.mxu0 %vm7275_vm2, %v7274_v18 }
 0x6a9   : > { %6089 = vmatprep.subr.bf16.mxu0 %v7274_v18 }
 0x6aa   : > { %2213 = vrot.lane.b32.xlu0 %v7847_v38, %s7278_s2 }
 0x6ae   : > { %2211 = vrot.lane.b32.xlu0 %v7847_v38, %s7279_s28 }
 0x6b2   : > { %v6701_v16 = vpop.eup %6700  ;;  %2313 = vrot.lane.b32.xlu0 %v7849_v41, %s7278_s2  ;;  %s7287_s2 = smov 8  }
 0x6b3   : > { %v1598_v20 = vpop.xlane.xlu1 %1597  ;;  %v1613_v7 = vmul.f32 %v6701_v16, %v7951_v29 }
 0x6b5   : > { %v1621_v21 = vpack.c.bf16 %v1613_v7, %v1613_v7 }
 0x6b6   : > { %2311 = vrot.lane.b32.xlu0 %v7849_v41, %s7279_s28  ;;  %s7288_s28 = smov 16  }
 0x6b7   : > { %v1586_v24 = vpop.xlane.xlu1 %1585  ;;  %6080 = vmatmul.mubr.msk.bf16.vlgmr.msra.gmra.mrb[48].mxu0 %vm1132_vm3, %v1621_v21 }
 0x6b8   : > { %6702 = vrcp.f32 %v1586_v24  ;;  %6090 = vmatpush3.bf16.msra.mxu0 %v1873_v23  ;;  %6091 = vmatprep.mubr.msk.bf16.mxu0 %vm7275_vm2, %v7274_v18 }
 0x6b9   : > { %6101 = vmatprep.subr.bf16.mxu0 %v7274_v18 }
 0x6ba   : > { %2563 = vrot.lane.b32.xlu0 %v7843_v31, %s7280_s17 }
 0x6bb   : > { %v1592_v26 = vpop.xlane.xlu1 %1591 }
 0x6bc   : > { %6704 = vrcp.f32 %v1592_v26 }
 0x6bd   : > { %6706 = vrcp.f32 %v1598_v20 }
 0x6bf   : > { %v1964_v49 = vpop.permute.xlu1 %1963 }
 0x6c0   : > { %v1969_v52 = vsel %vm1631_vm4, %v1964_v49, 0 }
 0x6c2   : > { %v6703_v27 = vpop.eup %6702 }
 0x6c3   : > { %v1612_v29 = vmul.f32 %v6703_v27, %v7962_v44 }
 0x6c5   : > { %v1620_v33 = vpack.c.bf16 %v1612_v29, %v1612_v29 }
 0x6c6   : > { %v6705_v32 = vpop.eup %6704 }
 0x6c7   : > { %6074 = vmatmul.mubr.msk.bf16.vlgmr.msra.gmra.mrb[16].mxu1 %vm1132_vm3, %v1620_v33  ;;  %v1614_v35 = vmul.f32 %v6705_v32, %v7966_v46  ;;  %v6707_v37 = vpop.eup %6706 }
 0x6c8   : > { %6084 = vmatpush3.bf16.msra.mxu1 %v1825_v34  ;;  %6085 = vmatprep.mubr.msk.bf16.mxu1 %vm7275_vm2, %v7274_v18  ;;  %v1616_v39 = vmul.f32 %v6707_v37, %v7958_v22  ;;  %v2064_v22 = vpop.permute.xlu1 %2063 }
 0x6c9   : > { %6095 = vmatprep.subr.bf16.mxu1 %v7274_v18  ;;  %v1622_v36 = vpack.c.bf16 %v1614_v35, %v1614_v35  ;;  %v2069_v8 = vsel %vm1132_vm3, %v2064_v22, 0 }
 0x6ca   : > { %v1624_v47 = vpack.c.bf16 %v1616_v39, %v1616_v39 }
 0x6cc   : > { %v2062_v53 = vpop.permute.xlu1 %2061 }
 0x6cf   : > { %6086 = vmatmul.mubr.msk.bf16.vlgmr.msra.gmra.mrb[20].mxu1 %vm1132_vm3, %v1622_v36 }
 0x6d0   : > { %6097 = vmatprep.mubr.msk.bf16.mxu1 %vm7275_vm2, %v7274_v18  ;;  %v2164_v54 = vpop.permute.xlu1 %2163 }
 0x6d1   : > { %v2169_v19 = vsel %vm1132_vm3, %v2164_v54, 0 }
 0x6d4   : > { %v2162_v56 = vpop.permute.xlu1 %2161 }
 0x6d8   : > { %v2264_v2 = vpop.permute.xlu1 %2263 }
 0x6d9   : > { %v2269_v21 = vsel %vm1132_vm3, %v2264_v2, 0 }
 0x6dc   : > { %v1595_v40 = vpop.xlane.xlu0 %1594  ;;  %v2262_v11 = vpop.permute.xlu1 %2261 }
 0x6dd   : > { %6708 = vrcp.f32 %v1595_v40 }
 0x6e0   : > { %v1916_v44 = vpop.permute.xlu0 %1915  ;;  %v2364_v17 = vpop.permute.xlu1 %2363 }
 0x6e1   : > { %v1921_v45 = vsel %vm1631_vm4, %v1916_v44, 0  ;;  %v2369_v27 = vsel %vm1132_vm3, %v2364_v17, 0 }
 0x6e2   : > { %6096 = vmatpush3.bf16.msra.mxu1 %v1921_v45 }
 0x6e3   : > { %6107 = vmatprep.subr.bf16.mxu1 %v7274_v18 }
 0x6e4   : > { %v2362_v16 = vpop.permute.xlu1 %2361 }
 0x6e5   : > { %6098 = vmatmul.mubr.msk.bf16.vlgmr.msra.gmra.mrb[24].mxu1 %vm1132_vm3, %v1624_v47 }
 0x6e6   : > { %6109 = vmatprep.mubr.msk.bf16.mxu1 %vm7275_vm2, %v7274_v18 }
 0x6e7   : > { %v6709_v46 = vpop.eup %6708 }
 0x6e8   : > { %v1615_v48 = vmul.f32 %v6709_v46, %v7978_v51  ;;  %v2516_v23 = vpop.permute.xlu1 %2515 }
 0x6e9   : > { %v2521_v26 = vsel %vm1631_vm4, %v2516_v23, 0 }
 0x6ea   : > { %v1623_v50 = vpack.c.bf16 %v1615_v48, %v1615_v48 }
 0x6ec   : > { %6092 = vmatmul.mubr.msk.bf16.vlgmr.msra.gmra.mrb[52].mxu0 %vm1132_vm3, %v1623_v50 }
 0x6ed   : > { %6102 = vmatpush3.bf16.msra.mxu0 %v1969_v52  ;;  %6103 = vmatprep.mubr.msk.bf16.mxu0 %vm7275_vm2, %v7274_v18 }
 0x6ee   : > { %6113 = vmatprep.subr.bf16.mxu0 %v7274_v18 }
 0x711   : > { %v1601_v55 = vpop.xlane.xlu0 %1600 }
 0x712   : > { %6710 = vrcp.f32 %v1601_v55 }
 0x715   : > { %v2014_v59 = vpop.permute.xlu0 %2013 }
 0x716   : > { %v2019_v51 = vsel %vm1132_vm3, %v2014_v59, 0 }
 0x717   : > { %6108 = vmatpush3.bf16.xpose.msra.mxu1 %v2019_v51 }
 0x718   : > { %6119 = vmatprep.subr.bf16.mxu1 %v7274_v18 }
 0x719   : > { %v2012_v60 = vpop.permute.xlu0 %2011 }
 0x71c   : > { %v6711_v3 = vpop.eup %6710 }
 0x71d   : > { %v2114_v4 = vpop.permute.xlu0 %2113  ;;  %v1617_v5 = vmul.f32 %v6711_v3, %v8001_v57 }
 0x71e   : > { %v2119_v6 = vsel %vm1132_vm3, %v2114_v4, 0  ;;  %6110 = vmatmul.mubr.msk.bf16.vlgmr.msra.gmra.mrb[28].mxu1 %vm1132_vm3, %v2012_v60 }
 0x71f   : > { %6120 = vmatpush3.bf16.xpose.msra.mxu1 %v2119_v6  ;;  %v1625_v58 = vpack.c.bf16 %v1617_v5, %v1617_v5  ;;  %6121 = vmatprep.mubr.msk.bf16.mxu1 %vm7275_vm2, %v7274_v18 }
 0x720   : > { %6131 = vmatprep.subr.bf16.mxu1 %v7274_v18 }
 0x721   : > { %6104 = vmatmul.mubr.msk.bf16.vlgmr.msra.gmra.mrb[56].mxu0 %vm1132_vm3, %v1625_v58  ;;  %v2112_v13 = vpop.permute.xlu0 %2111 }
 0x722   : > { %6114 = vmatpush3.bf16.xpose.msra.mxu0 %v2069_v8  ;;  %6115 = vmatprep.mubr.msk.bf16.mxu0 %vm7275_vm2, %v7274_v18 }
 0x723   : > { %6125 = vmatprep.subr.bf16.mxu0 %v7274_v18 }
 0x725   : > { %v2214_v57 = vpop.permute.xlu0 %2213 }
 0x726   : > { %v2219_v10 = vsel %vm1132_vm3, %v2214_v57, 0  ;;  %6122 = vmatmul.mubr.msk.bf16.vlgmr.msra.gmra.mrb[32].mxu1 %vm1132_vm3, %v2112_v13 }
 0x727   : > { %6132 = vmatpush3.bf16.xpose.msra.mxu1 %v2219_v10  ;;  %6133 = vmatprep.mubr.msk.bf16.mxu1 %vm7275_vm2, %v7274_v18 }
 0x728   : > { %6143 = vmatprep.subr.bf16.mxu1 %v7274_v18 }
 0x729   : > { %6116 = vmatmul.mubr.msk.bf16.vlgmr.msra.gmra.mrb[60].mxu0 %vm1132_vm3, %v2062_v53  ;;  %v2212_v61 = vpop.permute.xlu0 %2211 }
 0x72a   : > { %6126 = vmatpush3.bf16.xpose.msra.mxu0 %v2169_v19  ;;  %6127 = vmatprep.mubr.msk.bf16.mxu0 %vm7275_vm2, %v7274_v18 }
 0x72b   : > { %6137 = vmatprep.subr.bf16.mxu0 %v7274_v18 }
 0x72d   : > { %v2314_v20 = vpop.permute.xlu0 %2313 }
 0x72e   : > { %v2319_v7 = vsel %vm1132_vm3, %v2314_v20, 0  ;;  %6134 = vmatmul.mubr.msk.bf16.vlgmr.msra.gmra.mrb[36].mxu1 %vm1132_vm3, %v2212_v61 }
 0x72f   : > { %6144 = vmatpush3.bf16.xpose.msra.mxu1 %v2319_v7  ;;  %6145 = vmatprep.mubr.msk.bf16.mxu1 %vm7275_vm2, %v7274_v18 }
 0x730   : > { %6155 = vmatprep.subr.bf16.mxu1 %v7274_v18 }
 0x731   : > { %6128 = vmatmul.mubr.msk.bf16.vlgmr.msra.gmra.mrb[64].mxu0 %vm1132_vm3, %v2162_v56  ;;  %v2312_v24 = vpop.permute.xlu0 %2311 }
 0x732   : > { %6138 = vmatpush3.bf16.xpose.msra.mxu0 %v2269_v21  ;;  %6139 = vmatprep.mubr.msk.bf16.mxu0 %vm7275_vm2, %v7274_v18 }
 0x733   : > { %6149 = vmatprep.subr.bf16.mxu0 %v7274_v18 }
 0x735   : > { %v2564_v29 = vpop.permute.xlu0 %2563 }
 0x736   : > { %6146 = vmatmul.mubr.msk.bf16.vlgmr.msra.gmra.mrb[40].mxu1 %vm1132_vm3, %v2312_v24  ;;  %v2569_v33 = vsel %vm1631_vm4, %v2564_v29, 0 }
 0x737   : > { %6156 = vmatpush3.bf16.msra.mxu1 %v2521_v26  ;;  %6157 = vmatprep.mubr.msk.bf16.mxu1 %vm7275_vm2, %v7274_v18 }
 0x738   : > { %6167 = vmatprep.subr.bf16.mxu1 %v7274_v18 }
 0x739   : > { %6140 = vmatmul.mubr.msk.bf16.vlgmr.msra.gmra.mrb[68].mxu0 %vm1132_vm3, %v2262_v11 }
 0x73a   : > { %6150 = vmatpush3.bf16.xpose.msra.mxu0 %v2369_v27  ;;  %6151 = vmatprep.mubr.msk.bf16.mxu0 %vm7275_vm2, %v7274_v18 }
 0x73b   : > { %6161 = vmatprep.subr.bf16.mxu0 %v7274_v18 }
 0x741   : > { %6152 = vmatmul.mubr.msk.bf16.vlgmr.msra.gmra.mrb[72].mxu0 %vm1132_vm3, %v2362_v16 }
 0x742   : > { %6162 = vmatpush3.bf16.msra.mxu0 %v2569_v33  ;;  %6163 = vmatprep.mubr.msk.bf16.mxu0 %vm7275_vm2, %v7274_v18 }
 0x743   : > { %6173 = vmatprep.subr.bf16.mxu0 %v7274_v18 }
 0x772   : > { %v8111_v32 = vpop.f32.mrb[12].mxu1 }
 0x773   : > { %v6063_v34 = vpop.f32.mrb[13].mxu1 }
 0x774   : > { %v1672_v35 = vpop.f32.mrb[14].mxu1 }
 0x775   : > { %v6064_v36 = vpop.f32.mrb[15].mxu1 }
 0x77a   : > { %v8113_v37 = vpop.f32.mrb[44].mxu0 }
 0x77b   : > { %v6069_v40 = vpop.f32.mrb[45].mxu0 }
 0x77c   : > { %v1720_v39 = vpop.f32.mrb[46].mxu0 }
 0x77d   : > { %v6070_v44 = vpop.f32.mrb[47].mxu0 }
 0x78a   : > { %v8115_v45 = vpop.f32.mrb[48].mxu0 }
 0x78b   : > { %v6081_v47 = vpop.f32.mrb[49].mxu0 }
 0x78c   : > { %v1816_v46 = vpop.f32.mrb[50].mxu0 }
 0x78d   : > { %v6082_v48 = vpop.f32.mrb[51].mxu0 }
 0x79a   : > { %v8117_v49 = vpop.f32.mrb[16].mxu1 }
 0x79b   : > { %v6075_v50 = vpop.f32.mrb[17].mxu1 }
 0x79c   : > { %v1768_v52 = vpop.f32.mrb[18].mxu1 }
 0x79d   : > { %v6076_v22 = vpop.f32.mrb[19].mxu1 }
 0x7a2   : > { %v8119_v53 = vpop.f32.mrb[20].mxu1 }
 0x7a3   : > { %v6087_v54 = vpop.f32.mrb[21].mxu1 }
 0x7a4   : > { %v1864_v55 = vpop.f32.mrb[22].mxu1 }
 0x7a5   : > { %v6088_v56 = vpop.f32.mrb[23].mxu1 }
 0x7b8   : > { %v8121_v59 = vpop.f32.mrb[24].mxu1 }
 0x7b9   : > { %v6099_v51 = vpop.f32.mrb[25].mxu1 }
 0x7ba   : > { %v1960_v60 = vpop.f32.mrb[26].mxu1 }
 0x7bb   : > { %v6100_v2 = vpop.f32.mrb[27].mxu1 }
 0x7bf   : > { %v8123_v3 = vpop.f32.mrb[52].mxu0 }
 0x7c0   : > { %v6093_v4 = vpop.f32.mrb[53].mxu0 }
 0x7c1   : > { %v1912_v5 = vpop.f32.mrb[54].mxu0 }
 0x7c2   : > { %v6094_v6 = vpop.f32.mrb[55].mxu0 }
 0x7f1   : > { %v2055_v58 = vpop.f32.mrb[28].mxu1 }
 0x7f2   : > { %v8125_v8 = vmul.f32 0.35355338, %v2055_v58  ;;  %v6111_v11 = vpop.f32.mrb[29].mxu1 }
 0x7f3   : > { %v2058_v13 = vpop.f32.mrb[30].mxu1 }
 0x7f4   : > { %v8127_v57 = vpop.f32.mrb[56].mxu0  ;;  %v6112_v10 = vpop.f32.mrb[31].mxu1  ;;  %v2419_v17 = vsel %vm1132_vm3, %v8125_v8, -inf }
 0x7f5   : > { %v6105_v19 = vpop.f32.mrb[57].mxu0  ;;  %2420 = vmax.xlane.f32.xlu0 %v2419_v17 }
 0x7f6   : > { %v2008_v61 = vpop.f32.mrb[58].mxu0 }
 0x7f7   : > { %v6106_v16 = vpop.f32.mrb[59].mxu0 }
 0x7f9   : > { %v2155_v20 = vpop.f32.mrb[32].mxu1 }
 0x7fa   : > { %v2413_v7 = vmul.f32 0.35355338, %v2155_v20  ;;  %v6123_v21 = vpop.f32.mrb[33].mxu1 }
 0x7fb   : > { %v2158_v23 = vpop.f32.mrb[34].mxu1 }
 0x7fc   : > { %v2105_v24 = vpop.f32.mrb[60].mxu0  ;;  %v6124_v26 = vpop.f32.mrb[35].mxu1  ;;  %v2425_v27 = vsel %vm1132_vm3, %v2413_v7, -inf }
 0x7fd   : > { %v2412_v29 = vmul.f32 0.35355338, %v2105_v24  ;;  %v6117_v33 = vpop.f32.mrb[61].mxu0  ;;  %2426 = vmax.xlane.f32.xlu0 %v2425_v27  ;;  %v8145_v27 = vpop.permute.xlu1 %2611 }
 0x7fe   : > { %v2108_v34 = vpop.f32.mrb[62].mxu0 }
 0x7ff   : > { %v6118_v35 = vpop.f32.mrb[63].mxu0  ;;  %v2422_v36 = vsel %vm1132_vm3, %v2412_v29, -inf }
 0x800   : > { %2423 = vmax.xlane.f32.xlu1 %v2422_v36 }
 0x801   : > { %v2255_v40 = vpop.f32.mrb[36].mxu1  ;;  %v8148_v35 = vpop.permute.xlu1 %2659 }
 0x802   : > { %v2415_v39 = vmul.f32 0.35355338, %v2255_v40  ;;  %v6135_v44 = vpop.f32.mrb[37].mxu1 }
 0x803   : > { %v2258_v47 = vpop.f32.mrb[38].mxu1 }
 0x804   : > { %v2205_v46 = vpop.f32.mrb[64].mxu0  ;;  %v6136_v48 = vpop.f32.mrb[39].mxu1  ;;  %v2431_v50 = vsel %vm1132_vm3, %v2415_v39, -inf }
 0x805   : > { %v2414_v52 = vmul.f32 0.35355338, %v2205_v46  ;;  %v6129_v22 = vpop.f32.mrb[65].mxu0  ;;  %2432 = vmax.xlane.f32.xlu1 %v2431_v50 }
 0x806   : > { %v2208_v54 = vpop.f32.mrb[66].mxu0 }
 0x807   : > { %v6130_v55 = vpop.f32.mrb[67].mxu0  ;;  %v2428_v56 = vsel %vm1132_vm3, %v2414_v52, -inf }
 0x808   : > { %2429 = vmax.xlane.f32.xlu0 %v2428_v56 }
 0x809   : > { %v2355_v51 = vpop.f32.mrb[40].mxu1 }
 0x80a   : > { %v8135_v60 = vmul.f32 0.35355338, %v2355_v51  ;;  %v6147_v2 = vpop.f32.mrb[41].mxu1 }
 0x80b   : > { %v2358_v4 = vpop.f32.mrb[42].mxu1 }
 0x80c   : > { %v2305_v5 = vpop.f32.mrb[68].mxu0  ;;  %v6148_v6 = vpop.f32.mrb[43].mxu1  ;;  %v2437_v58 = vsel %vm1132_vm3, %v8135_v60, -inf }
 0x80d   : > { %v2416_v11 = vmul.f32 0.35355338, %v2305_v5  ;;  %v6141_v13 = vpop.f32.mrb[69].mxu0  ;;  %2438 = vmax.xlane.f32.xlu1 %v2437_v58 }
 0x80e   : > { %v2308_v10 = vpop.f32.mrb[70].mxu0 }
 0x80f   : > { %v6142_v17 = vpop.f32.mrb[71].mxu0  ;;  %v2434_v19 = vsel %vm1132_vm3, %v2416_v11, -inf }
 0x810   : > { %2435 = vmax.xlane.f32.xlu0 %v2434_v19 }
 0x814   : > { %v2405_v61 = vpop.f32.mrb[72].mxu0 }
 0x815   : > { %v2418_v16 = vmul.f32 0.35355338, %v2405_v61  ;;  %v6153_v20 = vpop.f32.mrb[73].mxu0 }
 0x816   : > { %v2408_v21 = vpop.f32.mrb[74].mxu0 }
 0x817   : > { %v6154_v23 = vpop.f32.mrb[75].mxu0  ;;  %v2440_v24 = vsel %vm1132_vm3, %v2418_v16, -inf }
 0x818   : > { %2441 = vmax.xlane.f32.xlu0 %v2440_v24 }
 0x81e   : > { %2755 = vrot.lane.b32.xlu1 %v7852_v42, %s7280_s17 }
 0x82e   : > { %2707 = vrot.lane.b32.xlu0 %v7847_v38, %s7280_s17 }
 0x882   : > { %v2421_v26 = vpop.xlane.xlu0 %2420 }
 0x883   : > { %v2443_v33 = vsub.f32 %v8125_v8, %v2421_v26 }
 0x885   : > { %v2451_v34 = vmul.f32 1.442695, %v2443_v33 }
 0x887   : > { %6712 = vpow2.f32 %v2451_v34 }
 0x88a   : > { %v2427_v36 = vpop.xlane.xlu0 %2426 }
 0x88b   : > { %v2445_v40 = vsub.f32 %v2413_v7, %v2427_v36 }
 0x88d   : > { %v2455_v44 = vmul.f32 1.442695, %v2445_v40  ;;  %v2424_v47 = vpop.xlane.xlu1 %2423 }
 0x88e   : > { %v2444_v46 = vsub.f32 %v2412_v29, %v2424_v47 }
 0x88f   : > { %6714 = vpow2.f32 %v2455_v44 }
 0x890   : > { %v2453_v48 = vmul.f32 1.442695, %v2444_v46 }
 0x891   : > { %v8150_v50 = vpop.eup %6712 }
 0x892   : > { %6716 = vpow2.f32 %v2453_v48  ;;  %v2433_v22 = vpop.xlane.xlu1 %2432  ;;  %v2467_v54 = vsel %vm1132_vm3, %v8150_v50, 0.0 }
 0x893   : > { %v2447_v55 = vsub.f32 %v2415_v39, %v2433_v22  ;;  %2468 = vadd.xlane.f32.xlu1 %v2467_v54 }
 0x895   : > { %v2459_v8 = vmul.f32 1.442695, %v2447_v55  ;;  %v2430_v56 = vpop.xlane.xlu0 %2429  ;;  %v2617_v55 = vsel %vm1631_vm4, %v8145_v27, 0 }
 0x896   : > { %v2446_v51 = vsub.f32 %v2414_v52, %v2430_v56 }
 0x897   : > { %6718 = vpow2.f32 %v2459_v8 }
 0x898   : > { %v2457_v2 = vmul.f32 1.442695, %v2446_v51 }
 0x899   : > { %v8154_v7 = vpop.eup %6714 }
 0x89a   : > { %6720 = vpow2.f32 %v2457_v2  ;;  %v2473_v29 = vsel %vm1132_vm3, %v8154_v7, 0.0  ;;  %v2439_v61 = vpop.xlane.xlu1 %2438 }
 0x89b   : > { %2474 = vadd.xlane.f32.xlu1 %v2473_v29  ;;  %v2449_v20 = vsub.f32 %v8135_v60, %v2439_v61 }
 0x89c   : > { %v8158_v4 = vpop.eup %6716 }
 0x89d   : > { %v2436_v5 = vpop.xlane.xlu0 %2435  ;;  %v2470_v6 = vsel %vm1132_vm3, %v8158_v4, 0.0  ;;  %v2463_v21 = vmul.f32 1.442695, %v2449_v20 }
 0x89e   : > { %v2448_v39 = vsub.f32 %v2416_v11, %v2436_v5  ;;  %2471 = vadd.xlane.f32.xlu0 %v2470_v6 }
 0x8a0   : > { %v2461_v58 = vmul.f32 1.442695, %v2448_v39 }
 0x8a1   : > { %v8162_v13 = vpop.eup %6718 }
 0x8a2   : > { %6722 = vpow2.f32 %v2461_v58  ;;  %v2479_v52 = vsel %vm1132_vm3, %v8162_v13, 0.0  ;;  %v2665_v58 = vsel %vm1631_vm4, %v8148_v35, 0 }
 0x8a3   : > { %2480 = vadd.xlane.f32.xlu1 %v2479_v52  ;;  %6724 = vpow2.f32 %v2463_v21 }
 0x8a4   : > { %v8166_v10 = vpop.eup %6720 }
 0x8a5   : > { %v2476_v17 = vsel %vm1132_vm3, %v8166_v10, 0.0  ;;  %v2442_v23 = vpop.xlane.xlu0 %2441 }
 0x8a6   : > { %2477 = vadd.xlane.f32.xlu0 %v2476_v17  ;;  %v2450_v24 = vsub.f32 %v2418_v16, %v2442_v23  ;;  %v2756_v16 = vpop.permute.xlu1 %2755 }
 0x8a8   : > { %v2465_v26 = vmul.f32 1.442695, %v2450_v24 }
 0x8a9   : > { %v2708_v44 = vpop.permute.xlu0 %2707 }
 0x8aa   : > { %6726 = vpow2.f32 %v2465_v26  ;;  %v2713_v27 = vsel %vm1631_vm4, %v2708_v44, 0 }
 0x8ac   : > { %v8170_v19 = vpop.eup %6722 }
 0x8ad   : > { %v2482_v11 = vsel %vm1132_vm3, %v8170_v19, 0.0  ;;  %v8179_v33 = vpop.eup %6724 }
 0x8ae   : > { %2483 = vadd.xlane.f32.xlu0 %v2482_v11  ;;  %v2485_v34 = vsel %vm1132_vm3, %v8179_v33, 0.0 }
 0x8b4   : > { %2851 = vrot.lane.b32.xlu1 %v7854_v43, %s7280_s17  ;;  %v8183_v36 = vpop.eup %6726 }
 0x8b5   : > { %v2488_v60 = vsel %vm1132_vm3, %v8183_v36, 0.0 }
 0x8c4   : > { %2803 = vrot.lane.b32.xlu0 %v7849_v41, %s7280_s17  ;;  %s7289_s17 = smov 24  }
 0x8d8   : > { %2486 = vadd.xlane.f32.xlu1 %v2485_v34 }
 0x8e3   : > { %2489 = vadd.xlane.f32.xlu0 %v2488_v60 }
 0x8e9   : > { %2951 = vrot.lane.b32.xlu1 %v7843_v31, %s7281_s29 }
 0x8ed   : > { %2949 = vrot.lane.b32.xlu1 %v7843_v31, %s7282_s22 }
 0x8f1   : > { %3051 = vrot.lane.b32.xlu1 %v7841_v30, %s7281_s29 }
 0x8f5   : > { %3049 = vrot.lane.b32.xlu1 %v7841_v30, %s7282_s22 }
 0x8f9   : > { %3151 = vrot.lane.b32.xlu1 %v7852_v42, %s7281_s29  ;;  %2901 = vrot.lane.b32.xlu0 %v7837_v28, %s7281_s29 }
 0x8fd   : > { %3149 = vrot.lane.b32.xlu1 %v7852_v42, %s7282_s22  ;;  %2899 = vrot.lane.b32.xlu0 %v7837_v28, %s7282_s22 }
 0x901   : > { %3251 = vrot.lane.b32.xlu1 %v7854_v43, %s7281_s29  ;;  %3001 = vrot.lane.b32.xlu0 %v7835_v25, %s7281_s29 }
 0x905   : > { %3249 = vrot.lane.b32.xlu1 %v7854_v43, %s7282_s22  ;;  %2999 = vrot.lane.b32.xlu0 %v7835_v25, %s7282_s22 }
 0x909   : > { %3403 = vrot.lane.b32.xlu1 %v7837_v28, %s7283_s16  ;;  %3101 = vrot.lane.b32.xlu0 %v7847_v38, %s7281_s29 }
 0x90d   : > { %3499 = vrot.lane.b32.xlu1 %v7835_v25, %s7283_s16  ;;  %3099 = vrot.lane.b32.xlu0 %v7847_v38, %s7282_s22 }
 0x911   : > { %3547 = vrot.lane.b32.xlu1 %v7841_v30, %s7283_s16  ;;  %3201 = vrot.lane.b32.xlu0 %v7849_v41, %s7281_s29  ;;  %s8977_s29 = sld [smem:[#allocation42_spill]] }
 0x915   : > { %3199 = vrot.lane.b32.xlu0 %v7849_v41, %s7282_s22  ;;  %s5654_s22 = sshll.u32 %s7731_s21, 3 }
 0x919   : > { %3451 = vrot.lane.b32.xlu0 %v7843_v31, %s7283_s16 }
 0x920   : > { %v2469_v40 = vpop.xlane.xlu1 %2468 }
 0x921   : > { %6728 = vrcp.f32 %v2469_v40 }
 0x928   : > { %v2475_v47 = vpop.xlane.xlu1 %2474 }
 0x929   : > { %6730 = vrcp.f32 %v2475_v47 }
 0x92b   : > { %v6729_v46 = vpop.eup %6728  ;;  %v2472_v48 = vpop.xlane.xlu0 %2471 }
 0x92c   : > { %6732 = vrcp.f32 %v2472_v48  ;;  %v2499_v22 = vmul.f32 %v6729_v46, %v8150_v50 }
 0x92e   : > { %v2507_v54 = vpack.c.bf16 %v2499_v22, %v2499_v22 }
 0x930   : > { %6158 = vmatmul.mubr.msk.bf16.vlgmr.msra.gmra.mrb[44].mxu1 %vm1132_vm3, %v2507_v54  ;;  %v2481_v8 = vpop.xlane.xlu1 %2480 }
 0x931   : > { %6168 = vmatpush3.bf16.msra.mxu1 %v2617_v55  ;;  %6734 = vrcp.f32 %v2481_v8  ;;  %6169 = vmatprep.mubr.msk.bf16.mxu1 %vm7275_vm2, %v7274_v18 }
 0x932   : > { %6179 = vmatprep.subr.bf16.mxu1 %v7274_v18 }
 0x933   : > { %v6731_v56 = vpop.eup %6730  ;;  %v2478_v51 = vpop.xlane.xlu0 %2477 }
 0x934   : > { %6736 = vrcp.f32 %v2478_v51  ;;  %v2501_v2 = vmul.f32 %v6731_v56, %v8154_v7  ;;  %v2852_v23 = vpop.permute.xlu1 %2851 }
 0x935   : > { %v2857_v26 = vsel %vm1631_vm4, %v2852_v23, 0 }
 0x936   : > { %v6733_v50 = vpop.eup %6732  ;;  %v2509_v29 = vpack.c.bf16 %v2501_v2, %v2501_v2 }
 0x937   : > { %v2500_v5 = vmul.f32 %v6733_v50, %v8158_v4 }
 0x938   : > { %6170 = vmatmul.mubr.msk.bf16.vlgmr.msra.gmra.mrb[48].mxu1 %vm1132_vm3, %v2509_v29 }
 0x939   : > { %6180 = vmatpush3.bf16.msra.mxu1 %v2713_v27  ;;  %v2508_v6 = vpack.c.bf16 %v2500_v5, %v2500_v5  ;;  %6181 = vmatprep.mubr.msk.bf16.mxu1 %vm7275_vm2, %v7274_v18 }
 0x93a   : > { %6191 = vmatprep.subr.bf16.mxu1 %v7274_v18 }
 0x93b   : > { %v6735_v39 = vpop.eup %6734  ;;  %6164 = vmatmul.mubr.msk.bf16.vlgmr.msra.gmra.mrb[76].mxu0 %vm1132_vm3, %v2508_v6  ;;  %v2484_v7 = vpop.xlane.xlu0 %2483 }
 0x93c   : > { %6174 = vmatpush3.bf16.msra.mxu0 %v2665_v58  ;;  %6738 = vrcp.f32 %v2484_v7  ;;  %v2503_v4 = vmul.f32 %v6735_v39, %v8162_v13  ;;  %6175 = vmatprep.mubr.msk.bf16.mxu0 %vm7275_vm2, %v7274_v18  ;;  %v2761_v13 = vsel %vm1631_vm4, %v2756_v16, 0 }
 0x93d   : > { %6185 = vmatprep.subr.bf16.mxu0 %v7274_v18 }
 0x93e   : > { %v6737_v52 = vpop.eup %6736  ;;  %v2511_v17 = vpack.c.bf16 %v2503_v4, %v2503_v4 }
 0x93f   : > { %v2804_v11 = vpop.permute.xlu0 %2803  ;;  %v2502_v61 = vmul.f32 %v6737_v52, %v8166_v10 }
 0x940   : > { %v2809_v20 = vsel %vm1631_vm4, %v2804_v11, 0  ;;  %6182 = vmatmul.mubr.msk.bf16.vlgmr.msra.gmra.mrb[52].mxu1 %vm1132_vm3, %v2511_v17 }
 0x941   : > { %6192 = vmatpush3.bf16.msra.mxu1 %v2809_v20  ;;  %v2510_v35 = vpack.c.bf16 %v2502_v61, %v2502_v61  ;;  %6193 = vmatprep.mubr.msk.bf16.mxu1 %vm7275_vm2, %v7274_v18 }
 0x942   : > { %6203 = vmatprep.subr.bf16.mxu1 %v7274_v18 }
 0x943   : > { %6176 = vmatmul.mubr.msk.bf16.vlgmr.msra.gmra.mrb[80].mxu0 %vm1132_vm3, %v2510_v35 }
 0x944   : > { %6186 = vmatpush3.bf16.msra.mxu0 %v2761_v13  ;;  %6187 = vmatprep.mubr.msk.bf16.mxu0 %vm7275_vm2, %v7274_v18 }
 0x945   : > { %6197 = vmatprep.subr.bf16.mxu0 %v7274_v18 }
 0x946   : > { %v6739_v10 = vpop.eup %6738 }
 0x947   : > { %v2504_v21 = vmul.f32 %v6739_v10, %v8170_v19 }
 0x949   : > { %v2512_v24 = vpack.c.bf16 %v2504_v21, %v2504_v21 }
 0x94b   : > { %6188 = vmatmul.mubr.msk.bf16.vlgmr.msra.gmra.mrb[84].mxu0 %vm1132_vm3, %v2512_v24 }
 0x94c   : > { %6198 = vmatpush3.bf16.msra.mxu0 %v2857_v26  ;;  %6199 = vmatprep.mubr.msk.bf16.mxu0 %vm7275_vm2, %v7274_v18 }
 0x94d   : > { %6209 = vmatprep.subr.bf16.mxu0 %v7274_v18 }
 0x965   : > { %v2487_v34 = vpop.xlane.xlu1 %2486 }
 0x966   : > { %6740 = vrcp.f32 %v2487_v34 }
 0x969   : > { %v2952_v60 = vpop.permute.xlu1 %2951 }
 0x96a   : > { %v2957_v29 = vsel %vm1132_vm3, %v2952_v60, 0 }
 0x96d   : > { %v2950_v16 = vpop.permute.xlu1 %2949 }
 0x970   : > { %v6741_v40 = vpop.eup %6740  ;;  %v2490_v44 = vpop.xlane.xlu0 %2489 }
 0x971   : > { %6742 = vrcp.f32 %v2490_v44  ;;  %v3052_v19 = vpop.permute.xlu1 %3051  ;;  %v2505_v47 = vmul.f32 %v6741_v40, %v8179_v33 }
 0x972   : > { %v3057_v58 = vsel %vm1132_vm3, %v3052_v19, 0 }
 0x973   : > { %v2513_v46 = vpack.c.bf16 %v2505_v47, %v2505_v47 }
 0x974   : > { %v2902_v48 = vpop.permute.xlu0 %2901 }
 0x975   : > { %v2907_v22 = vsel %vm1132_vm3, %v2902_v48, 0  ;;  %v3050_v54 = vpop.permute.xlu1 %3049  ;;  %6194 = vmatmul.mubr.msk.bf16.vlgmr.msra.gmra.mrb[56].mxu1 %vm1132_vm3, %v2513_v46 }
 0x976   : > { %6204 = vmatpush3.bf16.xpose.msra.mxu1 %v2907_v22  ;;  %6205 = vmatprep.mubr.msk.bf16.mxu1 %vm7275_vm2, %v7274_v18 }
 0x977   : > { %6215 = vmatprep.subr.bf16.mxu1 %v7274_v18 }
 0x978   : > { %v2900_v55 = vpop.permute.xlu0 %2899 }
 0x979   : > { %v3152_v8 = vpop.permute.xlu1 %3151 }
 0x97a   : > { %v3157_v11 = vsel %vm1132_vm3, %v3152_v8, 0 }
 0x97b   : > { %v6743_v56 = vpop.eup %6742 }
 0x97c   : > { %v3002_v51 = vpop.permute.xlu0 %3001  ;;  %v2506_v2 = vmul.f32 %v6743_v56, %v8183_v36 }
 0x97d   : > { %v3007_v33 = vsel %vm1132_vm3, %v3002_v51, 0  ;;  %6206 = vmatmul.mubr.msk.bf16.vlgmr.msra.gmra.mrb[60].mxu1 %vm1132_vm3, %v2900_v55  ;;  %v3150_v5 = vpop.permute.xlu1 %3149 }
 0x97e   : > { %6216 = vmatpush3.bf16.xpose.msra.mxu1 %v3007_v33  ;;  %v2514_v50 = vpack.c.bf16 %v2506_v2, %v2506_v2  ;;  %6217 = vmatprep.mubr.msk.bf16.mxu1 %vm7275_vm2, %v7274_v18 }
 0x97f   : > { %6227 = vmatprep.subr.bf16.mxu1 %v7274_v18 }
 0x980   : > { %6200 = vmatmul.mubr.msk.bf16.vlgmr.msra.gmra.mrb[88].mxu0 %vm1132_vm3, %v2514_v50  ;;  %v3000_v27 = vpop.permute.xlu0 %2999 }
 0x981   : > { %6210 = vmatpush3.bf16.xpose.msra.mxu0 %v2957_v29  ;;  %6211 = vmatprep.mubr.msk.bf16.mxu0 %vm7275_vm2, %v7274_v18  ;;  %v3252_v39 = vpop.permute.xlu1 %3251 }
 0x982   : > { %6221 = vmatprep.subr.bf16.mxu0 %v7274_v18  ;;  %v3257_v13 = vsel %vm1132_vm3, %v3252_v39, 0 }
 0x984   : > { %v3102_v36 = vpop.permute.xlu0 %3101 }
 0x985   : > { %v3107_v6 = vsel %vm1132_vm3, %v3102_v36, 0  ;;  %6218 = vmatmul.mubr.msk.bf16.vlgmr.msra.gmra.mrb[64].mxu1 %vm1132_vm3, %v3000_v27  ;;  %v3250_v4 = vpop.permute.xlu1 %3249 }
 0x986   : > { %6228 = vmatpush3.bf16.xpose.msra.mxu1 %v3107_v6  ;;  %6229 = vmatprep.mubr.msk.bf16.mxu1 %vm7275_vm2, %v7274_v18 }
 0x987   : > { %6239 = vmatprep.subr.bf16.mxu1 %v7274_v18 }
 0x988   : > { %6212 = vmatmul.mubr.msk.bf16.vlgmr.msra.gmra.mrb[92].mxu0 %vm1132_vm3, %v2950_v16  ;;  %v3100_v7 = vpop.permute.xlu0 %3099 }
 0x989   : > { %6222 = vmatpush3.bf16.xpose.msra.mxu0 %v3057_v58  ;;  %6223 = vmatprep.mubr.msk.bf16.mxu0 %vm7275_vm2, %v7274_v18  ;;  %v3404_v61 = vpop.permute.xlu1 %3403 }
 0x98a   : > { %6233 = vmatprep.subr.bf16.mxu0 %v7274_v18  ;;  %v3409_v35 = vsel %vm1631_vm4, %v3404_v61, 0 }
 0x98c   : > { %v3202_v52 = vpop.permute.xlu0 %3201 }
 0x98d   : > { %v3207_v17 = vsel %vm1132_vm3, %v3202_v52, 0  ;;  %6230 = vmatmul.mubr.msk.bf16.vlgmr.msra.gmra.mrb[68].mxu1 %vm1132_vm3, %v3100_v7 }
 0x98e   : > { %6240 = vmatpush3.bf16.xpose.msra.mxu1 %v3207_v17  ;;  %6241 = vmatprep.mubr.msk.bf16.mxu1 %vm7275_vm2, %v7274_v18 }
 0x98f   : > { %6251 = vmatprep.subr.bf16.mxu1 %v7274_v18 }
 0x990   : > { %6224 = vmatmul.mubr.msk.bf16.vlgmr.msra.gmra.mrb[96].mxu0 %vm1132_vm3, %v3050_v54  ;;  %v3200_v20 = vpop.permute.xlu0 %3199 }
 0x991   : > { %6234 = vmatpush3.bf16.xpose.msra.mxu0 %v3157_v11  ;;  %6235 = vmatprep.mubr.msk.bf16.mxu0 %vm7275_vm2, %v7274_v18 }
 0x992   : > { %6245 = vmatprep.subr.bf16.mxu0 %v7274_v18 }
 0x994   : > { %v3452_v10 = vpop.permute.xlu0 %3451 }
 0x995   : > { %6242 = vmatmul.mubr.msk.bf16.vlgmr.msra.gmra.mrb[72].mxu1 %vm1132_vm3, %v3200_v20  ;;  %v3457_v21 = vsel %vm1631_vm4, %v3452_v10, 0 }
 0x996   : > { %6252 = vmatpush3.bf16.msra.mxu1 %v3409_v35  ;;  %6253 = vmatprep.mubr.msk.bf16.mxu1 %vm7275_vm2, %v7274_v18 }
 0x997   : > { %6263 = vmatprep.subr.bf16.mxu1 %v7274_v18 }
 0x998   : > { %6236 = vmatmul.mubr.msk.bf16.vlgmr.msra.gmra.mrb[100].mxu0 %vm1132_vm3, %v3150_v5 }
 0x999   : > { %6246 = vmatpush3.bf16.xpose.msra.mxu0 %v3257_v13  ;;  %6247 = vmatprep.mubr.msk.bf16.mxu0 %vm7275_vm2, %v7274_v18 }
 0x99a   : > { %6257 = vmatprep.subr.bf16.mxu0 %v7274_v18 }
 0x9a0   : > { %6248 = vmatmul.mubr.msk.bf16.vlgmr.msra.gmra.mrb[104].mxu0 %vm1132_vm3, %v3250_v4 }
 0x9a1   : > { %6258 = vmatpush3.bf16.msra.mxu0 %v3457_v21  ;;  %6259 = vmatprep.mubr.msk.bf16.mxu0 %vm7275_vm2, %v7274_v18 }
 0x9a2   : > { %6269 = vmatprep.subr.bf16.mxu0 %v7274_v18 }
 0xa03   : > { %v8301_v23 = vpop.f32.mrb[44].mxu1 }
 0xa04   : > { %v6159_v24 = vpop.f32.mrb[45].mxu1 }
 0xa05   : > { %v2560_v26 = vpop.f32.mrb[46].mxu1 }
 0xa06   : > { %v6160_v34 = vpop.f32.mrb[47].mxu1 }
 0xa0b   : > { %v8303_v60 = vpop.f32.mrb[48].mxu1 }
 0xa0c   : > { %v6171_v16 = vpop.f32.mrb[49].mxu1 }
 0xa0d   : > { %v2656_v40 = vpop.f32.mrb[50].mxu1 }
 0xa0e   : > { %v8305_v44 = vpop.f32.mrb[76].mxu0  ;;  %v6172_v19 = vpop.f32.mrb[51].mxu1 }
 0xa0f   : > { %v6165_v46 = vpop.f32.mrb[77].mxu0 }
 0xa10   : > { %v2608_v48 = vpop.f32.mrb[78].mxu0 }
 0xa11   : > { %v6166_v22 = vpop.f32.mrb[79].mxu0 }
 0xa13   : > { %v8309_v54 = vpop.f32.mrb[52].mxu1 }
 0xa14   : > { %v6183_v55 = vpop.f32.mrb[53].mxu1 }
 0xa15   : > { %v2752_v8 = vpop.f32.mrb[54].mxu1 }
 0xa16   : > { %v8311_v56 = vpop.f32.mrb[80].mxu0  ;;  %v6184_v51 = vpop.f32.mrb[55].mxu1 }
 0xa17   : > { %v6590_v2 = vpack.i.bf16 %v8311_v56, %v8303_v60  ;;  %v6177_v33 = vpop.f32.mrb[81].mxu0 }
 0xa18   : > { %v2704_v50 = vpop.f32.mrb[82].mxu0 }
 0xa19   : > { %v6178_v29 = vpop.f32.mrb[83].mxu0 }
 0xa1e   : > { %v8315_v5 = vpop.f32.mrb[84].mxu0 }
 0xa1f   : > { %v6189_v36 = vpop.f32.mrb[85].mxu0  ;;  %v8971_v56 = vpack.i.bf16 %v8315_v5, %v8309_v54 }
 0xa20   : > { %v2800_v6 = vpop.f32.mrb[86].mxu0 }
 0xa21   : > { %v6190_v39 = vpop.f32.mrb[87].mxu0 }
 0xa48   : > { %v8319_v58 = vpop.f32.mrb[56].mxu1 }
 0xa49   : > { %v6195_v7 = vpop.f32.mrb[57].mxu1 }
 0xa4a   : > { %v2848_v4 = vpop.f32.mrb[58].mxu1 }
 0xa4b   : > { %v6196_v52 = vpop.f32.mrb[59].mxu1 }
 0xa50   : > { %v2943_v17 = vpop.f32.mrb[60].mxu1 }
 0xa51   : > { %v8321_v11 = vmul.f32 0.35355338, %v2943_v17  ;;  %v6207_v61 = vpop.f32.mrb[61].mxu1 }
 0xa52   : > { %v2946_v20 = vpop.f32.mrb[62].mxu1 }
 0xa53   : > { %v8323_v35 = vpop.f32.mrb[88].mxu0  ;;  %v6208_v13 = vpop.f32.mrb[63].mxu1  ;;  %v3307_v10 = vsel %vm1132_vm3, %v8321_v11, -inf }
 0xa54   : > { %v6610_v21 = vpack.i.bf16 %v8323_v35, %v8319_v58  ;;  %v6201_v24 = vpop.f32.mrb[89].mxu0  ;;  %3308 = vmax.xlane.f32.xlu0 %v3307_v10 }
 0xa55   : > { %v2896_v26 = vpop.f32.mrb[90].mxu0 }
 0xa56   : > { %v6202_v34 = vpop.f32.mrb[91].mxu0 }
 0xa58   : > { %v3043_v16 = vpop.f32.mrb[64].mxu1 }
 0xa59   : > { %v3301_v40 = vmul.f32 0.35355338, %v3043_v16  ;;  %v6219_v19 = vpop.f32.mrb[65].mxu1 }
 0xa5a   : > { %v3046_v46 = vpop.f32.mrb[66].mxu1 }
 0xa5b   : > { %v2993_v48 = vpop.f32.mrb[92].mxu0  ;;  %v6220_v22 = vpop.f32.mrb[67].mxu1  ;;  %v3313_v55 = vsel %vm1132_vm3, %v3301_v40, -inf }
 0xa5c   : > { %v3300_v8 = vmul.f32 0.35355338, %v2993_v48  ;;  %v6213_v51 = vpop.f32.mrb[93].mxu0  ;;  %3314 = vmax.xlane.f32.xlu0 %v3313_v55 }
 0xa5d   : > { %v2996_v33 = vpop.f32.mrb[94].mxu0 }
 0xa5e   : > { %v6214_v50 = vpop.f32.mrb[95].mxu0  ;;  %v3310_v29 = vsel %vm1132_vm3, %v3300_v8, -inf }
 0xa5f   : > { %3311 = vmax.xlane.f32.xlu1 %v3310_v29 }
 0xa60   : > { %v3143_v36 = vpop.f32.mrb[68].mxu1 }
 0xa61   : > { %v3303_v6 = vmul.f32 0.35355338, %v3143_v36  ;;  %v6231_v39 = vpop.f32.mrb[69].mxu1 }
 0xa62   : > { %v3146_v7 = vpop.f32.mrb[70].mxu1 }
 0xa63   : > { %v3093_v4 = vpop.f32.mrb[96].mxu0  ;;  %v6232_v52 = vpop.f32.mrb[71].mxu1  ;;  %v3319_v17 = vsel %vm1132_vm3, %v3303_v6, -inf }
 0xa64   : > { %v3302_v61 = vmul.f32 0.35355338, %v3093_v4  ;;  %v6225_v20 = vpop.f32.mrb[97].mxu0  ;;  %3320 = vmax.xlane.f32.xlu1 %v3319_v17 }
 0xa65   : > { %v3096_v13 = vpop.f32.mrb[98].mxu0 }
 0xa66   : > { %v6226_v10 = vpop.f32.mrb[99].mxu0  ;;  %v3316_v24 = vsel %vm1132_vm3, %v3302_v61, -inf  ;;  %v8343_v13 = vpop.permute.xlu1 %3499 }
 0xa67   : > { %3317 = vmax.xlane.f32.xlu0 %v3316_v24 }
 0xa68   : > { %v3243_v26 = vpop.f32.mrb[72].mxu1 }
 0xa69   : > { %v8333_v34 = vmul.f32 0.35355338, %v3243_v26  ;;  %v6243_v16 = vpop.f32.mrb[73].mxu1 }
 0xa6a   : > { %v3246_v19 = vpop.f32.mrb[74].mxu1  ;;  %v8346_v26 = vpop.permute.xlu1 %3547 }
 0xa6b   : > { %v3193_v46 = vpop.f32.mrb[100].mxu0  ;;  %v6244_v48 = vpop.f32.mrb[75].mxu1  ;;  %v3325_v22 = vsel %vm1132_vm3, %v8333_v34, -inf }
 0xa6c   : > { %v3304_v55 = vmul.f32 0.35355338, %v3193_v46  ;;  %v6237_v51 = vpop.f32.mrb[101].mxu0  ;;  %3326 = vmax.xlane.f32.xlu1 %v3325_v22 }
 0xa6d   : > { %v3196_v33 = vpop.f32.mrb[102].mxu0 }
 0xa6e   : > { %v6238_v50 = vpop.f32.mrb[103].mxu0  ;;  %v3322_v29 = vsel %vm1132_vm3, %v3304_v55, -inf }
 0xa6f   : > { %3323 = vmax.xlane.f32.xlu0 %v3322_v29 }
 0xa73   : > { %v3293_v36 = vpop.f32.mrb[104].mxu0 }
 0xa74   : > { %v3306_v39 = vmul.f32 0.35355338, %v3293_v36  ;;  %v6249_v7 = vpop.f32.mrb[105].mxu0 }
 0xa75   : > { %v3296_v4 = vpop.f32.mrb[106].mxu0 }
 0xa76   : > { %v6250_v52 = vpop.f32.mrb[107].mxu0  ;;  %v3328_v17 = vsel %vm1132_vm3, %v3306_v39, -inf }
 0xa77   : > { %3329 = vmax.xlane.f32.xlu0 %v3328_v17 }
 0xa7d   : > { %3643 = vrot.lane.b32.xlu1 %v7852_v42, %s7283_s16 }
 0xa8d   : > { %3595 = vrot.lane.b32.xlu0 %v7847_v38, %s7283_s16 }
 0xae1   : > { %v3309_v20 = vpop.xlane.xlu0 %3308 }
 0xae2   : > { %v3331_v10 = vsub.f32 %v8321_v11, %v3309_v20 }
 0xae4   : > { %v3339_v24 = vmul.f32 1.442695, %v3331_v10 }
 0xae6   : > { %6744 = vpow2.f32 %v3339_v24 }
 0xae9   : > { %v3315_v16 = vpop.xlane.xlu0 %3314 }
 0xaea   : > { %v3333_v19 = vsub.f32 %v3301_v40, %v3315_v16 }
 0xaec   : > { %v3343_v46 = vmul.f32 1.442695, %v3333_v19  ;;  %v3312_v48 = vpop.xlane.xlu1 %3311 }
 0xaed   : > { %v3332_v22 = vsub.f32 %v3300_v8, %v3312_v48 }
 0xaee   : > { %6746 = vpow2.f32 %v3343_v46 }
 0xaef   : > { %v3341_v51 = vmul.f32 1.442695, %v3332_v22 }
 0xaf0   : > { %v8348_v33 = vpop.eup %6744 }
 0xaf1   : > { %6748 = vpow2.f32 %v3341_v51  ;;  %v3321_v50 = vpop.xlane.xlu1 %3320  ;;  %v3355_v29 = vsel %vm1132_vm3, %v8348_v33, 0.0 }
 0xaf2   : > { %v3335_v36 = vsub.f32 %v3303_v6, %v3321_v50  ;;  %3356 = vadd.xlane.f32.xlu1 %v3355_v29 }
 0xaf4   : > { %v3347_v11 = vmul.f32 1.442695, %v3335_v36  ;;  %v3318_v7 = vpop.xlane.xlu0 %3317 }
 0xaf5   : > { %v3334_v4 = vsub.f32 %v3302_v61, %v3318_v7 }
 0xaf6   : > { %6750 = vpow2.f32 %v3347_v11 }
 0xaf7   : > { %v3345_v52 = vmul.f32 1.442695, %v3334_v4 }
 0xaf8   : > { %v8352_v40 = vpop.eup %6746 }
 0xaf9   : > { %6752 = vpow2.f32 %v3345_v52  ;;  %v3361_v8 = vsel %vm1132_vm3, %v8352_v40, 0.0  ;;  %v3327_v22 = vpop.xlane.xlu1 %3326 }
 0xafa   : > { %3362 = vadd.xlane.f32.xlu1 %v3361_v8  ;;  %v3337_v51 = vsub.f32 %v8333_v34, %v3327_v22 }
 0xafb   : > { %v8356_v17 = vpop.eup %6748 }
 0xafc   : > { %v3324_v20 = vpop.xlane.xlu0 %3323  ;;  %v3358_v10 = vsel %vm1132_vm3, %v8356_v17, 0.0  ;;  %v3351_v50 = vmul.f32 1.442695, %v3337_v51 }
 0xafd   : > { %v3336_v6 = vsub.f32 %v3304_v55, %v3324_v20  ;;  %3359 = vadd.xlane.f32.xlu0 %v3358_v10 }
 0xaff   : > { %v3349_v24 = vmul.f32 1.442695, %v3336_v6 }
 0xb00   : > { %v8360_v16 = vpop.eup %6750 }
 0xb01   : > { %6754 = vpow2.f32 %v3349_v24  ;;  %v3367_v61 = vsel %vm1132_vm3, %v8360_v16, 0.0 }
 0xb02   : > { %3368 = vadd.xlane.f32.xlu1 %v3367_v61  ;;  %6756 = vpow2.f32 %v3351_v50 }
 0xb03   : > { %v8364_v19 = vpop.eup %6752 }
 0xb04   : > { %v3364_v46 = vsel %vm1132_vm3, %v8364_v19, 0.0  ;;  %v3330_v29 = vpop.xlane.xlu0 %3329 }
 0xb05   : > { %3365 = vadd.xlane.f32.xlu0 %v3364_v46  ;;  %v3338_v36 = vsub.f32 %v3306_v39, %v3330_v29  ;;  %v3644_v39 = vpop.permute.xlu1 %3643  ;;  %v3505_v46 = vsel %vm1631_vm4, %v8343_v13, 0 }
 0xb07   : > { %v3353_v11 = vmul.f32 1.442695, %v3338_v36 }
 0xb08   : > { %v3596_v20 = vpop.permute.xlu0 %3595 }
 0xb09   : > { %6758 = vpow2.f32 %v3353_v11  ;;  %v3601_v13 = vsel %vm1631_vm4, %v3596_v20, 0 }
 0xb0b   : > { %v8368_v48 = vpop.eup %6754 }
 0xb0c   : > { %v3370_v55 = vsel %vm1132_vm3, %v8368_v48, 0.0  ;;  %v8377_v7 = vpop.eup %6756 }
 0xb0d   : > { %3371 = vadd.xlane.f32.xlu0 %v3370_v55  ;;  %v3373_v4 = vsel %vm1132_vm3, %v8377_v7, 0.0 }
 0xb13   : > { %3739 = vrot.lane.b32.xlu1 %v7854_v43, %s7283_s16  ;;  %v8381_v52 = vpop.eup %6758 }
 0xb14   : > { %v3376_v34 = vsel %vm1132_vm3, %v8381_v52, 0.0 }
 0xb23   : > { %3691 = vrot.lane.b32.xlu0 %v7849_v41, %s7283_s16  ;;  %s8974_s16 = sld [smem:[#allocation40_spill]] }
 0xb37   : > { %3374 = vadd.xlane.f32.xlu1 %v3373_v4 }
 0xb42   : > { %3377 = vadd.xlane.f32.xlu0 %v3376_v34 }
 0xb48   : > { %3839 = vrot.lane.b32.xlu1 %v7843_v31, %s7284_s4 }
 0xb4c   : > { %3837 = vrot.lane.b32.xlu1 %v7843_v31, %s7285_s13 }
 0xb50   : > { %3939 = vrot.lane.b32.xlu1 %v7841_v30, %s7284_s4 }
 0xb54   : > { %3937 = vrot.lane.b32.xlu1 %v7841_v30, %s7285_s13 }
 0xb58   : > { %4039 = vrot.lane.b32.xlu1 %v7852_v42, %s7284_s4  ;;  %3789 = vrot.lane.b32.xlu0 %v7837_v28, %s7284_s4 }
 0xb5c   : > { %4037 = vrot.lane.b32.xlu1 %v7852_v42, %s7285_s13  ;;  %3787 = vrot.lane.b32.xlu0 %v7837_v28, %s7285_s13 }
 0xb60   : > { %4139 = vrot.lane.b32.xlu1 %v7854_v43, %s7284_s4  ;;  %3889 = vrot.lane.b32.xlu0 %v7835_v25, %s7284_s4 }
 0xb64   : > { %4137 = vrot.lane.b32.xlu1 %v7854_v43, %s7285_s13  ;;  %3887 = vrot.lane.b32.xlu0 %v7835_v25, %s7285_s13 }
 0xb68   : > { %4291 = vrot.lane.b32.xlu1 %v7837_v28, %s7286_s19  ;;  %3989 = vrot.lane.b32.xlu0 %v7847_v38, %s7284_s4 }
 0xb6c   : > { %3987 = vrot.lane.b32.xlu0 %v7847_v38, %s7285_s13 }
 0xb70   : > { %4089 = vrot.lane.b32.xlu0 %v7849_v41, %s7284_s4  ;;  %s726_s4 = scalar_select %p725_p2, %s8955_s30, 1 }
 0xb74   : > { %4087 = vrot.lane.b32.xlu0 %v7849_v41, %s7285_s13  ;;  %s5655_s13 = sshll.u32 %s726_s4, 3  ;;  %s5778_s4 = sshll.u32 %s8955_s30, 7 }
 0xb75   : > { %s728_s6 = scalar_lea.vmem %s8976_s5, %s5655_s13  ;;  %s723_s13 = scalar_lea.vmem [#allocation22], %s5654_s22 }
 0xb76   : > { %s7291_s30 = smov [#allocation22]  }
 0xb77   : > { %s7170_s22 = sshll.u32 %s7291_s30, 4  ;;  %s7171_s22 = int_to_ptr.vmem [resolvable:$false] %s7170_s22 }
 0xb7f   : > { %v3357_v8 = vpop.xlane.xlu1 %3356 }
 0xb80   : > { %6760 = vrcp.f32 %v3357_v8 }
 0xb87   : > { %v3363_v10 = vpop.xlane.xlu1 %3362 }
 0xb88   : > { %6762 = vrcp.f32 %v3363_v10 }
 0xb8a   : > { %v6761_v6 = vpop.eup %6760  ;;  %v3360_v24 = vpop.xlane.xlu0 %3359 }
 0xb8b   : > { %v3387_v61 = vmul.f32 %v6761_v6, %v8348_v33  ;;  %6764 = vrcp.f32 %v3360_v24 }
 0xb8d   : > { %v3395_v28 = vpack.c.bf16 %v3387_v61, %v3387_v61 }
 0xb8f   : > { %6254 = vmatmul.mubr.msk.bf16.vlgmr.msra.gmra.mrb[76].mxu1 %vm1132_vm3, %v3395_v28  ;;  %v3369_v55 = vpop.xlane.xlu1 %3368 }
 0xb90   : > { %6264 = vmatpush3.bf16.msra.mxu1 %v3505_v46  ;;  %6766 = vrcp.f32 %v3369_v55  ;;  %6265 = vmatprep.mubr.msk.bf16.mxu1 %vm7275_vm2, %v7274_v18 }
 0xb91   : > { %6275 = vmatprep.subr.bf16.mxu1 %v7274_v18 }
 0xb92   : > { %v6763_v22 = vpop.eup %6762  ;;  %v3366_v51 = vpop.xlane.xlu0 %3365 }
 0xb93   : > { %v3389_v50 = vmul.f32 %v6763_v22, %v8352_v40  ;;  %6768 = vrcp.f32 %v3366_v51  ;;  %v3553_v40 = vsel %vm1631_vm4, %v8346_v26, 0  ;;  %v3740_v28 = vpop.permute.xlu1 %3739 }
 0xb94   : > { %v3745_v55 = vsel %vm1631_vm4, %v3740_v28, 0 }
 0xb95   : > { %v6765_v33 = vpop.eup %6764  ;;  %v3397_v29 = vpack.c.bf16 %v3389_v50, %v3389_v50 }
 0xb96   : > { %v3388_v36 = vmul.f32 %v6765_v33, %v8356_v17 }
 0xb97   : > { %6266 = vmatmul.mubr.msk.bf16.vlgmr.msra.gmra.mrb[80].mxu1 %vm1132_vm3, %v3397_v29 }
 0xb98   : > { %6276 = vmatpush3.bf16.msra.mxu1 %v3601_v13  ;;  %v3396_v11 = vpack.c.bf16 %v3388_v36, %v3388_v36  ;;  %6277 = vmatprep.mubr.msk.bf16.mxu1 %vm7275_vm2, %v7274_v18 }
 0xb99   : > { %6287 = vmatprep.subr.bf16.mxu1 %v7274_v18 }
 0xb9a   : > { %v6767_v4 = vpop.eup %6766  ;;  %6260 = vmatmul.mubr.msk.bf16.vlgmr.msra.gmra.mrb[108].mxu0 %vm1132_vm3, %v3396_v11  ;;  %v3372_v34 = vpop.xlane.xlu0 %3371 }
 0xb9b   : > { %v3391_v17 = vmul.f32 %v6767_v4, %v8360_v16  ;;  %6270 = vmatpush3.bf16.msra.mxu0 %v3553_v40  ;;  %6770 = vrcp.f32 %v3372_v34  ;;  %6271 = vmatprep.mubr.msk.bf16.mxu0 %vm7275_vm2, %v7274_v18  ;;  %v3649_v16 = vsel %vm1631_vm4, %v3644_v39, 0 }
 0xb9c   : > { %6281 = vmatprep.subr.bf16.mxu0 %v7274_v18 }
 0xb9d   : > { %v6769_v8 = vpop.eup %6768  ;;  %v3399_v20 = vpack.c.bf16 %v3391_v17, %v3391_v17 }
 0xb9e   : > { %v3390_v10 = vmul.f32 %v6769_v8, %v8364_v19  ;;  %v3692_v6 = vpop.permute.xlu0 %3691 }
 0xb9f   : > { %v3697_v24 = vsel %vm1631_vm4, %v3692_v6, 0  ;;  %6278 = vmatmul.mubr.msk.bf16.vlgmr.msra.gmra.mrb[84].mxu1 %vm1132_vm3, %v3399_v20 }
 0xba0   : > { %6288 = vmatpush3.bf16.msra.mxu1 %v3697_v24  ;;  %v3398_v26 = vpack.c.bf16 %v3390_v10, %v3390_v10  ;;  %6289 = vmatprep.mubr.msk.bf16.mxu1 %vm7275_vm2, %v7274_v18 }
 0xba1   : > { %6299 = vmatprep.subr.bf16.mxu1 %v7274_v18 }
 0xba2   : > { %6272 = vmatmul.mubr.msk.bf16.vlgmr.msra.gmra.mrb[112].mxu0 %vm1132_vm3, %v3398_v26 }
 0xba3   : > { %6282 = vmatpush3.bf16.msra.mxu0 %v3649_v16  ;;  %6283 = vmatprep.mubr.msk.bf16.mxu0 %vm7275_vm2, %v7274_v18 }
 0xba4   : > { %6293 = vmatprep.subr.bf16.mxu0 %v7274_v18 }
 0xba5   : > { %v6771_v19 = vpop.eup %6770 }
 0xba6   : > { %v3392_v61 = vmul.f32 %v6771_v19, %v8368_v48 }
 0xba8   : > { %v3400_v46 = vpack.c.bf16 %v3392_v61, %v3392_v61 }
 0xbaa   : > { %6284 = vmatmul.mubr.msk.bf16.vlgmr.msra.gmra.mrb[116].mxu0 %vm1132_vm3, %v3400_v46 }
 0xbab   : > { %6294 = vmatpush3.bf16.msra.mxu0 %v3745_v55  ;;  %6295 = vmatprep.mubr.msk.bf16.mxu0 %vm7275_vm2, %v7274_v18 }
 0xbac   : > { %6305 = vmatprep.subr.bf16.mxu0 %v7274_v18 }
 0xbc4   : > { %v3375_v39 = vpop.xlane.xlu1 %3374 }
 0xbc5   : > { %6772 = vrcp.f32 %v3375_v39 }
 0xbc8   : > { %v3840_v22 = vpop.permute.xlu1 %3839 }
 0xbc9   : > { %v3845_v6 = vsel %vm1132_vm3, %v3840_v22, 0 }
 0xbcc   : > { %v3838_v51 = vpop.permute.xlu1 %3837 }
 0xbcf   : > { %v6773_v50 = vpop.eup %6772  ;;  %v3378_v33 = vpop.xlane.xlu0 %3377 }
 0xbd0   : > { %v3393_v48 = vmul.f32 %v6773_v50, %v8377_v7  ;;  %6774 = vrcp.f32 %v3378_v33  ;;  %v3940_v29 = vpop.permute.xlu1 %3939 }
 0xbd1   : > { %v3945_v61 = vsel %vm1132_vm3, %v3940_v29, 0 }
 0xbd2   : > { %v3401_v36 = vpack.c.bf16 %v3393_v48, %v3393_v48 }
 0xbd3   : > { %v3790_v13 = vpop.permute.xlu0 %3789 }
 0xbd4   : > { %v3795_v11 = vsel %vm1132_vm3, %v3790_v13, 0  ;;  %v3938_v4 = vpop.permute.xlu1 %3937  ;;  %6290 = vmatmul.mubr.msk.bf16.vlgmr.msra.gmra.mrb[88].mxu1 %vm1132_vm3, %v3401_v36 }
 0xbd5   : > { %6300 = vmatpush3.bf16.xpose.msra.mxu1 %v3795_v11  ;;  %6301 = vmatprep.mubr.msk.bf16.mxu1 %vm7275_vm2, %v7274_v18 }
 0xbd6   : > { %6311 = vmatprep.subr.bf16.mxu1 %v7274_v18 }
 0xbd7   : > { %v3788_v40 = vpop.permute.xlu0 %3787 }
 0xbd8   : > { %v4040_v34 = vpop.permute.xlu1 %4039 }
 0xbd9   : > { %v4045_v22 = vsel %vm1132_vm3, %v4040_v34, 0 }
 0xbda   : > { %v6775_v17 = vpop.eup %6774 }
 0xbdb   : > { %v3394_v7 = vmul.f32 %v6775_v17, %v8381_v52  ;;  %v3890_v8 = vpop.permute.xlu0 %3889 }
 0xbdc   : > { %v3895_v20 = vsel %vm1132_vm3, %v3890_v8, 0  ;;  %6302 = vmatmul.mubr.msk.bf16.vlgmr.msra.gmra.mrb[92].mxu1 %vm1132_vm3, %v3788_v40  ;;  %v4038_v24 = vpop.permute.xlu1 %4037 }
 0xbdd   : > { %6312 = vmatpush3.bf16.xpose.msra.mxu1 %v3895_v20  ;;  %v3402_v10 = vpack.c.bf16 %v3394_v7, %v3394_v7  ;;  %6313 = vmatprep.mubr.msk.bf16.mxu1 %vm7275_vm2, %v7274_v18 }
 0xbde   : > { %6323 = vmatprep.subr.bf16.mxu1 %v7274_v18 }
 0xbdf   : > { %6296 = vmatmul.mubr.msk.bf16.vlgmr.msra.gmra.mrb[120].mxu0 %vm1132_vm3, %v3402_v10  ;;  %v3888_v26 = vpop.permute.xlu0 %3887 }
 0xbe0   : > { %6306 = vmatpush3.bf16.xpose.msra.mxu0 %v3845_v6  ;;  %6307 = vmatprep.mubr.msk.bf16.mxu0 %vm7275_vm2, %v7274_v18  ;;  %v4140_v19 = vpop.permute.xlu1 %4139 }
 0xbe1   : > { %6317 = vmatprep.subr.bf16.mxu0 %v7274_v18  ;;  %v4145_v48 = vsel %vm1132_vm3, %v4140_v19, 0 }
 0xbe3   : > { %v3990_v52 = vpop.permute.xlu0 %3989 }
 0xbe4   : > { %v3995_v16 = vsel %vm1132_vm3, %v3990_v52, 0  ;;  %6314 = vmatmul.mubr.msk.bf16.vlgmr.msra.gmra.mrb[96].mxu1 %vm1132_vm3, %v3888_v26  ;;  %v4138_v46 = vpop.permute.xlu1 %4137 }
 0xbe5   : > { %6324 = vmatpush3.bf16.xpose.msra.mxu1 %v3995_v16  ;;  %6325 = vmatprep.mubr.msk.bf16.mxu1 %vm7275_vm2, %v7274_v18 }
 0xbe6   : > { %6335 = vmatprep.subr.bf16.mxu1 %v7274_v18 }
 0xbe7   : > { %6308 = vmatmul.mubr.msk.bf16.vlgmr.msra.gmra.mrb[124].mxu0 %vm1132_vm3, %v3838_v51  ;;  %v3988_v28 = vpop.permute.xlu0 %3987 }
 0xbe8   : > { %6318 = vmatpush3.bf16.xpose.msra.mxu0 %v3945_v61  ;;  %6319 = vmatprep.mubr.msk.bf16.mxu0 %vm7275_vm2, %v7274_v18  ;;  %v4292_v51 = vpop.permute.xlu1 %4291 }
 0xbe9   : > { %6329 = vmatprep.subr.bf16.mxu0 %v7274_v18  ;;  %v4297_v33 = vsel %vm1631_vm4, %v4292_v51, 0 }
 0xbeb   : > { %v4090_v55 = vpop.permute.xlu0 %4089 }
 0xbec   : > { %v4095_v39 = vsel %vm1132_vm3, %v4090_v55, 0  ;;  %6326 = vmatmul.mubr.msk.bf16.vlgmr.msra.gmra.mrb[100].mxu1 %vm1132_vm3, %v3988_v28 }
 0xbed   : > { %6336 = vmatpush3.bf16.xpose.msra.mxu1 %v4095_v39  ;;  %6337 = vmatprep.mubr.msk.bf16.mxu1 %vm7275_vm2, %v7274_v18 }
 0xbee   : > { %6347 = vmatprep.subr.bf16.mxu1 %v7274_v18 }
 0xbef   : > { %6320 = vmatmul.mubr.msk.bf16.vlgmr.msra.gmra.mrb[128].mxu0 %vm1132_vm3, %v3938_v4  ;;  %v4088_v50 = vpop.permute.xlu0 %4087 }
 0xbf0   : > { %6330 = vmatpush3.bf16.xpose.msra.mxu0 %v4045_v22  ;;  %6331 = vmatprep.mubr.msk.bf16.mxu0 %vm7275_vm2, %v7274_v18 }
 0xbf1   : > { %6341 = vmatprep.subr.bf16.mxu0 %v7274_v18 }
 0xbf4   : > { %6338 = vmatmul.mubr.msk.bf16.vlgmr.msra.gmra.mrb[104].mxu1 %vm1132_vm3, %v4088_v50 }
 0xbf5   : > { %6348 = vmatpush3.bf16.msra.mxu1 %v4297_v33  ;;  %6349 = vmatprep.mubr.msk.bf16.mxu1 %vm7275_vm2, %v7274_v18 }
 0xbf6   : > { %6359 = vmatprep.subr.bf16.mxu1 %v7274_v18 }
 0xbf7   : > { %6332 = vmatmul.mubr.msk.bf16.vlgmr.msra.gmra.mrb[132].mxu0 %vm1132_vm3, %v4038_v24 }
 0xbf8   : > { %6342 = vmatpush3.bf16.xpose.msra.mxu0 %v4145_v48  ;;  %6343 = vmatprep.mubr.msk.bf16.mxu0 %vm7275_vm2, %v7274_v18 }
 0xbf9   : > { %6353 = vmatprep.subr.bf16.mxu0 %v7274_v18 }
 0xbff   : > { %6344 = vmatmul.mubr.msk.bf16.vlgmr.msra.gmra.mrb[136].mxu0 %vm1132_vm3, %v4138_v46 }
 0xc00   : > { %6355 = vmatprep.mubr.msk.bf16.mxu0 %vm7275_vm2, %v7274_v18 }
 0xc62   : > { %v8491_v29 = vpop.f32.mrb[76].mxu1 }
 0xc63   : > { %v6255_v36 = vpop.f32.mrb[77].mxu1 }
 0xc64   : > { %v3448_v13 = vpop.f32.mrb[78].mxu1 }
 0xc65   : > { %v6256_v11 = vpop.f32.mrb[79].mxu1 }
 0xc6a   : > { %v8493_v4 = vpop.f32.mrb[80].mxu1 }
 0xc6b   : > { %v6267_v40 = vpop.f32.mrb[81].mxu1 }
 0xc6c   : > { %v3544_v34 = vpop.f32.mrb[82].mxu1 }
 0xc6d   : > { %v8495_v17 = vpop.f32.mrb[108].mxu0  ;;  %v6268_v7 = vpop.f32.mrb[83].mxu1 }
 0xc6e   : > { %v6261_v20 = vpop.f32.mrb[109].mxu0  ;;  %v8970_v60 = vpack.i.bf16 %v8495_v17, %v8491_v29 }
 0xc6f   : > { %v3496_v10 = vpop.f32.mrb[110].mxu0 }
 0xc70   : > { %v6262_v6 = vpop.f32.mrb[111].mxu0 }
 0xc72   : > { %v8499_v24 = vpop.f32.mrb[84].mxu1 }
 0xc73   : > { %v6279_v26 = vpop.f32.mrb[85].mxu1 }
 0xc74   : > { %v3640_v52 = vpop.f32.mrb[86].mxu1 }
 0xc75   : > { %v8501_v16 = vpop.f32.mrb[112].mxu0  ;;  %v6280_v19 = vpop.f32.mrb[87].mxu1 }
 0xc76   : > { %v6600_v61 = vpack.i.bf16 %v8501_v16, %v8493_v4  ;;  %v6273_v28 = vpop.f32.mrb[113].mxu0 }
 0xc77   : > { %v3592_v46 = vpop.f32.mrb[114].mxu0 }
 0xc78   : > { %v6274_v55 = vpop.f32.mrb[115].mxu0 }
 0xc7d   : > { %v8505_v39 = vpop.f32.mrb[116].mxu0 }
 0xc7e   : > { %v6285_v51 = vpop.f32.mrb[117].mxu0 }
 0xc7f   : > { %v3688_v50 = vpop.f32.mrb[118].mxu0 }
 0xc80   : > { %v6286_v33 = vpop.f32.mrb[119].mxu0 }
 0xca7   : > { %v8509_v48 = vpop.f32.mrb[88].mxu1 }
 0xca8   : > { %v6291_v36 = vpop.f32.mrb[89].mxu1 }
 0xca9   : > { %v3736_v13 = vpop.f32.mrb[90].mxu1 }
 0xcaa   : > { %v6292_v11 = vpop.f32.mrb[91].mxu1 }
 0xcaf   : > { %v3831_v40 = vpop.f32.mrb[92].mxu1 }
 0xcb0   : > { %v8511_v34 = vmul.f32 0.35355338, %v3831_v40  ;;  %v6303_v7 = vpop.f32.mrb[93].mxu1 }
 0xcb1   : > { %v3834_v20 = vpop.f32.mrb[94].mxu1 }
 0xcb2   : > { %v8513_v10 = vpop.f32.mrb[120].mxu0  ;;  %v6304_v6 = vpop.f32.mrb[95].mxu1  ;;  %v4195_v26 = vsel %vm1132_vm3, %v8511_v34, -inf }
 0xcb3   : > { %v6297_v19 = vpop.f32.mrb[121].mxu0  ;;  %4196 = vmax.xlane.f32.xlu0 %v4195_v26 }
 0xcb4   : > { %v3784_v28 = vpop.f32.mrb[122].mxu0 }
 0xcb5   : > { %v6298_v46 = vpop.f32.mrb[123].mxu0 }
 0xcb7   : > { %v3931_v55 = vpop.f32.mrb[96].mxu1 }
 0xcb8   : > { %v4189_v51 = vmul.f32 0.35355338, %v3931_v55  ;;  %v6315_v50 = vpop.f32.mrb[97].mxu1 }
 0xcb9   : > { %v3934_v33 = vpop.f32.mrb[98].mxu1 }
 0xcba   : > { %v3881_v36 = vpop.f32.mrb[124].mxu0  ;;  %v6316_v13 = vpop.f32.mrb[99].mxu1  ;;  %v4201_v11 = vsel %vm1132_vm3, %v4189_v51, -inf }
 0xcbb   : > { %v4188_v40 = vmul.f32 0.35355338, %v3881_v36  ;;  %v6309_v7 = vpop.f32.mrb[125].mxu0  ;;  %4202 = vmax.xlane.f32.xlu0 %v4201_v11 }
 0xcbc   : > { %v3884_v20 = vpop.f32.mrb[126].mxu0 }
 0xcbd   : > { %v6310_v6 = vpop.f32.mrb[127].mxu0  ;;  %v4198_v22 = vsel %vm1132_vm3, %v4188_v40, -inf }
 0xcbe   : > { %4199 = vmax.xlane.f32.xlu1 %v4198_v22 }
 0xcbf   : > { %v4031_v19 = vpop.f32.mrb[100].mxu1 }
 0xcc0   : > { %v8521_v26 = vmul.f32 0.35355338, %v4031_v19  ;;  %v6327_v28 = vpop.f32.mrb[101].mxu1 }
 0xcc1   : > { %v4034_v46 = vpop.f32.mrb[102].mxu1 }
 0xcc2   : > { %v3981_v55 = vpop.f32.mrb[128].mxu0  ;;  %v6328_v50 = vpop.f32.mrb[103].mxu1  ;;  %v4207_v33 = vsel %vm1132_vm3, %v8521_v26, -inf }
 0xcc3   : > { %v4190_v13 = vmul.f32 0.35355338, %v3981_v55  ;;  %v6321_v52 = vpop.f32.mrb[129].mxu0  ;;  %4208 = vmax.xlane.f32.xlu1 %v4207_v33 }
 0xcc4   : > { %v3984_v36 = vpop.f32.mrb[130].mxu0 }
 0xcc5   : > { %v6322_v11 = vpop.f32.mrb[131].mxu0  ;;  %v4204_v7 = vsel %vm1132_vm3, %v4190_v13, -inf }
 0xcc6   : > { %4205 = vmax.xlane.f32.xlu0 %v4204_v7 }
 0xcc7   : > { %v4131_v20 = vpop.f32.mrb[104].mxu1 }
 0xcc8   : > { %v8526_v22 = vmul.f32 0.35355338, %v4131_v20  ;;  %v6339_v6 = vpop.f32.mrb[105].mxu1 }
 0xcc9   : > { %v4134_v19 = vpop.f32.mrb[106].mxu1 }
 0xcca   : > { %v4081_v28 = vpop.f32.mrb[132].mxu0  ;;  %v6340_v46 = vpop.f32.mrb[107].mxu1  ;;  %v4213_v50 = vsel %vm1132_vm3, %v8526_v22, -inf }
 0xccb   : > { %v4192_v27 = vmul.f32 0.35355338, %v4081_v28  ;;  %v6333_v8 = vpop.f32.mrb[133].mxu0  ;;  %4214 = vmax.xlane.f32.xlu1 %v4213_v50 }
 0xccc   : > { %v4084_v52 = vpop.f32.mrb[134].mxu0 }
 0xccd   : > { %v6334_v55 = vpop.f32.mrb[135].mxu0  ;;  %v4210_v33 = vsel %vm1132_vm3, %v4192_v27, -inf }
 0xcce   : > { %4211 = vmax.xlane.f32.xlu0 %v4210_v33 }
 0xcd2   : > { %v4181_v36 = vpop.f32.mrb[136].mxu0 }
 0xcd3   : > { %v4194_v11 = vmul.f32 0.35355338, %v4181_v36  ;;  %v6345_v7 = vpop.f32.mrb[137].mxu0 }
 0xcd4   : > { %v4184_v20 = vpop.f32.mrb[138].mxu0 }
 0xcd5   : > { %v6346_v47 = vpop.f32.mrb[139].mxu0  ;;  %v4216_v6 = vsel %vm1132_vm3, %v4194_v11, -inf }
 0xcd6   : > { %4217 = vmax.xlane.f32.xlu0 %v4216_v6 }
 0xcdc   : > { %4387 = vrot.lane.b32.xlu1 %v7835_v25, %s7286_s19 }
 0xce0   : > { %4435 = vrot.lane.b32.xlu1 %v7841_v30, %s7286_s19 }
 0xcec   : > { %4339 = vrot.lane.b32.xlu0 %v7843_v31, %s7286_s19 }
 0xd40   : > { %v4197_v8 = vpop.xlane.xlu0 %4196 }
 0xd41   : > { %v4219_v19 = vsub.f32 %v8511_v34, %v4197_v8 }
 0xd43   : > { %v4227_v28 = vmul.f32 1.442695, %v4219_v19 }
 0xd45   : > { %6776 = vpow2.f32 %v4227_v28 }
 0xd48   : > { %v4203_v46 = vpop.xlane.xlu0 %4202 }
 0xd49   : > { %v4221_v50 = vsub.f32 %v4189_v51, %v4203_v46 }
 0xd4b   : > { %v4231_v47 = vmul.f32 1.442695, %v4221_v50  ;;  %v4200_v52 = vpop.xlane.xlu1 %4199 }
 0xd4c   : > { %v4220_v55 = vsub.f32 %v4188_v40, %v4200_v52 }
 0xd4d   : > { %6778 = vpow2.f32 %v4231_v47 }
 0xd4e   : > { %v4229_v33 = vmul.f32 1.442695, %v4220_v55 }
 0xd4f   : > { %v8539_v36 = vpop.eup %6776 }
 0xd50   : > { %6780 = vpow2.f32 %v4229_v33  ;;  %v4243_v25 = vsel %vm1132_vm3, %v8539_v36, 0.0  ;;  %v4209_v50 = vpop.xlane.xlu1 %4208 }
 0xd51   : > { %4244 = vadd.xlane.f32.xlu1 %v4243_v25  ;;  %v4223_v47 = vsub.f32 %v8521_v26, %v4209_v50 }
 0xd53   : > { %v4206_v30 = vpop.xlane.xlu0 %4205  ;;  %v4235_v55 = vmul.f32 1.442695, %v4223_v47 }
 0xd54   : > { %v4222_v31 = vsub.f32 %v4190_v13, %v4206_v30 }
 0xd56   : > { %v4233_v7 = vmul.f32 1.442695, %v4222_v31 }
 0xd57   : > { %v8543_v34 = vpop.eup %6778 }
 0xd58   : > { %6782 = vpow2.f32 %v4233_v7  ;;  %v4249_v51 = vsel %vm1132_vm3, %v8543_v34, 0.0  ;;  %v4215_v52 = vpop.xlane.xlu1 %4214 }
 0xd59   : > { %4250 = vadd.xlane.f32.xlu1 %v4249_v51  ;;  %v4225_v33 = vsub.f32 %v8526_v22, %v4215_v52  ;;  %6784 = vpow2.f32 %v4235_v55 }
 0xd5a   : > { %v8547_v40 = vpop.eup %6780 }
 0xd5b   : > { %v4246_v20 = vsel %vm1132_vm3, %v8547_v40, 0.0  ;;  %v4212_v6 = vpop.xlane.xlu0 %4211  ;;  %v4239_v25 = vmul.f32 1.442695, %v4225_v33 }
 0xd5c   : > { %4247 = vadd.xlane.f32.xlu0 %v4246_v20  ;;  %v4224_v30 = vsub.f32 %v4192_v27, %v4212_v6 }
 0xd5d   : > { %6786 = vpow2.f32 %v4239_v25 }
 0xd5e   : > { %v4237_v31 = vmul.f32 1.442695, %v4224_v30 }
 0xd60   : > { %6788 = vpow2.f32 %v4237_v31 }
 0xd62   : > { %v8551_v8 = vpop.eup %6782 }
 0xd63   : > { %v4218_v19 = vpop.xlane.xlu0 %4217  ;;  %v4252_v13 = vsel %vm1132_vm3, %v8551_v8, 0.0  ;;  %v8563_v51 = vpop.eup %6784 }
 0xd64   : > { %4253 = vadd.xlane.f32.xlu0 %v4252_v13  ;;  %v4226_v7 = vsub.f32 %v4194_v11, %v4218_v19  ;;  %v4255_v26 = vsel %vm1132_vm3, %v8563_v51, 0.0 }
 0xd67   : > { %v4340_v28 = vpop.permute.xlu0 %4339  ;;  %v8567_v20 = vpop.eup %6786 }
 0xd68   : > { %v4345_v46 = vsel %vm1631_vm4, %v4340_v28, 0 }
 0xd69   : > { %6354 = vmatpush3.bf16.msra.mxu0 %v4345_v46 }
 0xd6a   : > { %4531 = vrot.lane.b32.xlu1 %v7852_v42, %s7286_s19  ;;  %6365 = vmatprep.subr.bf16.mxu0 %v7274_v18  ;;  %v4241_v42 = vmul.f32 1.442695, %v4226_v7  ;;  %v8571_v22 = vpop.eup %6788 }
 0xd6b   : > { %v4258_v27 = vsel %vm1132_vm3, %v8571_v22, 0.0 }
 0xd6c   : > { %6790 = vpow2.f32 %v4241_v42 }
 0xd76   : > { %v8575_v11 = vpop.eup %6790 }
 0xd77   : > { %v4264_v6 = vsel %vm1132_vm3, %v8575_v11, 0.0 }
 0xd7a   : > { %4483 = vrot.lane.b32.xlu0 %v7847_v38, %s7286_s19  ;;  %v4261_v38 = vsel %vm1132_vm3, %v8567_v20, 0.0 }
 0xd8e   : > { %4256 = vadd.xlane.f32.xlu1 %v4255_v26 }
 0xd92   : > { %4262 = vadd.xlane.f32.xlu1 %v4261_v38 }
 0xd99   : > { %4259 = vadd.xlane.f32.xlu0 %v4258_v27 }
 0xd9d   : > { %4265 = vadd.xlane.f32.xlu0 %v4264_v6 }
 0xda3   : > { %4627 = vrot.lane.b32.xlu1 %v7854_v43, %s7286_s19  ;;  %v8969_v43 = vpack.i.bf16 %v8305_v44, %v8301_v23 }
 0xda7   : > { %6591 = vrot.lane.b32.xlu1 %v6590_v2, %s7287_s2  ;;  %v4388_v2 = vpop.permute.xlu1 %4387 }
 0xda8   : > { %v4393_v16 = vsel %vm1631_vm4, %v4388_v2, 0 }
 0xdab   : > { %6601 = vrot.lane.b32.xlu1 %v6600_v61, %s7288_s28  ;;  %v4436_v4 = vpop.permute.xlu1 %4435 }
 0xdac   : > { %v4441_v46 = vsel %vm1631_vm4, %v4436_v4, 0 }
 0xdaf   : > { %6611 = vrot.lane.b32.xlu1 %v6610_v21, %s7287_s2 }
 0xdb3   : > { %4579 = vrot.lane.b32.xlu0 %v7849_v41, %s7286_s19  ;;  %s5437_s19 = sshll.u32 %s723_s13, 4  ;;  %s8853_s19 = int_to_ptr.vmem [resolvable:$true] %s5437_s19 }
 0xdb4   : > { %p7173_p3 = scmp.lt.s32.totalorder %s8853_s19, %s7171_s22 }
 0xdb7   : > { %6586 = vrot.lane.b32.xlu0 %v8969_v43, %s7287_s2 }
 0xdbb   : > { %6596 = vrot.lane.b32.xlu0 %v8970_v60, %s7288_s28 }
 0xdbf   : > { %6606 = vrot.lane.b32.xlu0 %v8971_v56, %s7287_s2 }
 0xdde   : > { %v4245_v58 = vpop.xlane.xlu1 %4244 }
 0xddf   : > { %6792 = vrcp.f32 %v4245_v58 }
 0xde6   : > { %v4251_v35 = vpop.xlane.xlu1 %4250 }
 0xde7   : > { %6794 = vrcp.f32 %v4251_v35 }
 0xde9   : > { %v6793_v41 = vpop.eup %6792  ;;  %v4248_v21 = vpop.xlane.xlu0 %4247 }
 0xdea   : > { %v4275_v23 = vmul.f32 %v6793_v41, %v8539_v36  ;;  %6796 = vrcp.f32 %v4248_v21  ;;  %v4532_v50 = vpop.permute.xlu1 %4531 }
 0xdeb   : > { %v4537_v52 = vsel %vm1631_vm4, %v4532_v50, 0  ;;  %v8973_v50 = vpack.i.bf16 %v8513_v10, %v8509_v48 }
 0xdec   : > { %v4283_v44 = vpack.c.bf16 %v4275_v23, %v4275_v23  ;;  %v6656_v23 = vld [vmem:[#allocation14] sm:$0xff]  }
 0xdee   : > { %6350 = vmatmul.mubr.msk.bf16.vlgmr.msra.gmra.mrb[108].mxu1 %vm1132_vm3, %v4283_v44 }
 0xdef   : > { %6360 = vmatpush3.bf16.msra.mxu1 %v4393_v16  ;;  %6361 = vmatprep.mubr.msk.bf16.mxu1 %vm7275_vm2, %v7274_v18 }
 0xdf0   : > { %6371 = vmatprep.subr.bf16.mxu1 %v7274_v18 }
 0xdf1   : > { %v6795_v54 = vpop.eup %6794  ;;  %v4254_v5 = vpop.xlane.xlu0 %4253 }
 0xdf2   : > { %v4277_v29 = vmul.f32 %v6795_v54, %v8543_v34  ;;  %6798 = vrcp.f32 %v4254_v5  ;;  %v6657_v54 = vld [vmem:[#allocation14 + $0x8] sm:$0xff]  }
 0xdf4   : > { %v6797_v17 = vpop.eup %6796  ;;  %v4285_v61 = vpack.c.bf16 %v4277_v29, %v4277_v29 }
 0xdf5   : > { %v4276_v36 = vmul.f32 %v6797_v17, %v8547_v40  ;;  %v4484_v19 = vpop.permute.xlu0 %4483 }
 0xdf6   : > { %v4489_v13 = vsel %vm1631_vm4, %v4484_v19, 0  ;;  %6362 = vmatmul.mubr.msk.bf16.vlgmr.msra.gmra.mrb[112].mxu1 %vm1132_vm3, %v4285_v61  ;;  %v8972_v19 = vpack.i.bf16 %v8505_v39, %v8499_v24 }
 0xdf7   : > { %6372 = vmatpush3.bf16.msra.mxu1 %v4489_v13  ;;  %v4284_v28 = vpack.c.bf16 %v4276_v36, %v4276_v36  ;;  %6373 = vmatprep.mubr.msk.bf16.mxu1 %vm7275_vm2, %v7274_v18 }
 0xdf8   : > { %6383 = vmatprep.subr.bf16.mxu1 %v7274_v18 }
 0xdf9   : > { %6356 = vmatmul.mubr.msk.bf16.vlgmr.msra.gmra.mrb[140].mxu0 %vm1132_vm3, %v4284_v28 }
 0xdfa   : > { %6366 = vmatpush3.bf16.msra.mxu0 %v4441_v46  ;;  %6367 = vmatprep.mubr.msk.bf16.mxu0 %vm7275_vm2, %v7274_v18 }
 0xdfb   : > { %6377 = vmatprep.subr.bf16.mxu0 %v7274_v18 }
 0xdfc   : > { %v6799_v34 = vpop.eup %6798 }
 0xdfd   : > { %v4278_v40 = vmul.f32 %v6799_v34, %v8551_v8 }
 0xdff   : > { %v4286_v47 = vpack.c.bf16 %v4278_v40, %v4278_v40 }
 0xe01   : > { %6368 = vmatmul.mubr.msk.bf16.vlgmr.msra.gmra.mrb[144].mxu0 %vm1132_vm3, %v4286_v47 }
 0xe02   : > { %6378 = vmatpush3.bf16.msra.mxu0 %v4537_v52  ;;  %6379 = vmatprep.mubr.msk.bf16.mxu0 %vm7275_vm2, %v7274_v18 }
 0xe03   : > { %6389 = vmatprep.subr.bf16.mxu0 %v7274_v18 }
 0xe1b   : > { %v4257_v55 = vpop.xlane.xlu1 %4256 }
 0xe1c   : > { %6800 = vrcp.f32 %v4257_v55 }
 0xe1f   : > { %v4263_v33 = vpop.xlane.xlu1 %4262 }
 0xe20   : > { %6802 = vrcp.f32 %v4263_v33 }
 0xe23   : > { %v4628_v60 = vpop.permute.xlu1 %4627 }
 0xe24   : > { %v4633_v4 = vsel %vm1631_vm4, %v4628_v60, 0 }
 0xe26   : > { %v6801_v25 = vpop.eup %6800  ;;  %v4260_v30 = vpop.xlane.xlu0 %4259 }
 0xe27   : > { %v4279_v8 = vmul.f32 %v6801_v25, %v8563_v51  ;;  %6804 = vrcp.f32 %v4260_v30  ;;  %v6592_v60 = vpop.permute.xlu1 %6591 }
 0xe29   : > { %v4287_v31 = vpack.c.bf16 %v4279_v8, %v4279_v8 }
 0xe2a   : > { %v6803_v7 = vpop.eup %6802  ;;  %v4266_v42 = vpop.xlane.xlu0 %4265 }
 0xe2b   : > { %6806 = vrcp.f32 %v4266_v42  ;;  %6374 = vmatmul.mubr.msk.bf16.vlgmr.msra.gmra.mrb[116].mxu1 %vm1132_vm3, %v4287_v31  ;;  %v4281_v26 = vmul.f32 %v6803_v7, %v8567_v20 }
 0xe2c   : > { %6385 = vmatprep.mubr.msk.bf16.mxu1 %vm7275_vm2, %v7274_v18 }
 0xe2d   : > { %v4289_v43 = vpack.c.bf16 %v4281_v26, %v4281_v26 }
 0xe2e   : > { %v4580_v38 = vpop.permute.xlu0 %4579 }
 0xe2f   : > { %v4585_v27 = vsel %vm1631_vm4, %v4580_v38, 0 }
 0xe30   : > { %6384 = vmatpush3.bf16.msra.mxu1 %v4585_v27 }
 0xe31   : > { %v6805_v6 = vpop.eup %6804  ;;  %6395 = vmatprep.subr.bf16.mxu1 %v6656_v23 }
 0xe32   : > { %v4280_v51 = vmul.f32 %v6805_v6, %v8571_v22  ;;  %v6587_v10 = vpop.permute.xlu0 %6586 }
 0xe33   : > { %6386 = vmatmul.mubr.msk.bf16.vlgmr.msra.gmra.mrb[120].mxu1 %vm1132_vm3, %v4289_v43 }
 0xe34   : > { %v4288_v56 = vpack.c.bf16 %v4280_v51, %v4280_v51  ;;  %6396 = vmatpush3.bf16.msra.mxu1 %v6656_v23 }
 0xe35   : > { %v6807_v2 = vpop.eup %6806  ;;  %6397 = vmatprep.subr.bf16.mxu1 %v6657_v54 }
 0xe36   : > { %6380 = vmatmul.mubr.msk.bf16.vlgmr.msra.gmra.mrb[148].mxu0 %vm1132_vm3, %v4288_v56  ;;  %v4282_v20 = vmul.f32 %v6807_v2, %v8575_v11  ;;  %v6597_v51 = vpop.permute.xlu0 %6596  ;;  %v6589_v2 = vunpack.i.h.bf16 %v6587_v10 }
 0xe37   : > { %6390 = vmatpush3.bf16.msra.mxu0 %v4633_v4  ;;  %6391 = vmatprep.mubr.msk.bf16.mxu0 %vm7275_vm2, %v7274_v18  ;;  %v6588_v4 = vunpack.i.l.bf16 %v6587_v10 }
 0xe38   : > { %v4290_v58 = vpack.c.bf16 %v4282_v20, %v4282_v20  ;;  %6398 = vmatpush3.bf16.msra.mxu1 %v6657_v54  ;;  %v6602_v20 = vpop.permute.xlu1 %6601 }
 0xe3a   : > { %v6607_v56 = vpop.permute.xlu0 %6606 }
 0xe3e   : > { %6392 = vmatmul.mubr.msk.bf16.vlgmr.msra.gmra.mrb[152].mxu0 %vm1132_vm3, %v4290_v58  ;;  %v6599_v58 = vunpack.i.h.bf16 %v6597_v51 }
 0xec1   : > { %v4333_v35 = vpop.f32.mrb[108].mxu1 }
 0xec2   : > { %v6351_v22 = vpop.f32.mrb[109].mxu1 }
 0xec3   : > { %v4336_v41 = vpop.f32.mrb[110].mxu1 }
 0xec4   : > { %v6352_v21 = vpop.f32.mrb[111].mxu1  ;;  %v4772_v41 = vsel %vm1132_vm3, %v8113_v37, %v6589_v2 }
 0xec5   : > { %v4771_v21 = vsel %vm1132_vm3, %v8111_v32, %v6588_v4  ;;  %v4780_v54 = vsel %vm781_vm0, %v4772_v41, %v6599_v58  ;;  %v5746_v41 = vld [vmem:[#allocation16] ss:$0 sm:$0xff] }
 0xec9   : > { %v4429_v44 = vpop.f32.mrb[112].mxu1 }
 0xeca   : > { %v6363_v16 = vpop.f32.mrb[113].mxu1 }
 0xecb   : > { %v4432_v5 = vpop.f32.mrb[114].mxu1 }
 0xecc   : > { %v4381_v29 = vpop.f32.mrb[140].mxu0  ;;  %v6364_v17 = vpop.f32.mrb[115].mxu1 }
 0xecd   : > { %v6615_v18 = vpack.i.bf16 %v4381_v29, %v4333_v35  ;;  %v6357_v61 = vpop.f32.mrb[141].mxu0  ;;  %v6598_v35 = vunpack.i.l.bf16 %v6597_v51  ;;  %v6612_v17 = vpop.permute.xlu1 %6611 }
 0xece   : > { %v4384_v11 = vpop.f32.mrb[142].mxu0  ;;  %v6594_v61 = vunpack.i.h.bf16 %v6592_v60 }
 0xecf   : > { %6616 = vrot.lane.b32.xlu0 %v6615_v18, %s7289_s17  ;;  %v6358_v36 = vpop.f32.mrb[143].mxu0  ;;  %v4779_v16 = vsel %vm781_vm0, %v4771_v21, %v6598_v35  ;;  %v6593_v11 = vunpack.i.l.bf16 %v6592_v60 }
 0xed0   : > { %v6604_v36 = vunpack.i.h.bf16 %v6602_v20  ;;  %v4774_v32 = vsel %vm1132_vm3, %v8115_v45, %v6594_v61 }
 0xed3   : > { %6621 = vrot.lane.b32.xlu0 %v8972_v19, %s7288_s28  ;;  %v6603_v19 = vunpack.i.l.bf16 %v6602_v20 }
 0xed4   : > { %v4477_v13 = vpop.f32.mrb[144].mxu0 }
 0xed5   : > { %v6625_v28 = vpack.i.bf16 %v4477_v13, %v4429_v44  ;;  %v6369_v46 = vpop.f32.mrb[145].mxu0  ;;  %v4773_v13 = vsel %vm1132_vm3, %v8117_v49, %v6593_v11 }
 0xed6   : > { %v4480_v34 = vpop.f32.mrb[146].mxu0 }
 0xed7   : > { %6626 = vrot.lane.b32.xlu1 %v6625_v28, %s7289_s17  ;;  %v6370_v40 = vpop.f32.mrb[147].mxu0  ;;  %v4781_v34 = vsel %vm781_vm0, %v4773_v13, %v6603_v19 }
 0xed8   : > { %v4782_v40 = vsel %vm781_vm0, %v4774_v32, %v6604_v36 }
 0xedb   : > { %6631 = vrot.lane.b32.xlu1 %v8973_v50, %s7288_s28 }
 0xefe   : > { %v4525_v47 = vpop.f32.mrb[116].mxu1 }
 0xeff   : > { %v6375_v52 = vpop.f32.mrb[117].mxu1 }
 0xf00   : > { %v4528_v55 = vpop.f32.mrb[118].mxu1 }
 0xf01   : > { %v6376_v33 = vpop.f32.mrb[119].mxu1 }
 0xf02   : > { %v6609_v33 = vunpack.i.h.bf16 %v6607_v56 }
 0xf04   : > { %v4776_v49 = vsel %vm1132_vm3, %v8123_v3, %v6609_v33 }
 0xf06   : > { %v4621_v25 = vpop.f32.mrb[120].mxu1 }
 0xf07   : > { %v6387_v30 = vpop.f32.mrb[121].mxu1 }
 0xf08   : > { %v4624_v8 = vpop.f32.mrb[122].mxu1 }
 0xf09   : > { %v4573_v24 = vpop.f32.mrb[148].mxu0  ;;  %v6388_v39 = vpop.f32.mrb[123].mxu1 }
 0xf0a   : > { %v6635_v31 = vpack.i.bf16 %v4573_v24, %v4525_v47  ;;  %v6381_v7 = vpop.f32.mrb[149].mxu0 }
 0xf0b   : > { %v4576_v42 = vpop.f32.mrb[150].mxu0 }
 0xf0c   : > { %6636 = vrot.lane.b32.xlu0 %v6635_v31, %s7289_s17  ;;  %v6382_v26 = vpop.f32.mrb[151].mxu0 }
 0xf11   : > { %v4669_v38 = vpop.f32.mrb[152].mxu0 }
 0xf12   : > { %v6640_v27 = vpack.i.bf16 %v4669_v38, %v4621_v25  ;;  %v6393_v6 = vpop.f32.mrb[153].mxu0  ;;  %v6608_v25 = vunpack.i.l.bf16 %v6607_v56 }
 0xf13   : > { %v4672_v43 = vpop.f32.mrb[154].mxu0 }
 0xf14   : > { %v6394_v48 = vpop.f32.mrb[155].mxu0  ;;  %6641 = vrot.lane.b32.xlu1 %v6640_v27, %s7289_s17  ;;  %v4775_v24 = vsel %vm1132_vm3, %v8119_v53, %v6608_v25  ;;  %v6614_v43 = vunpack.i.h.bf16 %v6612_v17  ;;  %s5424_s17 = scalar_lea.sflag [#allocation4], %s7731_s21 }
 0xf15   : > { %v6613_v48 = vunpack.i.l.bf16 %v6612_v17 }
 0xf16   : > { %v4778_v53 = vsel %vm1132_vm3, %v8127_v57, %v6614_v43 }
 0xf17   : > { %v4777_v60 = vsel %vm1132_vm3, %v8121_v59, %v6613_v48 }
 0xf41   : > { %v6617_v22 = vpop.permute.xlu0 %6616 }
 0xf42   : > { %v6619_v23 = vunpack.i.h.bf16 %v6617_v22  ;;  %v6618_v44 = vunpack.i.l.bf16 %v6617_v22 }
 0xf44   : > { %v4788_v5 = vsel %vm4787_vm5, %v4779_v16, %v6618_v44  ;;  %v4789_v29 = vsel %vm4787_vm5, %v4780_v54, %v6619_v23 }
 0xf45   : > { %v4796_v18 = vpack.c.bf16 %v4789_v29, %v4788_v5  ;;  %v6622_v55 = vpop.permute.xlu0 %6621 }
 0xf46   : > { %v6624_v45 = vunpack.i.h.bf16 %v6622_v55  ;;  %v6623_v30 = vunpack.i.l.bf16 %v6622_v55 }
 0xf47   : > { %6399 = vmatprep.mubr.msk.bf16.mxu1 %vm1043_vm1, %v4796_v18 }
 0xf48   : > { %v4783_v7 = vsel %vm781_vm0, %v4775_v24, %v6623_v30  ;;  %v4784_v42 = vsel %vm781_vm0, %v4776_v49, %v6624_v45 }
 0xf49   : > { %v6627_v37 = vpop.permute.xlu1 %6626 }
 0xf4a   : > { %v6629_v28 = vunpack.i.h.bf16 %v6627_v37  ;;  %v6628_v46 = vunpack.i.l.bf16 %v6627_v37 }
 0xf4c   : > { %v4791_v50 = vsel %vm4787_vm5, %v4782_v40, %v6629_v28  ;;  %v4790_v47 = vsel %vm4787_vm5, %v4781_v34, %v6628_v46 }
 0xf4d   : > { %v4797_v52 = vpack.c.bf16 %v4791_v50, %v4790_v47  ;;  %v6632_v26 = vpop.permute.xlu1 %6631 }
 0xf4e   : > { %v6634_v10 = vunpack.i.h.bf16 %v6632_v26  ;;  %v6633_v51 = vunpack.i.l.bf16 %v6632_v26 }
 0xf4f   : > { %6400 = vmatmul.mubr.msk.bf16.vlgmr.msra.gmra.mrb[124].mxu1 %vm1043_vm1, %v4797_v52 }
 0xf50   : > { %v4786_v4 = vsel %vm781_vm0, %v4778_v53, %v6634_v10  ;;  %v4785_v20 = vsel %vm781_vm0, %v4777_v60, %v6633_v51 }
 0xf7e   : > { %v6637_v8 = vpop.permute.xlu0 %6636 }
 0xf7f   : > { %v6639_v39 = vunpack.i.h.bf16 %v6637_v8  ;;  %v6638_v31 = vunpack.i.l.bf16 %v6637_v8 }
 0xf81   : > { %v4792_v38 = vsel %vm4787_vm5, %v4783_v7, %v6638_v31  ;;  %v4793_v27 = vsel %vm4787_vm5, %v4784_v42, %v6639_v39 }
 0xf82   : > { %v4798_v6 = vpack.c.bf16 %v4793_v27, %v4792_v38 }
 0xf84   : > { %6403 = vmatprep.mubr.msk.bf16.mxu1 %vm1043_vm1, %v4798_v6 }
 0xf86   : > { %v6642_v3 = vpop.permute.xlu1 %6641 }
 0xf87   : > { %v6644_v56 = vunpack.i.h.bf16 %v6642_v3  ;;  %v6643_v2 = vunpack.i.l.bf16 %v6642_v3 }
 0xf89   : > { %v4795_v58 = vsel %vm4787_vm5, %v4786_v4, %v6644_v56  ;;  %v4794_v35 = vsel %vm4787_vm5, %v4785_v20, %v6643_v2 }
 0xf8a   : > { %v4799_v22 = vpack.c.bf16 %v4795_v58, %v4794_v35 }
 0xf8c   : > { %6404 = vmatmul.mubr.msk.bf16.gmra.mrb[128].mxu1 %vm1043_vm1, %v4799_v22 }
0x1022   : > { %v6401_v21 = vpop.f32.mrb[124].mxu1 }
0x1023   : > { %v4878_v23 = vadd.f32 %v6401_v21, %v5746_v41  ;;  %v4869_v57 = vpop.f32.mrb[125].mxu1 }
0x1024   : > { %v4870_v44 = vadd.f32 %v5746_v41, %v4869_v57  ;;  %v6402_v16 = vpop.f32.mrb[126].mxu1 }
0x1025   : > { %v4902_v59 = vadd.f32 %v4878_v23, %v7807_v1  ;;  %v4872_v54 = vpop.f32.mrb[127].mxu1  ;;  %v4881_v17 = vadd.f32 %v6402_v16, %v5746_v41 }
0x1026   : > { %v4873_v5 = vadd.f32 %v5746_v41, %v4872_v54  ;;  %v4900_v29 = vadd.f32 %v4870_v44, %v7803_v63 }
0x1027   : > { %v4914_v18 = vsel %vm1043_vm1, %v4902_v59, 0.0  ;;  %v4903_v36 = vadd.f32 %v4881_v17, %v7801_v62  ;;  %v6660_v17 = vld [vmem:[%s8974_s16 + $0x4] ss:$8 sps:$4 sm:$0xff]  }
0x1028   : > { %v4901_v61 = vadd.f32 %v4873_v5, %v7805_v0  ;;  %4915 = vadd.xlane.f32.xlu0 %v4914_v18  ;;  %v4908_v19 = vsel %vm1043_vm1, %v4900_v29, 0.0  ;;  %v6663_v18 = vld [vmem:[%s8974_s16 + $0x14] ss:$8 sps:$4 sm:$0xff]   ;;  %5185 = vmatprep.subr.bf16.mxu0 %v6660_v17 }
0x1029   : > { %v4917_v1 = vsel %vm1043_vm1, %v4903_v36, 0.0 }
0x102a   : > { %v4911_v11 = vsel %vm1043_vm1, %v4901_v61, 0.0 }
0x102b   : > { %4912 = vadd.xlane.f32.xlu1 %v4911_v11  ;;  %v6661_v11 = vld [vmem:[%s8974_s16 + $0x10] ss:$8 sps:$4 sm:$0xff]  }
0x102c   : > { %4909 = vadd.xlane.f32.xlu0 %v4908_v19  ;;  %v6665_v19 = vld [vmem:[%s8975_s3] sm:$0xff]  }
0x1030   : > { %4918 = vadd.xlane.f32.xlu0 %v4917_v1  ;;  %v6666_v1 = vld [vmem:[%s8975_s3 + $0x48] sm:$0xff]  }
0x105f   : > { %v6405_v37 = vpop.f32.mrb[128].mxu1 }
0x1060   : > { %v4894_v32 = vadd.f32 %v6405_v37, %v5746_v41  ;;  %v4885_v63 = vpop.f32.mrb[129].mxu1  ;;  %v6667_v37 = vld [vmem:[%s8975_s3 + $0x8] sm:$0xff]  }
0x1061   : > { %v4886_v13 = vadd.f32 %v5746_v41, %v4885_v63  ;;  %v6406_v28 = vpop.f32.mrb[130].mxu1  ;;  %v6669_v63 = vld [vmem:[%s8975_s3 + $0x10] sm:$0xff]  }
0x1062   : > { %v4897_v46 = vadd.f32 %v6406_v28, %v5746_v41  ;;  %v4888_v34 = vpop.f32.mrb[131].mxu1  ;;  %v4906_v50 = vadd.f32 %v4894_v32, %v7814_v9  ;;  %v6668_v32 = vld [vmem:[%s8975_s3 + $0x50] sm:$0xff]   ;;  %v6671_v28 = vld [vmem:[%s8975_s3 + $0x18] sm:$0xff]  }
0x1063   : > { %v4904_v0 = vadd.f32 %v4886_v13, %v7817_v12  ;;  %v4889_v40 = vadd.f32 %v5746_v41, %v4888_v34  ;;  %v6670_v13 = vld [vmem:[%s8975_s3 + $0x58] sm:$0xff]   ;;  %v6673_v34 = vld [vmem:[%s8975_s3 + $0x20] sm:$0xff]  }
0x1064   : > { %v4907_v52 = vadd.f32 %v4897_v46, %v7819_v14  ;;  %v4926_v33 = vsel %vm1043_vm1, %v4906_v50, 0.0  ;;  %v6672_v46 = vld [vmem:[%s8975_s3 + $0x60] sm:$0xff]  }
0x1065   : > { %v4905_v62 = vadd.f32 %v4889_v40, %v7821_v15  ;;  %v4920_v47 = vsel %vm1043_vm1, %v4904_v0, 0.0  ;;  %v6675_v40 = vld [vmem:[%s8975_s3 + $0x28] sm:$0xff]  }
0x1066   : > { %4921 = vadd.xlane.f32.xlu1 %v4920_v47  ;;  %v4929_v25 = vsel %vm1043_vm1, %v4907_v52, 0.0 }
0x1067   : > { %v4923_v55 = vsel %vm1043_vm1, %v4905_v62, 0.0 }
0x1068   : > { %4924 = vadd.xlane.f32.xlu0 %v4923_v55 }
0x106a   : > { %4927 = vadd.xlane.f32.xlu1 %v4926_v33 }
0x106c   : > { %4930 = vadd.xlane.f32.xlu0 %v4929_v25 }
0x10b5   : > { %v4916_v12 = vpop.xlane.xlu0 %4915 }
0x10b6   : > { %v4935_v45 = vmul.f32 0.03125, %v4916_v12 }
0x10b8   : > { %v8701_v30 = vsub.f32 %v4902_v59, %v4935_v45  ;;  %v4913_v9 = vpop.xlane.xlu1 %4912 }
0x10b9   : > { %v4910_v15 = vpop.xlane.xlu0 %4909  ;;  %v4934_v14 = vmul.f32 0.03125, %v4913_v9 }
0x10ba   : > { %v4933_v8 = vmul.f32 0.03125, %v4910_v15  ;;  %v4951_v49 = vmul.f32 %v8701_v30, %v8701_v30 }
0x10bb   : > { %v8710_v26 = vsub.f32 %v4901_v61, %v4934_v14  ;;  %v7290_v61 = vmov 0  }
0x10bc   : > { %v8705_v24 = vsub.f32 %v4900_v29, %v4933_v8  ;;  %v4963_v39 = vsel %vm1043_vm1, %v4951_v49, 0.0  ;;  %v6658_v29 = vld [vmem:[%s8974_s16] ss:$8 sps:$4 sm:$0xff]   ;;  %5217 = vmatprep.mubr.bf16.mxu0 %v7290_v61 }
0x10bd   : > { %4964 = vadd.xlane.f32.xlu1 %v4963_v39  ;;  %v4919_v31 = vpop.xlane.xlu0 %4918  ;;  %v4950_v48 = vmul.f32 %v8710_v26, %v8710_v26  ;;  %5186 = vmatpush1.bf16.msra.mxu0 %v6658_v29 }
0x10be   : > { %v4936_v7 = vmul.f32 0.03125, %v4919_v31  ;;  %v4949_v42 = vmul.f32 %v8705_v24, %v8705_v24  ;;  %5187 = vmatprep.subr.bf16.mxu0 %v6663_v18 }
0x10bf   : > { %v4960_v10 = vsel %vm1043_vm1, %v4950_v48, 0.0 }
0x10c0   : > { %v8712_v38 = vsub.f32 %v4903_v36, %v4936_v7  ;;  %v4957_v27 = vsel %vm1043_vm1, %v4949_v42, 0.0  ;;  %v6664_v36 = vld [vmem:[%s8975_s3 + $0x40] sm:$0xff]   ;;  %v8791_v42 = vld [vmem:[#allocation17] ss:$0 sm:$0xff] }
0x10c1   : > { %4958 = vadd.xlane.f32.xlu1 %v4957_v27  ;;  %5188 = vmatpush1.bf16.msra.mxu0 %v6661_v11 }
0x10c2   : > { %v4952_v6 = vmul.f32 %v8712_v38, %v8712_v38  ;;  %5943 = vmatprep.subr.bf16.mxu1 %v6664_v36 }
0x10c3   : > { %5944 = vmatpush3.bf16.msra.mxu1 %v6665_v19 }
0x10c4   : > { %v4966_v43 = vsel %vm1043_vm1, %v4952_v6, 0.0  ;;  %5945 = vmatprep.subr.bf16.mxu1 %v6666_v1 }
0x10c5   : > { %4967 = vadd.xlane.f32.xlu0 %v4966_v43 }
0x10c7   : > { %5946 = vmatpush3.bf16.msra.mxu1 %v6667_v37 }
0x10c8   : > { %5947 = vmatprep.subr.bf16.mxu1 %v6668_v32 }
0x10c9   : > { %4961 = vadd.xlane.f32.xlu0 %v4960_v10  ;;  %v8796_v10 = vld [vmem:[#allocation19] ss:$0 sm:$0xff] }
0x10cb   : > { %5948 = vmatpush3.bf16.msra.mxu1 %v6669_v63 }
0x10cc   : > { %5949 = vmatprep.subr.bf16.mxu1 %v6670_v13 }
0x10cf   : > { %5950 = vmatpush3.bf16.msra.mxu1 %v6671_v28 }
0x10d0   : > { %5951 = vmatprep.subr.bf16.mxu1 %v6672_v46 }
0x10d3   : > { %5952 = vmatpush3.bf16.msra.mxu1 %v6673_v34 }
0x10f3   : > { %v4922_v51 = vpop.xlane.xlu1 %4921 }
0x10f4   : > { %v4937_v3 = vmul.f32 0.03125, %v4922_v51 }
0x10f5   : > { %v4925_v53 = vpop.xlane.xlu0 %4924 }
0x10f6   : > { %v8721_v60 = vsub.f32 %v4904_v0, %v4937_v3  ;;  %v4938_v56 = vmul.f32 0.03125, %v4925_v53  ;;  %v6674_v0 = vld [vmem:[%s8975_s3 + $0x68] sm:$0xff]  }
0x10f7   : > { %v4928_v2 = vpop.xlane.xlu1 %4927  ;;  %5953 = vmatprep.subr.bf16.mxu1 %v6674_v0 }
0x10f8   : > { %v8723_v4 = vsub.f32 %v4905_v62, %v4938_v56  ;;  %v4939_v20 = vmul.f32 0.03125, %v4928_v2  ;;  %v4953_v58 = vmul.f32 %v8721_v60, %v8721_v60  ;;  %5954 = vmatpush3.bf16.msra.mxu1 %v6675_v40 }
0x10f9   : > { %v4931_v35 = vpop.xlane.xlu0 %4930 }
0x10fa   : > { %v8727_v22 = vsub.f32 %v4906_v50, %v4939_v20  ;;  %v4940_v41 = vmul.f32 0.03125, %v4931_v35  ;;  %v4969_v21 = vsel %vm1043_vm1, %v4953_v58, 0.0  ;;  %v4954_v23 = vmul.f32 %v8723_v4, %v8723_v4 }
0x10fb   : > { %4970 = vadd.xlane.f32.xlu1 %v4969_v21 }
0x10fc   : > { %v8732_v57 = vsub.f32 %v4907_v52, %v4940_v41  ;;  %v4972_v44 = vsel %vm1043_vm1, %v4954_v23, 0.0  ;;  %v4955_v16 = vmul.f32 %v8727_v22, %v8727_v22 }
0x10fd   : > { %4973 = vadd.xlane.f32.xlu0 %v4972_v44 }
0x10fe   : > { %v4975_v59 = vsel %vm1043_vm1, %v4955_v16, 0.0  ;;  %v4956_v54 = vmul.f32 %v8732_v57, %v8732_v57 }
0x10ff   : > { %4976 = vadd.xlane.f32.xlu1 %v4975_v59 }
0x1100   : > { %v4978_v5 = vsel %vm1043_vm1, %v4956_v54, 0.0 }
0x1101   : > { %4979 = vadd.xlane.f32.xlu0 %v4978_v5 }
0x114a   : > { %v4965_v50 = vpop.xlane.xlu1 %4964 }
0x114b   : > { %v4983_v12 = vmul.f32 0.03125, %v4965_v50 }
0x114d   : > { %v4991_v9 = vadd.f32 1e-05, %v4983_v12 }
0x114e   : > { %v4959_v47 = vpop.xlane.xlu1 %4958 }
0x114f   : > { %v4981_v55 = vmul.f32 0.03125, %v4959_v47 }
0x1151   : > { %v4989_v25 = vadd.f32 1e-05, %v4981_v55 }
0x1152   : > { %v4968_v62 = vpop.xlane.xlu0 %4967 }
0x1153   : > { %6808 = vrsqrt.f32 %v4989_v25  ;;  %v4984_v15 = vmul.f32 0.03125, %v4968_v62 }
0x1155   : > { %v4992_v8 = vadd.f32 1e-05, %v4984_v15 }
0x1156   : > { %v4962_v52 = vpop.xlane.xlu0 %4961 }
0x1157   : > { %v4982_v33 = vmul.f32 0.03125, %v4962_v52 }
0x1159   : > { %v4990_v45 = vadd.f32 1e-05, %v4982_v33 }
0x115b   : > { %6810 = vrsqrt.f32 %v4990_v45 }
0x115c   : > { %6812 = vrsqrt.f32 %v4991_v9 }
0x115d   : > { %v6809_v49 = vpop.eup %6808  ;;  %6814 = vrsqrt.f32 %v4992_v8 }
0x115e   : > { %v5005_v39 = vmul.f32 %v6809_v49, %v8705_v24 }
0x1160   : > { %v5020_v6 = vmul.f32 %v8791_v42, %v5005_v39 }
0x1162   : > { %v5035_v3 = vadd.f32 %v8796_v10, %v5020_v6 }
0x1164   : > { %v5043_v56 = vsel %vm1043_vm1, %v5035_v3, -inf }
0x1165   : > { %v6811_v14 = vpop.eup %6810  ;;  %v5044_v20 = vrot.slane %v5043_v56, 4 }
0x1166   : > { %v5006_v31 = vmul.f32 %v6811_v14, %v8710_v26  ;;  %v6813_v7 = vpop.eup %6812 }
0x1167   : > { %v5007_v27 = vmul.f32 %v6813_v7, %v8701_v30  ;;  %v6815_v48 = vpop.eup %6814  ;;  %v5045_v23 = vmax.f32 %v5043_v56, %v5044_v20 }
0x1168   : > { %v5021_v43 = vmul.f32 %v8791_v42, %v5006_v31  ;;  %v5008_v26 = vmul.f32 %v6815_v48, %v8712_v38 }
0x1169   : > { %v5022_v51 = vmul.f32 %v8791_v42, %v5007_v27  ;;  %v5046_v18 = vrot.slane %v5045_v23, 2 }
0x116a   : > { %v5036_v24 = vadd.f32 %v8796_v10, %v5021_v43  ;;  %v5023_v2 = vmul.f32 %v8791_v42, %v5008_v26 }
0x116b   : > { %v5037_v53 = vadd.f32 %v8796_v10, %v5022_v51  ;;  %v5047_v46 = vmax.f32 %v5045_v23, %v5046_v18 }
0x116c   : > { %v5050_v30 = vsel %vm1043_vm1, %v5036_v24, -inf  ;;  %v5038_v41 = vadd.f32 %v8796_v10, %v5023_v2 }
0x116d   : > { %v5051_v58 = vrot.slane %v5050_v30, 4  ;;  %v5057_v35 = vsel %vm1043_vm1, %v5037_v53, -inf  ;;  %v5048_v62 = vrot.slane %v5047_v46, 1 }
0x116e   : > { %v5058_v21 = vrot.slane %v5057_v35, 4  ;;  %v5064_v38 = vsel %vm1043_vm1, %v5038_v41, -inf }
0x116f   : > { %v5052_v44 = vmax.f32 %v5050_v30, %v5051_v58  ;;  %v5065_v36 = vrot.slane %v5064_v38, 4  ;;  %v5049_v45 = vmax.f32 %v5047_v46, %v5048_v62 }
0x1170   : > { %v5059_v17 = vmax.f32 %v5057_v35, %v5058_v21 }
0x1171   : > { %v5053_v61 = vrot.slane %v5052_v44, 2  ;;  %v5066_v34 = vmax.f32 %v5064_v38, %v5065_v36  ;;  %v5099_v43 = vmax.f32 %v5049_v45, 0.0 }
0x1172   : > { %v5060_v13 = vrot.slane %v5059_v17, 2 }
0x1173   : > { %v5054_v28 = vmax.f32 %v5052_v44, %v5053_v61  ;;  %v5067_v47 = vrot.slane %v5066_v34, 2  ;;  %v5107_v58 = vpack.c.bf16 %v5099_v43, %v5099_v43 }
0x1174   : > { %v5061_v50 = vmax.f32 %v5059_v17, %v5060_v13 }
0x1175   : > { %v5055_v40 = vrot.slane %v5054_v28, 1  ;;  %v5068_v9 = vmax.f32 %v5066_v34, %v5067_v47  ;;  %v5139_v17 = vunpack.c.l.b16 %v5107_v58 }
0x1176   : > { %v5062_v12 = vrot.slane %v5061_v50, 1 }
0x1177   : > { %v5056_v55 = vmax.f32 %v5054_v28, %v5055_v40 }
0x1178   : > { %v5063_v6 = vmax.f32 %v5061_v50, %v5062_v12 }
0x1179   : > { %v5100_v14 = vmax.f32 %v5056_v55, 0.0 }
0x117a   : > { %v5101_v30 = vmax.f32 %v5063_v6, 0.0 }
0x117b   : > { %v5108_v26 = vpack.c.bf16 %v5100_v14, %v5100_v14 }
0x1188   : > { %v4971_v16 = vpop.xlane.xlu1 %4970 }
0x1189   : > { %v4985_v59 = vmul.f32 0.03125, %v4971_v16  ;;  %v5140_v16 = vunpack.c.l.b16 %v5108_v26  ;;  %v5121_v26 = vlaneseq }
0x118a   : > { %v4974_v54 = vpop.xlane.xlu0 %4973 }
0x118b   : > { %v4993_v5 = vadd.f32 1e-05, %v4985_v59  ;;  %v4986_v29 = vmul.f32 0.03125, %v4974_v54 }
0x118c   : > { %v4977_v11 = vpop.xlane.xlu1 %4976 }
0x118d   : > { %6816 = vrsqrt.f32 %v4993_v5  ;;  %v4994_v19 = vadd.f32 1e-05, %v4986_v29  ;;  %v4987_v1 = vmul.f32 0.03125, %v4977_v11  ;;  %v5109_v29 = vpack.c.bf16 %v5101_v30, %v5101_v30 }
0x118e   : > { %v4980_v37 = vpop.xlane.xlu0 %4979 }
0x118f   : > { %6818 = vrsqrt.f32 %v4994_v19  ;;  %v4995_v32 = vadd.f32 1e-05, %v4987_v1  ;;  %v4988_v63 = vmul.f32 0.03125, %v4980_v37  ;;  %v5148_v1 = vsel %vm5147_vm6, %v5140_v16, %v5139_v17 }
0x1190   : > { %v5141_v13 = vunpack.c.l.b16 %v5109_v29  ;;  %v5760_v29 = vld [vmem:[%s8977_s29] ss:$0 sm:$0xff]  ;;  %s7166_s29 = scalar_lea.vmem %s8853_s19, 128 }
0x1191   : > { %6820 = vrsqrt.f32 %v4995_v32  ;;  %v4996_v0 = vadd.f32 1e-05, %v4988_v63  ;;  %p7167_p8 = scmp.ne.s32.totalorder %s8853_s19, %s7166_s29 }
0x1192   : > { %v5150_v50 = vsel %vm5149_vm7, %v5141_v13, %v5148_v1 }
0x1193   : > { %6822 = vrsqrt.f32 %v4996_v0  ;;  %p7168_p10 = pnand %p7167_p8, %p8979_p6 }
0x1195   : > { %p7169_p11 = pneg %p7168_p10 }
0x1197   : > { %v6817_v52 = vpop.eup %6816 }
0x1198   : > { %v5009_v33 = vmul.f32 %v6817_v52, %v8721_v60  ;;  %v5069_v60 = vrot.slane %v5068_v9, 1 }
0x1199   : > { %v6819_v25 = vpop.eup %6818 }
0x119a   : > { %v5024_v15 = vmul.f32 %v8791_v42, %v5009_v33  ;;  %v5010_v8 = vmul.f32 %v6819_v25, %v8723_v4  ;;  %v5070_v35 = vmax.f32 %v5068_v9, %v5069_v60 }
0x119b   : > { %v6821_v49 = vpop.eup %6820 }
0x119c   : > { %v5039_v39 = vadd.f32 %v8796_v10, %v5024_v15  ;;  %v5025_v31 = vmul.f32 %v8791_v42, %v5010_v8  ;;  %v5011_v7 = vmul.f32 %v6821_v49, %v8727_v22  ;;  %v5102_v18 = vmax.f32 %v5070_v35, 0.0 }
0x119d   : > { %v6823_v27 = vpop.eup %6822 }
0x119e   : > { %v5071_v48 = vsel %vm1043_vm1, %v5039_v39, -inf  ;;  %v5040_v51 = vadd.f32 %v8796_v10, %v5025_v31  ;;  %v5026_v3 = vmul.f32 %v8791_v42, %v5011_v7  ;;  %v5012_v4 = vmul.f32 %v6823_v27, %v8732_v57 }
0x119f   : > { %v5072_v24 = vrot.slane %v5071_v48, 4  ;;  %v5110_v28 = vpack.c.bf16 %v5102_v18, %v5102_v18 }
0x11a0   : > { %v5078_v53 = vsel %vm1043_vm1, %v5040_v51, -inf  ;;  %v5041_v56 = vadd.f32 %v8796_v10, %v5026_v3  ;;  %v5027_v22 = vmul.f32 %v8791_v42, %v5012_v4  ;;  %v6676_v51 = vld [vmem:[%s8975_s3 + $0x70] sm:$0xff]   ;;  %v6678_v4 = vld [vmem:[%s8975_s3 + $0x78] sm:$0xff]  }
0x11a1   : > { %v5073_v2 = vmax.f32 %v5071_v48, %v5072_v24  ;;  %v5079_v20 = vrot.slane %v5078_v53, 4  ;;  %v5142_v33 = vunpack.c.l.b16 %v5110_v28  ;;  %v6677_v3 = vld [vmem:[%s8975_s3 + $0x30] sm:$0xff]   ;;  %5955 = vmatprep.subr.bf16.mxu1 %v6676_v51  ;;  %v6679_v24 = vld [vmem:[%s8975_s3 + $0x38] sm:$0xff]   ;;  %s7172_s3 = scalar_lea.vmem %s7171_s22, 256 }
0x11a2   : > { %v5085_v41 = vsel %vm1043_vm1, %v5041_v56, -inf  ;;  %v5042_v21 = vadd.f32 %v8796_v10, %v5027_v22  ;;  %5956 = vmatpush3.bf16.msra.mxu1 %v6677_v3  ;;  %v5119_v22 = vld [vmem:[#allocation20] sm:$0x3]  ;;  %p7174_p5 = scmp.lt.s32.totalorder %s7172_s3, %s7166_s29 }
0x11a3   : > { %v5074_v23 = vrot.slane %v5073_v2, 2  ;;  %v5080_v44 = vmax.f32 %v5078_v53, %v5079_v20  ;;  %v5086_v57 = vrot.slane %v5085_v41, 4  ;;  %v5152_v15 = vsel %vm5151_vm8, %v5142_v33, %v5150_v50  ;;  %5957 = vmatprep.subr.bf16.mxu1 %v6678_v4 }
0x11a4   : > { %v5092_v59 = vsel %vm1043_vm1, %v5042_v21, -inf  ;;  %v5122_v53 = vshrl.u32 %v5121_v26, 7  ;;  %p7175_p9 = por %p7174_p5, %p7173_p3 }
0x11a5   : > { %v5075_v38 = vmax.f32 %v5073_v2, %v5074_v23  ;;  %v5081_v54 = vrot.slane %v5080_v44, 2  ;;  %v5087_v5 = vmax.f32 %v5085_v41, %v5086_v57  ;;  %v5093_v42 = vrot.slane %v5092_v59, 4 }
0x11a6   : > { %5958 = vmatpush3.bf16.msra.mxu1 %v6679_v24  ;;  %v5123_v56 = vsub.s32 0, %v5122_v53  ;;  %v5127_v30 = vsub.s32 1, %v5122_v53  ;;  %p7176_p7 = pnand %p7175_p9, %p7169_p11 }
0x11a7   : > { %v5076_v61 = vrot.slane %v5075_v38, 1  ;;  %v5082_v11 = vmax.f32 %v5080_v44, %v5081_v54  ;;  %v5088_v36 = vrot.slane %v5087_v5, 2  ;;  %v5094_v19 = vmax.f32 %v5092_v59, %v5093_v42  ;;  %v5405_v54 = vld [vmem:[%s728_s6] sm:$0xff]  ;;  %s8978_s6 = sld [smem:[#allocation43_spill]] }
0x11a8   : > { %v5124_v2 = vrot.slane %v5119_v22, %v5123_v56  ;;  %v5128_v20 = vrot.slane %v5119_v22, %v5127_v30 }
0x11a9   : > { %v5077_v10 = vmax.f32 %v5075_v38, %v5076_v61  ;;  %v5083_v37 = vrot.slane %v5082_v11, 1  ;;  %v5089_v32 = vmax.f32 %v5087_v5, %v5088_v36  ;;  %v5095_v63 = vrot.slane %v5094_v19, 2 }
0x11aa   : > { %v5407_v5 = vsel %vm5406_vm13, %v5405_v54, 1.0 }
0x11ab   : > { %v5103_v46 = vmax.f32 %v5077_v10, 0.0  ;;  %v5084_v34 = vmax.f32 %v5082_v11, %v5083_v37  ;;  %v5090_v0 = vrot.slane %v5089_v32, 1  ;;  %v5096_v40 = vmax.f32 %v5094_v19, %v5095_v63 }
0x11ac   : > { %v5408_v61 = vsub.f32 1.0, %v5407_v5  ;;  %v5410_v1 = vmul.f32 -1e+08, %v5407_v5 }
0x11ad   : > { %v5091_v62 = vmax.f32 %v5089_v32, %v5090_v0  ;;  %v5097_v47 = vrot.slane %v5096_v40, 1  ;;  %v5104_v52 = vmax.f32 %v5084_v34, 0.0  ;;  %v5111_v55 = vpack.c.bf16 %v5103_v46, %v5103_v46  ;;  %s8851_s28 = scalar_lea.hbm %s8978_s6, %s5778_s4 }
0x11af   : > { %v5098_v25 = vmax.f32 %v5096_v40, %v5097_v47  ;;  %v5105_v12 = vmax.f32 %v5091_v62, 0.0  ;;  %v5112_v45 = vpack.c.bf16 %v5104_v52, %v5104_v52  ;;  %v5143_v9 = vunpack.c.l.b16 %v5111_v55 }
0x11b1   : > { %v5106_v8 = vmax.f32 %v5098_v25, 0.0  ;;  %v5113_v49 = vpack.c.bf16 %v5105_v12, %v5105_v12  ;;  %v5144_v14 = vunpack.c.l.b16 %v5112_v45  ;;  %v5154_v39 = vsel %vm5153_vm9, %v5143_v9, %v5152_v15 }
0x11b3   : > { %v5114_v31 = vpack.c.bf16 %v5106_v8, %v5106_v8  ;;  %v5145_v7 = vunpack.c.l.b16 %v5113_v49  ;;  %v5156_v27 = vsel %vm5155_vm10, %v5144_v14, %v5154_v39 }
0x11b5   : > { %v5146_v6 = vunpack.c.l.b16 %v5114_v31  ;;  %v5158_v43 = vsel %vm5157_vm11, %v5145_v7, %v5156_v27 }
0x11b7   : > { %v5160_v60 = vsel %vm5159_vm12, %v5146_v6, %v5158_v43 }
0x11b8   : > { %v5161_v48 = vpack.c.b16 %v5160_v60, %v5160_v60 }
0x11ba   : > { %5759 = vmatmul.mubr.msk.bf16.vlgmr.msra.gmra.mrb[156].mxu0 %vm1043_vm1, %v5161_v48 }
0x128d   : > { %v5219_v58 = vpop.f32.mrb[156].mxu0 }
0x128e   : > { %v5220_v35 = vadd.f32 %v5219_v58, %v5124_v2  ;;  %v5221_v41 = vpop.f32.mrb[157].mxu0 }
0x128f   : > { %v5222_v21 = vadd.f32 %v5221_v41, %v5128_v20  ;;  %v5223_v23 = vpop.f32.mrb[158].mxu0 }
0x1290   : > { %v5226_v44 = vmax.f32 %v5220_v35, 0.0  ;;  %v5224_v57 = vpop.f32.mrb[159].mxu0 }
0x1291   : > { %v5227_v16 = vmax.f32 %v5222_v21, 0.0 }
0x1292   : > { %v5228_v38 = vpack.c.bf16 %v5226_v44, %v5226_v44 }
0x1293   : > { %v5229_v59 = vpack.c.bf16 %v5227_v16, %v5227_v16 }
0x1295   : > { %5397 = vmatprep.mubr.bf16.mxu1 %v5229_v59 }
0x1296   : > { %5398 = vmatmul.mubr.bf16.vlgmr.msra.gmra.mrb[132].mxu1 %v5228_v38 }
0x1369   : > { %v5959_v42 = vpop.f32.mrb[132].mxu1 }
0x136a   : > { %v5960_v17 = vpop.f32.mrb[133].mxu1 }
0x136b   : > { %v5961_v18 = vadd.f32 %v5960_v17, %v5959_v42  ;;  %v5962_v11 = vpop.f32.mrb[134].mxu1 }
0x136c   : > { %v5963_v36 = vpop.f32.mrb[135].mxu1 }
0x136d   : > { %v5400_v19 = vadd.f32 %v5961_v18, %v5760_v29 }
0x136f   : > { %v5409_v10 = vmul.f32 %v5408_v61, %v5400_v19 }
0x1371   : > { %v5411_v37 = vadd.f32 %v5410_v1, %v5409_v10 }
0x1373   : > { %5412 = vmax.xlane.f32.xlu1 %v5411_v37 }
0x1400   : > { %v5413_v32 = vpop.xlane.xlu1 %5412 }
0x1401   : > { %v5414_v63 = vsub.f32 %v5411_v37, %v5413_v32 }
0x1403   : > { %v5415_v13 = vmul.f32 1.442695, %v5414_v63 }
0x1405   : > { %6824 = vpow2.f32 %v5415_v13 }
0x140f   : > { %v6825_v28 = vpop.eup %6824 }
0x1410   : > { %5417 = vadd.xlane.f32.xlu0 %v6825_v28 }
0x149d   : > { %v5418_v46 = vpop.xlane.xlu0 %5417 }
0x149e   : > { %6826 = vlog2.f32 %v5418_v46 }
0x14a8   : > { %v6827_v34 = vpop.eup %6826 }
0x14a9   : > { %v5420_v0 = vmul.f32 0.6931472, %v6827_v34 }
0x14ab   : > { %v5421_v40 = vsub.f32 %v5414_v63, %v5420_v0 }
0x14ad   : > { %5422 = vst [vmem:[%s723_s13] sm:$0xff] %v5421_v40 }
0x14ae   : > { %7179 = shalt.err (!%p7176_p7)
}
0x14af   : > { %s7180_s21 = scalar_lea.hbm %s8851_s28, 128  ;;  %s7184_s2 = scalar_lea.hbm %s8978_s6, 256 }
0x14b0   : > { %p7181_p4 = scmp.ne.s32.totalorder %s8851_s28, %s7180_s21  ;;  %p7185_p13 = scmp.lt.u32.totalorder %s8851_s28, %s8978_s6 }
0x14b1   : > { %p7186_p0 = scmp.lt.u32.totalorder %s7184_s2, %s7180_s21  ;;  %p7188_p8 = scmp.lt.u32.totalorder %s7180_s21, %s8851_s28 }
0x14b2   : > { %p7182_p12 = pnand %p7181_p4, %p8979_p6 }
0x14b3   : > { %p7187_p2 = por %p7186_p0, %p7185_p13 }
0x14b4   : > { %p7183_p1 = pneg %p7182_p12 }
0x14b5   : > { %p7189_p10 = por %p7188_p8, %p7187_p2 }
0x14b7   : > { %p7190_p11 = pnand %p7189_p10, %p7183_p1 }
0x14b9   : > { %7193 = shalt.err (!%p7190_p11)
}
0x14ba   : > { %6453 = dma.vmem_to_hbm [thread:$0]  (%p8979_p6), %s8853_s19, 128, %s8851_s28, %s5424_s17  }
0x14bb PF: > { %s5449_s3 = sand.u32 1, %s7244_s24   ;;  %p8980_p3 = scmp.ne.s32.totalorder %s8950_s15, 0 }
0x14bc   : > { %p8981_p5 = scmp.ge.s32.totalorder %s7256_s27, 2  ;;  %s5450_s29 = scalar_lea.sflag [#allocation4], %s5449_s3 }
0x14be   : > { %p6494_p9 = pnand %p8981_p5, %p8980_p3 }
0x14c0   : > { %7239 = dma.done.wait (!%p6494_p9), %s5450_s29, 128  }
0x14c1   : > { %7241 = vsyncadd (!%p6494_p9), %s5450_s29, 4294967168  ;;  %p36_p7 = scmp.ge.s32.totalorder %s7658_s1, 4   ;;  %s8982_s24 = smov %s7248_s25 }
0x14c2   : > { %s8983_s25 = smov %s7252_s26  ;;  %s8984_s26 = smov %s7670_s0 }
0x14c3   : > { %s8985_s27 = smov %s7658_s1  ;;  %38 = sbr.rel (!%p36_p7) target bundleno = 23 (0x17), region = 180 }
0x14ca   :  { %5455 = vsyncpa [#allocation3], 1 }
0x14cb   :  { %5457 = vsyncpa [#allocation3 + $0x1], 1 }
0x14cc   :  { %5458 = vsyncpa [#allocation6], 1 }
0x14cd   :  { %5459 = vsyncpa [#allocation9], 1 }
0x14ce   :  { %5460 = vsyncpa [#allocation12], 1 }
0x14cf   :  { %5461 = vsyncpa [#allocation15], 1 }
0x14d0   :  { %5462 = vsyncpa [#allocation18], 1 }
0x14d1   :  { %5463 = vsyncpa [#allocation21], 1 }
0x14d2   :  { %5464 = vsyncpa [#allocation4], 1 }
0x14d3   :  { %5466 = vsyncpa [#allocation4 + $0x1], 1 }

</bundles_post_ra>
